<compile_context>
chip_gen: v5e
topology: v5e:2x2
jax: 0.10.0
libtpu: 0.0.40
codegen_flags: <defaults>
</compile_context>

<pallas_src>
import jax
import jax.numpy as jnp
from jax.experimental import pallas as pl
from jax.experimental.pallas import tpu as pltpu

D_IN = 9546
NFILT = 32
NOUT = 4
NOUT_PAD = 128          # lane-dense output width (sliced back to NOUT in the wrapper)
NEG_BIG = -1.0e30       # bias of padded logits -> exp() underflows to exactly 0 in f32


def _round_up(n, m):
    return (n + m - 1) // m * m


def nn_kernel(x_ref, w1_ref, b1_ref, w2_ref, b2_ref, o_ref):
    # Layer 1: relu(x @ W1 + b1).
    # x is cast to bf16 in-VMEM (no-op if the caller stores x in bf16);
    # bf16 x bf16 on the MXU with f32 accumulation.
    x = x_ref[...].astype(jnp.bfloat16)
    h = jnp.dot(x, w1_ref[...], preferred_element_type=jnp.float32)
    h = jnp.maximum(h + b1_ref[...], 0.0)
    # Layer 2, lane-padded to 128 columns: padded columns have zero weights and
    # a huge negative bias so they contribute exp(.)=0 to the softmax sum.
    # bf16 inputs + f32 accumulate -> single MXU pass.
    y = jnp.dot(h.astype(jnp.bfloat16), w2_ref[...],
                preferred_element_type=jnp.float32) + b2_ref[...]
    # Numerically stable log_softmax over the feature axis.
    m = jnp.max(y, axis=1, keepdims=True)
    z = y - m
    lse = jnp.log(jnp.sum(jnp.exp(z), axis=1, keepdims=True))
    o_ref[...] = z - lse


def prepare_params(w1, b1, w2, b2):
    """One-time weight preprocessing (hoisted out of the per-call path)."""
    w1_bf = w1.astype(jnp.bfloat16)                                   # (D_IN, NFILT)
    b1_f = b1.reshape(1, NFILT).astype(jnp.float32)                   # (1, NFILT)
    # Lane-pad the tiny output layer to 128 columns (bf16 weights, f32 bias).
    w2_p = jnp.zeros((NFILT, NOUT_PAD), jnp.bfloat16).at[:, :NOUT].set(
        w2.astype(jnp.bfloat16))
    b2_p = jnp.full((1, NOUT_PAD), NEG_BIG, jnp.float32).at[:, :NOUT].set(
        b2.reshape(1, NOUT).astype(jnp.float32))
    return w1_bf, b1_f, w2_p, b2_p


def _vmem_limit_bytes(tb, x_itemsize):
    # Working-set estimate (lane/sublane padded) + slack; floor at 32 MiB.
    d_in_lanes = _round_up(D_IN, 128)                  # x tile lane padding
    x_bufs = 2 * tb * d_in_lanes * x_itemsize          # double-buffered x stream
    w1_bufs = 2 * _round_up(D_IN, 16) * 128 * 2        # bf16 W1, 32->128 lane pad
    out_bufs = 2 * tb * NOUT_PAD * 4
    total = x_bufs + w1_bufs + out_bufs + (4 << 20)    # + biases / internal scratch
    return int(max(total, 32 << 20))


def nn_forward(x, w1_bf, b1_f, w2_p, b2_p, *, tb=512):
    """x: (B, 9546), f32 or bf16; streamed as-is and cast to bf16 in-kernel."""
    B = x.shape[0]
    assert x.shape[1] == D_IN
    # Batch tile: multiple of 8 sublanes, no bigger than the (rounded) batch.
    tb = _round_up(max(8, min(tb, _round_up(B, 8))), 8)
    grid = (pl.cdiv(B, tb),)       # partial last tile; garbage rows sliced off below

    x_item = jnp.dtype(x.dtype).itemsize
    cost = pl.CostEstimate(
        flops=2 * B * D_IN * NFILT + 2 * B * NFILT * NOUT_PAD,
        transcendentals=B * (NOUT_PAD + 1),
        bytes_accessed=B * D_IN * x_item + D_IN * NFILT * 2 + B * NOUT_PAD * 4,
    )
    vmem_limit = _vmem_limit_bytes(tb, x_item)

    def run(single_buffer_weights):
        # Constant-index-map weight/bias blocks: request single buffering so the
        # ~2.4 MiB lane-padded W1 is not pointlessly double-buffered.
        wkw = ({"pipeline_mode": pl.Buffered(1)} if single_buffer_weights else {})
        return pl.pallas_call(
            nn_kernel,
            out_shape=jax.ShapeDtypeStruct((B, NOUT_PAD), jnp.float32),
            grid=grid,
            in_specs=[
                pl.BlockSpec((tb, D_IN), lambda i: (i, 0)),                # x (tiled)
                pl.BlockSpec((D_IN, NFILT), lambda i: (0, 0), **wkw),      # W1
                pl.BlockSpec((1, NFILT), lambda i: (0, 0), **wkw),         # b1
                pl.BlockSpec((NFILT, NOUT_PAD), lambda i: (0, 0), **wkw),  # W2 (padded)
                pl.BlockSpec((1, NOUT_PAD), lambda i: (0, 0), **wkw),      # b2 (padded)
            ],
            out_specs=pl.BlockSpec((tb, NOUT_PAD), lambda i: (i, 0)),
            compiler_params=pltpu.CompilerParams(
                dimension_semantics=("parallel",),
                vmem_limit_bytes=vmem_limit,
            ),
            cost_estimate=cost,
        )(x, w1_bf, b1_f, w2_p, b2_p)

    try:
        out = run(True)
    except Exception:
        # pipeline_mode=pl.Buffered(1) not supported by this build's pallas_call
        # lowering -> fall back to default (double-buffered) weight blocks.
        out = run(False)

    return out[:, :NOUT]


def init_params(key):
    # Deterministic synthetic init mirroring nn.Linear's uniform(-1/sqrt(fan_in), .)
    k1, k2, k3, k4 = jax.random.split(key, 4)
    bound1 = 1.0 / jnp.sqrt(D_IN)
    bound2 = 1.0 / jnp.sqrt(NFILT)
    w1 = jax.random.uniform(k1, (D_IN, NFILT), jnp.float32, -bound1, bound1)
    b1 = jax.random.uniform(k2, (1, NFILT), jnp.float32, -bound1, bound1)
    w2 = jax.random.uniform(k3, (NFILT, NOUT), jnp.float32, -bound2, bound2)
    b2 = jax.random.uniform(k4, (1, NOUT), jnp.float32, -bound2, bound2)
    return w1, b1, w2, b2


def reference(x, w1, b1, w2, b2):
    # Pure-JAX reference mirroring the kernel's bf16 quantization (x, W1, h, W2)
    # with f32 accumulation.
    hp = jax.lax.Precision.HIGHEST
    xb = x.astype(jnp.bfloat16).astype(jnp.float32)
    w1b = w1.astype(jnp.bfloat16).astype(jnp.float32)
    h = jnp.maximum(jnp.dot(xb, w1b, precision=hp) + b1.reshape(1, -1), 0.0)
    hb = h.astype(jnp.bfloat16).astype(jnp.float32)
    w2b = w2.astype(jnp.bfloat16).astype(jnp.float32)
    y = jnp.dot(hb, w2b, precision=hp) + b2.reshape(1, -1)
    return jax.nn.log_softmax(y, axis=1)


if __name__ == "__main__":
    key = jax.random.PRNGKey(0)
    k_x, k_p = jax.random.split(key)
    B = 2
    x = jax.random.normal(k_x, (B, D_IN), jnp.float32)
    w1, b1, w2, b2 = init_params(k_p)
    params = prepare_params(w1, b1, w2, b2)   # one-time weight prep

    out = nn_forward(x, *params)
    jax.block_until_ready(out)

    assert out.shape == (B, NOUT)
    # rows of log_softmax must sum to ~1 in prob space
    probs_sum = jnp.sum(jnp.exp(out), axis=1)
    assert bool(jnp.all(jnp.abs(probs_sum - 1.0) < 1e-4))
    # match the pure-JAX reference
    ref = reference(x, w1, b1, w2, b2)
    assert bool(jnp.allclose(out, ref, atol=2e-2, rtol=2e-2))
    print("KERNEL_OK")
</pallas_src>

<mosaic_0001>
module attributes {stable_mosaic.version = 11 : i64} {
  func.func @nn_kernel(%arg0: i32, %arg1: memref<8x9546xf32, #tpu.memory_space<vmem>>, %arg2: memref<9546x32xbf16, #tpu.memory_space<vmem>>, %arg3: memref<1x32xf32, #tpu.memory_space<vmem>>, %arg4: memref<32x128xbf16, #tpu.memory_space<vmem>>, %arg5: memref<1x128xf32, #tpu.memory_space<vmem>>, %arg6: memref<8x128xf32, #tpu.memory_space<vmem>>) attributes {dimension_semantics = [#tpu.dimension_semantics<parallel>], iteration_bounds = array<i64: 1>, scalar_prefetch = 0 : i64, scratch_operands = 0 : i64, tpu.core_type = #tpu.core_type<tc>, window_params = [{transform_indices = @transform_0, window_bounds = array<i64: 8, 9546>}, {pipeline_mode = #tpu.pipeline_mode<synchronous>, transform_indices = @transform_1, window_bounds = array<i64: 9546, 32>}, {pipeline_mode = #tpu.pipeline_mode<synchronous>, transform_indices = @transform_2, window_bounds = array<i64: 1, 32>}, {pipeline_mode = #tpu.pipeline_mode<synchronous>, transform_indices = @transform_3, window_bounds = array<i64: 32, 128>}, {pipeline_mode = #tpu.pipeline_mode<synchronous>, transform_indices = @transform_4, window_bounds = array<i64: 1, 128>}, {transform_indices = @transform_5, window_bounds = array<i64: 8, 128>}]} {
    %c0 = arith.constant 0 : index
    %c0_0 = arith.constant 0 : index
    %0 = vector.load %arg1[%c0, %c0_0] : memref<8x9546xf32, #tpu.memory_space<vmem>>, vector<8x9546xf32>
    %1 = arith.truncf %0 : vector<8x9546xf32> to vector<8x9546xbf16>
    %c0_1 = arith.constant 0 : index
    %c0_2 = arith.constant 0 : index
    %2 = vector.load %arg2[%c0_1, %c0_2] : memref<9546x32xbf16, #tpu.memory_space<vmem>>, vector<9546x32xbf16>
    %cst = arith.constant dense<0.000000e+00> : vector<8x32xf32>
    %3 = tpu.matmul %1, %2, %cst {dimension_numbers = #tpu.dot_dimension_numbers<[1], [0], [0], [1], [0, 0, 1, 1], [], []>} : vector<8x9546xbf16>, vector<9546x32xbf16>, vector<8x32xf32> -> vector<8x32xf32>
    %c0_3 = arith.constant 0 : index
    %c0_4 = arith.constant 0 : index
    %4 = vector.load %arg3[%c0_3, %c0_4] : memref<1x32xf32, #tpu.memory_space<vmem>>, vector<1x32xf32>
    %5 = vector.broadcast %4 : vector<1x32xf32> to vector<8x32xf32>
    %6 = arith.addf %3, %5 : vector<8x32xf32>
    %cst_5 = arith.constant 0.000000e+00 : f32
    %7 = vector.broadcast %cst_5 : f32 to vector<8x32xf32>
    %8 = arith.maximumf %6, %7 : vector<8x32xf32>
    %9 = arith.truncf %8 : vector<8x32xf32> to vector<8x32xbf16>
    %c0_6 = arith.constant 0 : index
    %c0_7 = arith.constant 0 : index
    %10 = vector.load %arg4[%c0_6, %c0_7] : memref<32x128xbf16, #tpu.memory_space<vmem>>, vector<32x128xbf16>
    %cst_8 = arith.constant dense<0.000000e+00> : vector<8x128xf32>
    %11 = tpu.matmul %9, %10, %cst_8 {dimension_numbers = #tpu.dot_dimension_numbers<[1], [0], [0], [1], [0, 0, 1, 1], [], []>} : vector<8x32xbf16>, vector<32x128xbf16>, vector<8x128xf32> -> vector<8x128xf32>
    %c0_9 = arith.constant 0 : index
    %c0_10 = arith.constant 0 : index
    %12 = vector.load %arg5[%c0_9, %c0_10] : memref<1x128xf32, #tpu.memory_space<vmem>>, vector<1x128xf32>
    %13 = vector.broadcast %12 : vector<1x128xf32> to vector<8x128xf32>
    %14 = arith.addf %11, %13 : vector<8x128xf32>
    %cst_11 = arith.constant dense<0xFF800000> : vector<8xf32>
    %15 = vector.multi_reduction <maximumf>, %14, %cst_11 [1] : vector<8x128xf32> to vector<8xf32>
    %16 = vector.shape_cast %15 : vector<8xf32> to vector<8x1xf32>
    %17 = vector.broadcast %16 : vector<8x1xf32> to vector<8x128xf32>
    %18 = arith.subf %14, %17 : vector<8x128xf32>
    %19 = math.exp %18 : vector<8x128xf32>
    %cst_12 = arith.constant dense<0.000000e+00> : vector<8xf32>
    %20 = vector.multi_reduction <add>, %19, %cst_12 [1] : vector<8x128xf32> to vector<8xf32>
    %21 = vector.shape_cast %20 : vector<8xf32> to vector<8x1xf32>
    %22 = math.log %21 : vector<8x1xf32>
    %23 = vector.broadcast %22 : vector<8x1xf32> to vector<8x128xf32>
    %24 = arith.subf %18, %23 : vector<8x128xf32>
    %c0_13 = arith.constant 0 : index
    %c0_14 = arith.constant 0 : index
    %25 = vector.load %arg6[%c0_13, %c0_14] : memref<8x128xf32, #tpu.memory_space<vmem>>, vector<8x128xf32>
    tpu.vector_store %arg6[%c0_13, %c0_14], %24 {strides = array<i32>} : memref<8x128xf32, #tpu.memory_space<vmem>>, vector<8x128xf32>,
    return
  }
  func.func @transform_0(%arg0: i32) -> (i32, i32) {
    %c0_i32 = arith.constant 0 : i32
    %c0_i32_0 = arith.constant 0 : i32
    return %arg0, %c0_i32 : i32, i32
  }
  func.func @transform_1(%arg0: i32) -> (i32, i32) {
    %c0_i32 = arith.constant 0 : i32
    %c0_i32_0 = arith.constant 0 : i32
    %c0_i32_1 = arith.constant 0 : i32
    return %c0_i32, %c0_i32_0 : i32, i32
  }
  func.func @transform_2(%arg0: i32) -> (i32, i32) {
    %c0_i32 = arith.constant 0 : i32
    %c0_i32_0 = arith.constant 0 : i32
    %c0_i32_1 = arith.constant 0 : i32
    return %c0_i32, %c0_i32_0 : i32, i32
  }
  func.func @transform_3(%arg0: i32) -> (i32, i32) {
    %c0_i32 = arith.constant 0 : i32
    %c0_i32_0 = arith.constant 0 : i32
    %c0_i32_1 = arith.constant 0 : i32
    return %c0_i32, %c0_i32_0 : i32, i32
  }
  func.func @transform_4(%arg0: i32) -> (i32, i32) {
    %c0_i32 = arith.constant 0 : i32
    %c0_i32_0 = arith.constant 0 : i32
    %c0_i32_1 = arith.constant 0 : i32
    return %c0_i32, %c0_i32_0 : i32, i32
  }
  func.func @transform_5(%arg0: i32) -> (i32, i32) {
    %c0_i32 = arith.constant 0 : i32
    %c0_i32_0 = arith.constant 0 : i32
    return %arg0, %c0_i32 : i32, i32
  }
}

module attributes {stable_mosaic.version = 11 : i64} {
  func.func @nn_kernel(%arg0: i32, %arg1: memref<8x9546xf32, #tpu.memory_space<vmem>>, %arg2: memref<9546x32xbf16, #tpu.memory_space<vmem>>, %arg3: memref<1x32xf32, #tpu.memory_space<vmem>>, %arg4: memref<32x128xbf16, #tpu.memory_space<vmem>>, %arg5: memref<1x128xf32, #tpu.memory_space<vmem>>, %arg6: memref<8x128xf32, #tpu.memory_space<vmem>>) attributes {dimension_semantics = [#tpu.dimension_semantics<parallel>], iteration_bounds = array<i64: 1>, scalar_prefetch = 0 : i64, scratch_operands = 0 : i64, tpu.core_type = #tpu.core_type<tc>, window_params = [{transform_indices = @transform_0, window_bounds = array<i64: 8, 9546>}, {pipeline_mode = #tpu.pipeline_mode<synchronous>, transform_indices = @transform_1, window_bounds = array<i64: 9546, 32>}, {pipeline_mode = #tpu.pipeline_mode<synchronous>, transform_indices = @transform_2, window_bounds = array<i64: 1, 32>}, {pipeline_mode = #tpu.pipeline_mode<synchronous>, transform_indices = @transform_3, window_bounds = array<i64: 32, 128>}, {pipeline_mode = #tpu.pipeline_mode<synchronous>, transform_indices = @transform_4, window_bounds = array<i64: 1, 128>}, {transform_indices = @transform_5, window_bounds = array<i64: 8, 128>}]} {
    %c0 = arith.constant 0 : index
    %c0_0 = arith.constant 0 : index
    %0 = vector.load %arg1[%c0, %c0_0] : memref<8x9546xf32, #tpu.memory_space<vmem>>, vector<8x9546xf32>
    %1 = arith.truncf %0 : vector<8x9546xf32> to vector<8x9546xbf16>
    %c0_1 = arith.constant 0 : index
    %c0_2 = arith.constant 0 : index
    %2 = vector.load %arg2[%c0_1, %c0_2] : memref<9546x32xbf16, #tpu.memory_space<vmem>>, vector<9546x32xbf16>
    %cst = arith.constant dense<0.000000e+00> : vector<8x32xf32>
    %3 = tpu.matmul %1, %2, %cst {dimension_numbers = #tpu.dot_dimension_numbers<[1], [0], [0], [1], [0, 0, 1, 1], [], []>} : vector<8x9546xbf16>, vector<9546x32xbf16>, vector<8x32xf32> -> vector<8x32xf32>
    %c0_3 = arith.constant 0 : index
    %c0_4 = arith.constant 0 : index
    %4 = vector.load %arg3[%c0_3, %c0_4] : memref<1x32xf32, #tpu.memory_space<vmem>>, vector<1x32xf32>
    %5 = vector.broadcast %4 : vector<1x32xf32> to vector<8x32xf32>
    %6 = arith.addf %3, %5 : vector<8x32xf32>
    %cst_5 = arith.constant 0.000000e+00 : f32
    %7 = vector.broadcast %cst_5 : f32 to vector<8x32xf32>
    %8 = arith.maximumf %6, %7 : vector<8x32xf32>
    %9 = arith.truncf %8 : vector<8x32xf32> to vector<8x32xbf16>
    %c0_6 = arith.constant 0 : index
    %c0_7 = arith.constant 0 : index
    %10 = vector.load %arg4[%c0_6, %c0_7] : memref<32x128xbf16, #tpu.memory_space<vmem>>, vector<32x128xbf16>
    %cst_8 = arith.constant dense<0.000000e+00> : vector<8x128xf32>
    %11 = tpu.matmul %9, %10, %cst_8 {dimension_numbers = #tpu.dot_dimension_numbers<[1], [0], [0], [1], [0, 0, 1, 1], [], []>} : vector<8x32xbf16>, vector<32x128xbf16>, vector<8x128xf32> -> vector<8x128xf32>
    %c0_9 = arith.constant 0 : index
    %c0_10 = arith.constant 0 : index
    %12 = vector.load %arg5[%c0_9, %c0_10] : memref<1x128xf32, #tpu.memory_space<vmem>>, vector<1x128xf32>
    %13 = vector.broadcast %12 : vector<1x128xf32> to vector<8x128xf32>
    %14 = arith.addf %11, %13 : vector<8x128xf32>
    %cst_11 = arith.constant dense<0xFF800000> : vector<8xf32>
    %15 = vector.multi_reduction <maximumf>, %14, %cst_11 [1] : vector<8x128xf32> to vector<8xf32>
    %16 = vector.shape_cast %15 : vector<8xf32> to vector<8x1xf32>
    %17 = vector.broadcast %16 : vector<8x1xf32> to vector<8x128xf32>
    %18 = arith.subf %14, %17 : vector<8x128xf32>
    %19 = math.exp %18 : vector<8x128xf32>
    %cst_12 = arith.constant dense<0.000000e+00> : vector<8xf32>
    %20 = vector.multi_reduction <add>, %19, %cst_12 [1] : vector<8x128xf32> to vector<8xf32>
    %21 = vector.shape_cast %20 : vector<8xf32> to vector<8x1xf32>
    %22 = math.log %21 : vector<8x1xf32>
    %23 = vector.broadcast %22 : vector<8x1xf32> to vector<8x128xf32>
    %24 = arith.subf %18, %23 : vector<8x128xf32>
    %c0_13 = arith.constant 0 : index
    %c0_14 = arith.constant 0 : index
    %25 = vector.load %arg6[%c0_13, %c0_14] : memref<8x128xf32, #tpu.memory_space<vmem>>, vector<8x128xf32>
    tpu.vector_store %arg6[%c0_13, %c0_14], %24 {strides = array<i32>} : memref<8x128xf32, #tpu.memory_space<vmem>>, vector<8x128xf32>,
    return
  }
  func.func @transform_0(%arg0: i32) -> (i32, i32) {
    %c0_i32 = arith.constant 0 : i32
    %c0_i32_0 = arith.constant 0 : i32
    return %arg0, %c0_i32 : i32, i32
  }
  func.func @transform_1(%arg0: i32) -> (i32, i32) {
    %c0_i32 = arith.constant 0 : i32
    %c0_i32_0 = arith.constant 0 : i32
    %c0_i32_1 = arith.constant 0 : i32
    return %c0_i32, %c0_i32_0 : i32, i32
  }
  func.func @transform_2(%arg0: i32) -> (i32, i32) {
    %c0_i32 = arith.constant 0 : i32
    %c0_i32_0 = arith.constant 0 : i32
    %c0_i32_1 = arith.constant 0 : i32
    return %c0_i32, %c0_i32_0 : i32, i32
  }
  func.func @transform_3(%arg0: i32) -> (i32, i32) {
    %c0_i32 = arith.constant 0 : i32
    %c0_i32_0 = arith.constant 0 : i32
    %c0_i32_1 = arith.constant 0 : i32
    return %c0_i32, %c0_i32_0 : i32, i32
  }
  func.func @transform_4(%arg0: i32) -> (i32, i32) {
    %c0_i32 = arith.constant 0 : i32
    %c0_i32_0 = arith.constant 0 : i32
    %c0_i32_1 = arith.constant 0 : i32
    return %c0_i32, %c0_i32_0 : i32, i32
  }
  func.func @transform_5(%arg0: i32) -> (i32, i32) {
    %c0_i32 = arith.constant 0 : i32
    %c0_i32_0 = arith.constant 0 : i32
    return %arg0, %c0_i32 : i32, i32
  }
}

</mosaic_0001>

<bundles_post_ra>
// kernel: tpu_custom_call.1
= control target key start
LH: loop header
LB: loop body
LE: loop exit
PB: predicated region body
PF: predicated region fallthrough
CT: control target
= control target key end

     0   :  { %10 = vsyncpa [#allocation3], 0  ;;  %vm5265_vm0 = vcmask 1044480   ;;  %vm5261_vm1 = vcmask 605184   ;;  %vm6266_vm2 = vcmask 261120   ;;  %s11453_s0 = inlined_call_operand.vmem [shape: f32[2,9546], index: 0, kind: input, shape index: {}]   ;;  %s11454_s1 = inlined_call_operand.vmem [shape: bf16[9546,32], index: 1, kind: input, shape index: {}]   ;;  %s11455_s2 = inlined_call_operand.vmem [shape: f32[1,32], index: 2, kind: input, shape index: {}]   ;;  %s11456_s3 = inlined_call_operand.vmem [shape: bf16[32,128], index: 3, kind: input, shape index: {}]   ;;  %s11457_s4 = inlined_call_operand.vmem [shape: f32[1,128], index: 4, kind: input, shape index: {}]   ;;  %s11458_s5 = inlined_call_operand.hbm [shape: f32[2,128], index: 5, kind: output, shape index: {}]  }
   0x1   :  { %v8717_v0 = vld [vmem:[%s11454_s1 + $0x38] sm:$0xff]  ;;  %v8716_v4 = vld [vmem:[%s11454_s1 + $0x30] sm:$0xff]  ;;  %v8715_v8 = vld [vmem:[%s11454_s1 + $0x28] sm:$0xff] }
   0x2   :  { %v8725_v1 = vld [vmem:[%s11454_s1 + $0x78] sm:$0xff]  ;;  %5269 = vmatpush.bf16.msra.mxu0 %v8717_v0  ;;  %v8724_v5 = vld [vmem:[%s11454_s1 + $0x70] sm:$0xff]  ;;  %v8723_v9 = vld [vmem:[%s11454_s1 + $0x68] sm:$0xff] }
   0x3   :  { %v8733_v2 = vld [vmem:[%s11454_s1 + $0xb8] sm:$0xff]  ;;  %5282 = vmatpush.bf16.msra.mxu1 %v8725_v1  ;;  %v8732_v6 = vld [vmem:[%s11454_s1 + $0xb0] sm:$0xff]  ;;  %v8731_v10 = vld [vmem:[%s11454_s1 + $0xa8] sm:$0xff] }
   0x4   :  { %v8741_v3 = vld [vmem:[%s11454_s1 + $0xf8] sm:$0xff]  ;;  %5295 = vmatpush.bf16.msra.mxu2 %v8733_v2  ;;  %v8740_v7 = vld [vmem:[%s11454_s1 + $0xf0] sm:$0xff]  ;;  %v8739_v11 = vld [vmem:[%s11454_s1 + $0xe8] sm:$0xff] }
   0x5   :  { %5308 = vmatpush.bf16.msra.mxu3 %v8741_v3  ;;  %v8714_v12 = vld [vmem:[%s11454_s1 + $0x20] sm:$0xff]  ;;  %v8713_v16 = vld [vmem:[%s11454_s1 + $0x18] sm:$0xff]  ;;  %v8712_v20 = vld [vmem:[%s11454_s1 + $0x10] sm:$0xff] }
   0x6   :  { %5270 = vmatpush.bf16.msra.mxu0 %v8716_v4  ;;  %v8722_v13 = vld [vmem:[%s11454_s1 + $0x60] sm:$0xff]  ;;  %v8721_v17 = vld [vmem:[%s11454_s1 + $0x58] sm:$0xff]  ;;  %v8720_v21 = vld [vmem:[%s11454_s1 + $0x50] sm:$0xff] }
   0x7   :  { %5283 = vmatpush.bf16.msra.mxu1 %v8724_v5  ;;  %v8730_v14 = vld [vmem:[%s11454_s1 + $0xa0] sm:$0xff]  ;;  %v8729_v18 = vld [vmem:[%s11454_s1 + $0x98] sm:$0xff]  ;;  %v60_v24 = vld [vmem:[%s11453_s0 + $0x12c] sm:$0xff] }
   0x8   :  { %5296 = vmatpush.bf16.msra.mxu2 %v8732_v6  ;;  %v8738_v15 = vld [vmem:[%s11454_s1 + $0xe0] sm:$0xff]  ;;  %v8737_v19 = vld [vmem:[%s11454_s1 + $0xd8] sm:$0xff]  ;;  %v8728_v26 = vld [vmem:[%s11454_s1 + $0x90] sm:$0xff]  ;;  %178 = vst [vmem:[#allocation1 + $0x2] ss:$4 sm:$0xff] %v60_v24 }
   0x9   :  { %5309 = vmatpush.bf16.msra.mxu3 %v8740_v7  ;;  %v22_v22 = vld [vmem:[%s11453_s0] sm:$0xff]  ;;  %v41_v23 = vld [vmem:[%s11453_s0 + $0x96] sm:$0xff]  ;;  %v8711_v28 = vld [vmem:[%s11454_s1 + $0x8] sm:$0xff] }
   0xa   :  { %5271 = vmatpush.bf16.msra.mxu0 %v8715_v8  ;;  %v79_v25 = vld [vmem:[%s11453_s0 + $0x1c2] sm:$0xff]  ;;  %174 = vst [vmem:[#allocation1] ss:$4 sm:$0xff] %v22_v22  ;;  %v8736_v27 = vld [vmem:[%s11454_s1 + $0xd0] sm:$0xff]  ;;  %v8749_v37 = vld [vmem:[%s11454_s1 + $0x138] sm:$0xff] }
   0xb   :  { %5284 = vmatpush.bf16.msra.mxu1 %v8723_v9  ;;  %176 = vst [vmem:[#allocation1 + $0x1] ss:$4 sm:$0xff] %v41_v23  ;;  %v8719_v29 = vld [vmem:[%s11454_s1 + $0x48] sm:$0xff]  ;;  %v8710_v32 = vld [vmem:[%s11454_s1] sm:$0xff]  ;;  %v8757_v38 = vld [vmem:[%s11454_s1 + $0x178] sm:$0xff] }
   0xc   :  { %5297 = vmatpush.bf16.msra.mxu2 %v8731_v10  ;;  %180 = vst [vmem:[#allocation1 + $0x3] ss:$4 sm:$0xff] %v79_v25  ;;  %v8727_v30 = vld [vmem:[%s11454_s1 + $0x88] sm:$0xff]  ;;  %v42_v34 = vld [vmem:[%s11453_s0 + $0x9e] sm:$0xff]  ;;  %v61_v40 = vld [vmem:[%s11453_s0 + $0x134] sm:$0xff] }
   0xd   :  { %5310 = vmatpush.bf16.msra.mxu3 %v8739_v11  ;;  %v8735_v31 = vld [vmem:[%s11454_s1 + $0xc8] sm:$0xff]  ;;  %v8718_v35 = vld [vmem:[%s11454_s1 + $0x40] sm:$0xff]  ;;  %v8765_v39 = vld [vmem:[%s11454_s1 + $0x1b8] sm:$0xff]  ;;  %184 = vst [vmem:[#allocation1 + $0x21] ss:$4 sm:$0xff] %v42_v34 }
   0xe   :  { %5272 = vmatpush.bf16.msra.mxu0 %v8714_v12  ;;  %v23_v33 = vld [vmem:[%s11453_s0 + $0x8] sm:$0xff]  ;;  %v8726_v36 = vld [vmem:[%s11454_s1 + $0x80] sm:$0xff]  ;;  %v8773_v44 = vld [vmem:[%s11454_s1 + $0x1f8] sm:$0xff]  ;;  %186 = vst [vmem:[#allocation1 + $0x22] ss:$4 sm:$0xff] %v61_v40 }
   0xf   :  { %5285 = vmatpush.bf16.msra.mxu1 %v8722_v13  ;;  %182 = vst [vmem:[#allocation1 + $0x20] ss:$4 sm:$0xff] %v23_v33  ;;  %v8734_v43 = vld [vmem:[%s11454_s1 + $0xc0] sm:$0xff]  ;;  %v80_v49 = vld [vmem:[%s11453_s0 + $0x1ca] sm:$0xff]  ;;  %v8745_v0 = vld [vmem:[%s11454_s1 + $0x118] sm:$0xff] }
  0x10   :  { %5298 = vmatpush.bf16.msra.mxu2 %v8730_v14  ;;  %v8748_v50 = vld [vmem:[%s11454_s1 + $0x130] sm:$0xff]  ;;  %188 = vst [vmem:[#allocation1 + $0x23] ss:$4 sm:$0xff] %v80_v49  ;;  %v8747_v56 = vld [vmem:[%s11454_s1 + $0x128] sm:$0xff]  ;;  %v8746_v60 = vld [vmem:[%s11454_s1 + $0x120] sm:$0xff] }
  0x11   :  { %5311 = vmatpush.bf16.msra.mxu3 %v8738_v15  ;;  %v8756_v52 = vld [vmem:[%s11454_s1 + $0x170] sm:$0xff]  ;;  %v8755_v57 = vld [vmem:[%s11454_s1 + $0x168] sm:$0xff]  ;;  %v8754_v61 = vld [vmem:[%s11454_s1 + $0x160] sm:$0xff] }
  0x12   :  { %5273 = vmatpush.bf16.msra.mxu0 %v8713_v16  ;;  %v8764_v53 = vld [vmem:[%s11454_s1 + $0x1b0] sm:$0xff]  ;;  %v8763_v58 = vld [vmem:[%s11454_s1 + $0x1a8] sm:$0xff]  ;;  %v8762_v62 = vld [vmem:[%s11454_s1 + $0x1a0] sm:$0xff] }
  0x13   :  { %5286 = vmatpush.bf16.msra.mxu1 %v8721_v17  ;;  %v191_v41 = vld.sshfl [vmem:[#allocation1 + $0x10] sm:$0xff pattern:$0x73625140]  ;;  %v189_v42 = vld.sshfl [vmem:[#allocation1] sm:$0xff pattern:$0x73625140] }
  0x14   :  { %5299 = vmatpush.bf16.msra.mxu2 %v8729_v18  ;;  %v407_v45 = vpack.c.bf16 %v189_v42, %v189_v42  ;;  %v190_v46 = vld.sshfl [vmem:[#allocation1 + $0x8] sm:$0xff pattern:$0x73625140]  ;;  %v409_v47 = vpack.c.bf16 %v191_v41, %v191_v41  ;;  %v192_v48 = vld.sshfl [vmem:[#allocation1 + $0x18] sm:$0xff pattern:$0x73625140] }
  0x15   :  { %5312 = vmatpush.bf16.msra.mxu3 %v8737_v19  ;;  %v408_v51 = vpack.c.bf16 %v190_v46, %v190_v46  ;;  %v410_v54 = vpack.c.bf16 %v192_v48, %v192_v48  ;;  %v8772_v55 = vld [vmem:[%s11454_s1 + $0x1f0] sm:$0xff]  ;;  %v8771_v59 = vld [vmem:[%s11454_s1 + $0x1e8] sm:$0xff]  ;;  %v8770_v63 = vld [vmem:[%s11454_s1 + $0x1e0] sm:$0xff] }
  0x16   :  { %5274 = vmatpush.bf16.msra.mxu0 %v8712_v20  ;;  %v8753_v1 = vld [vmem:[%s11454_s1 + $0x158] sm:$0xff]  ;;  %v8744_v4 = vld [vmem:[%s11454_s1 + $0x110] sm:$0xff]  ;;  %v43_v9 = vld [vmem:[%s11453_s0 + $0xa6] sm:$0xff] }
  0x17   :  { %5287 = vmatpush.bf16.msra.mxu1 %v8720_v21  ;;  %v8761_v2 = vld [vmem:[%s11454_s1 + $0x198] sm:$0xff]  ;;  %v8752_v5 = vld [vmem:[%s11454_s1 + $0x150] sm:$0xff]  ;;  %v8743_v10 = vld [vmem:[%s11454_s1 + $0x108] sm:$0xff]  ;;  %198 = vst [vmem:[#allocation1 + $0x1] ss:$4 sm:$0xff] %v43_v9 }
  0x18   :  { %5300 = vmatpush.bf16.msra.mxu2 %v8728_v26  ;;  %v8769_v3 = vld [vmem:[%s11454_s1 + $0x1d8] sm:$0xff]  ;;  %v8760_v6 = vld [vmem:[%s11454_s1 + $0x190] sm:$0xff]  ;;  %v8751_v13 = vld [vmem:[%s11454_s1 + $0x148] sm:$0xff] }
  0x19   :  { %5313 = vmatpush.bf16.msra.mxu3 %v8736_v27  ;;  %v8768_v7 = vld [vmem:[%s11454_s1 + $0x1d0] sm:$0xff]  ;;  %v62_v11 = vld [vmem:[%s11453_s0 + $0x13c] sm:$0xff]  ;;  %v8759_v14 = vld [vmem:[%s11454_s1 + $0x188] sm:$0xff] }
  0x1a   :  { %5275 = vmatpush.bf16.msra.mxu0 %v8711_v28  ;;  %v24_v8 = vld [vmem:[%s11453_s0 + $0x10] sm:$0xff]  ;;  %199 = vst [vmem:[#allocation1 + $0x2] ss:$4 sm:$0xff] %v62_v11  ;;  %v8767_v15 = vld [vmem:[%s11454_s1 + $0x1c8] sm:$0xff]  ;;  %v8742_v16 = vld [vmem:[%s11454_s1 + $0x100] sm:$0xff] }
  0x1b   :  { %5288 = vmatpush.bf16.msra.mxu1 %v8719_v29  ;;  %v81_v12 = vld [vmem:[%s11453_s0 + $0x1d2] sm:$0xff]  ;;  %197 = vst [vmem:[#allocation1] ss:$4 sm:$0xff] %v24_v8  ;;  %v8750_v17 = vld [vmem:[%s11454_s1 + $0x140] sm:$0xff] }
  0x1c   :  { %5301 = vmatpush.bf16.msra.mxu2 %v8727_v30  ;;  %200 = vst [vmem:[#allocation1 + $0x3] ss:$4 sm:$0xff] %v81_v12  ;;  %v8758_v18 = vld [vmem:[%s11454_s1 + $0x180] sm:$0xff]  ;;  %v8781_v19 = vld [vmem:[%s11454_s1 + $0x238] sm:$0xff]  ;;  %v8796_v33 = vld [vmem:[%s11454_s1 + $0x2b0] sm:$0xff] }
  0x1d   :  { %5314 = vmatpush.bf16.msra.mxu3 %v8735_v31  ;;  %v8789_v20 = vld [vmem:[%s11454_s1 + $0x278] sm:$0xff]  ;;  %v195_v21 = vld.sshfl [vmem:[#allocation1 + $0x30] sm:$0xff pattern:$0x73625140]  ;;  %v8766_v25 = vld [vmem:[%s11454_s1 + $0x1c0] sm:$0xff] }
  0x1e   :  { %5276 = vmatpush.bf16.msra.mxu0 %v8710_v32  ;;  %v193_v22 = vld.sshfl [vmem:[#allocation1 + $0x20] sm:$0xff pattern:$0x73625140]  ;;  %v194_v23 = vld.sshfl [vmem:[#allocation1 + $0x28] sm:$0xff pattern:$0x73625140]  ;;  %v413_v27 = vpack.c.bf16 %v195_v21, %v195_v21 }
  0x1f   :  { %5289 = vmatpush.bf16.msra.mxu1 %v8718_v35  ;;  %v8797_v24 = vld [vmem:[%s11454_s1 + $0x2b8] sm:$0xff]  ;;  %v411_v29 = vpack.c.bf16 %v193_v22, %v193_v22  ;;  %v412_v30 = vpack.c.bf16 %v194_v23, %v194_v23  ;;  %v8780_v31 = vld [vmem:[%s11454_s1 + $0x230] sm:$0xff]  ;;  %v8778_v40 = vld [vmem:[%s11454_s1 + $0x220] sm:$0xff] }
  0x20   :  { %5302 = vmatpush.bf16.msra.mxu2 %v8726_v36  ;;  %v8805_v26 = vld [vmem:[%s11454_s1 + $0x2f8] sm:$0xff]  ;;  %v8788_v32 = vld [vmem:[%s11454_s1 + $0x270] sm:$0xff]  ;;  %v8779_v36 = vld [vmem:[%s11454_s1 + $0x228] sm:$0xff] }
  0x21   :  { %5315 = vmatpush.bf16.msra.mxu3 %v8734_v43  ;;  %5277 = vmatmul.bf16.vlgmr.msra.gmra.mxu0 %v407_v45  ;;  %v196_v28 = vld.sshfl [vmem:[#allocation1 + $0x38] sm:$0xff pattern:$0x73625140]  ;;  %v8804_v35 = vld [vmem:[%s11454_s1 + $0x2f0] sm:$0xff]  ;;  %v8786_v41 = vld [vmem:[%s11454_s1 + $0x260] sm:$0xff] }
  0x22   :  { %5321 = vmatpush.bf16.msrb.mxu0 %v8749_v37  ;;  %5290 = vmatmul.bf16.vlgmr.msra.gmra.mxu1 %v408_v51  ;;  %v414_v34 = vpack.c.bf16 %v196_v28, %v196_v28  ;;  %v8787_v37 = vld [vmem:[%s11454_s1 + $0x268] sm:$0xff]  ;;  %v8794_v42 = vld [vmem:[%s11454_s1 + $0x2a0] sm:$0xff]  ;;  %v8785_v45 = vld [vmem:[%s11454_s1 + $0x258] sm:$0xff] }
  0x23   :  { %5334 = vmatpush.bf16.msrb.mxu1 %v8757_v38  ;;  %5303 = vmatmul.bf16.vlgmr.msra.gmra.mxu2 %v409_v47  ;;  %v8795_v38 = vld [vmem:[%s11454_s1 + $0x2a8] sm:$0xff]  ;;  %v8802_v43 = vld [vmem:[%s11454_s1 + $0x2e0] sm:$0xff]  ;;  %v8793_v46 = vld [vmem:[%s11454_s1 + $0x298] sm:$0xff] }
  0x24   :  { %5347 = vmatpush.bf16.msrb.mxu2 %v8765_v39  ;;  %5316 = vmatmul.bf16.vlgmr.msra.gmra.mxu3 %v410_v54  ;;  %v8803_v39 = vld [vmem:[%s11454_s1 + $0x2e8] sm:$0xff]  ;;  %v8801_v47 = vld [vmem:[%s11454_s1 + $0x2d8] sm:$0xff]  ;;  %v8776_v48 = vld [vmem:[%s11454_s1 + $0x210] sm:$0xff] }
  0x25   :  { %5360 = vmatpush.bf16.msrb.mxu3 %v8773_v44  ;;  %v8777_v44 = vld [vmem:[%s11454_s1 + $0x218] sm:$0xff]  ;;  %v8784_v49 = vld [vmem:[%s11454_s1 + $0x250] sm:$0xff]  ;;  %v8818_v21 = vld [vmem:[%s11454_s1 + $0x360] sm:$0xff] }
  0x26   :  { %5322 = vmatpush.bf16.msrb.mxu0 %v8748_v50  ;;  %v8792_v50 = vld [vmem:[%s11454_s1 + $0x290] sm:$0xff]  ;;  %v8837_v9 = vld [vmem:[%s11454_s1 + $0x3f8] sm:$0xff]  ;;  %v8826_v22 = vld [vmem:[%s11454_s1 + $0x3a0] sm:$0xff] }
  0x27   :  { %5335 = vmatpush.bf16.msrb.mxu1 %v8756_v52  ;;  %v8800_v51 = vld [vmem:[%s11454_s1 + $0x2d0] sm:$0xff]  ;;  %v8775_v52 = vld [vmem:[%s11454_s1 + $0x208] sm:$0xff]  ;;  %v8834_v23 = vld [vmem:[%s11454_s1 + $0x3e0] sm:$0xff] }
  0x28   :  { %5348 = vmatpush.bf16.msrb.mxu2 %v8764_v53  ;;  %v25_v53 = vld [vmem:[%s11453_s0 + $0x18] sm:$0xff]  ;;  %v44_v54 = vld [vmem:[%s11453_s0 + $0xae] sm:$0xff] }
  0x29   :  { %5361 = vmatpush.bf16.msrb.mxu3 %v8772_v55  ;;  %v8783_v55 = vld [vmem:[%s11454_s1 + $0x248] sm:$0xff]  ;;  %201 = vst [vmem:[#allocation1 + $0x20] ss:$4 sm:$0xff] %v25_v53  ;;  %v8812_v11 = vld [vmem:[%s11454_s1 + $0x330] sm:$0xff] }
  0x2a   :  { %5323 = vmatpush.bf16.msrb.mxu0 %v8747_v56  ;;  %v63_v56 = vld [vmem:[%s11453_s0 + $0x144] sm:$0xff]  ;;  %202 = vst [vmem:[#allocation1 + $0x21] ss:$4 sm:$0xff] %v44_v54  ;;  %v8808_v28 = vld [vmem:[%s11454_s1 + $0x310] sm:$0xff] }
  0x2b   :  { %5336 = vmatpush.bf16.msrb.mxu1 %v8755_v57  ;;  %v82_v57 = vld [vmem:[%s11453_s0 + $0x1da] sm:$0xff]  ;;  %203 = vst [vmem:[#allocation1 + $0x22] ss:$4 sm:$0xff] %v63_v56  ;;  %v8844_v56 = vld [vmem:[%s11454_s1 + $0x430] sm:$0xff] }
  0x2c   :  { %5349 = vmatpush.bf16.msrb.mxu2 %v8763_v58  ;;  %v8791_v58 = vld [vmem:[%s11454_s1 + $0x288] sm:$0xff]  ;;  %204 = vst [vmem:[#allocation1 + $0x23] ss:$4 sm:$0xff] %v82_v57  ;;  %v8852_v57 = vld [vmem:[%s11454_s1 + $0x470] sm:$0xff] }
  0x2d   :  { %5362 = vmatpush.bf16.msrb.mxu3 %v8771_v59  ;;  %v8799_v59 = vld [vmem:[%s11454_s1 + $0x2c8] sm:$0xff] }
  0x2e   :  { %5324 = vmatpush.bf16.msrb.mxu0 %v8746_v60  ;;  %v8774_v60 = vld [vmem:[%s11454_s1 + $0x200] sm:$0xff] }
  0x2f   :  { %5337 = vmatpush.bf16.msrb.mxu1 %v8754_v61  ;;  %v8782_v61 = vld [vmem:[%s11454_s1 + $0x240] sm:$0xff] }
  0x30   :  { %5350 = vmatpush.bf16.msrb.mxu2 %v8762_v62  ;;  %v205_v62 = vld.sshfl [vmem:[#allocation1] sm:$0xff pattern:$0x73625140] }
  0x31   :  { %5363 = vmatpush.bf16.msrb.mxu3 %v8770_v63  ;;  %v8790_v63 = vld [vmem:[%s11454_s1 + $0x280] sm:$0xff] }
  0x32   :  { %5325 = vmatpush.bf16.msrb.mxu0 %v8745_v0  ;;  %v8813_v0 = vld [vmem:[%s11454_s1 + $0x338] sm:$0xff] }
  0x33   :  { %5338 = vmatpush.bf16.msrb.mxu1 %v8753_v1  ;;  %v207_v1 = vld.sshfl [vmem:[#allocation1 + $0x10] sm:$0xff pattern:$0x73625140] }
  0x34   :  { %5351 = vmatpush.bf16.msrb.mxu2 %v8761_v2  ;;  %v8821_v2 = vld [vmem:[%s11454_s1 + $0x378] sm:$0xff]  ;;  %v417_v8 = vpack.c.bf16 %v207_v1, %v207_v1  ;;  %v8850_v1 = vld [vmem:[%s11454_s1 + $0x460] sm:$0xff] }
  0x35   :  { %5364 = vmatpush.bf16.msrb.mxu3 %v8769_v3  ;;  %v8829_v3 = vld [vmem:[%s11454_s1 + $0x3b8] sm:$0xff] }
  0x36   :  { %5326 = vmatpush.bf16.msrb.mxu0 %v8744_v4  ;;  %v206_v4 = vld.sshfl [vmem:[#allocation1 + $0x8] sm:$0xff pattern:$0x73625140] }
  0x37   :  { %5339 = vmatpush.bf16.msrb.mxu1 %v8752_v5  ;;  %v8798_v5 = vld [vmem:[%s11454_s1 + $0x2c0] sm:$0xff] }
  0x38   :  { %5352 = vmatpush.bf16.msrb.mxu2 %v8760_v6  ;;  %v415_v6 = vpack.c.bf16 %v205_v62, %v205_v62  ;;  %v8859_v62 = vld [vmem:[%s11454_s1 + $0x4a8] sm:$0xff] }
  0x39   :  { %5365 = vmatpush.bf16.msrb.mxu3 %v8768_v7  ;;  %v208_v7 = vld.sshfl [vmem:[#allocation1 + $0x18] sm:$0xff pattern:$0x73625140] }
  0x3a   :  { %5327 = vmatpush.bf16.msrb.mxu0 %v8743_v10  ;;  %v416_v10 = vpack.c.bf16 %v206_v4, %v206_v4  ;;  %v418_v12 = vpack.c.bf16 %v208_v7, %v208_v7  ;;  %v8841_v4 = vld [vmem:[%s11454_s1 + $0x418] sm:$0xff] }
  0x3b   :  { %5340 = vmatpush.bf16.msrb.mxu1 %v8751_v13  ;;  %v8820_v13 = vld [vmem:[%s11454_s1 + $0x370] sm:$0xff]  ;;  %v8865_v7 = vld [vmem:[%s11454_s1 + $0x4d8] sm:$0xff] }
  0x3c   :  { %5353 = vmatpush.bf16.msrb.mxu2 %v8759_v14  ;;  %v8828_v14 = vld [vmem:[%s11454_s1 + $0x3b0] sm:$0xff] }
  0x3d   :  { %5366 = vmatpush.bf16.msrb.mxu3 %v8767_v15  ;;  %v8836_v15 = vld [vmem:[%s11454_s1 + $0x3f0] sm:$0xff] }
  0x3e   :  { %5328 = vmatpush.bf16.msrb.mxu0 %v8742_v16  ;;  %v8811_v16 = vld [vmem:[%s11454_s1 + $0x328] sm:$0xff] }
  0x3f   :  { %5341 = vmatpush.bf16.msrb.mxu1 %v8750_v17  ;;  %v8819_v17 = vld [vmem:[%s11454_s1 + $0x368] sm:$0xff] }
  0x40   :  { %5354 = vmatpush.bf16.msrb.mxu2 %v8758_v18  ;;  %v8827_v18 = vld [vmem:[%s11454_s1 + $0x3a8] sm:$0xff] }
  0x41   :  { %5367 = vmatpush.bf16.msrb.mxu3 %v8766_v25  ;;  %5329 = vmatmul.bf16.vlgmr.msrb.gmra.mxu0 %v411_v29  ;;  %v8817_v25 = vld [vmem:[%s11454_s1 + $0x358] sm:$0xff]  ;;  %v8816_v29 = vld [vmem:[%s11454_s1 + $0x350] sm:$0xff] }
  0x42   :  { %5373 = vmatpush.bf16.msra.mxu0 %v8781_v19  ;;  %5342 = vmatmul.bf16.vlgmr.msrb.gmra.mxu1 %v412_v30  ;;  %v8835_v19 = vld [vmem:[%s11454_s1 + $0x3e8] sm:$0xff]  ;;  %v8824_v30 = vld [vmem:[%s11454_s1 + $0x390] sm:$0xff] }
  0x43   :  { %5386 = vmatpush.bf16.msra.mxu1 %v8789_v20  ;;  %5355 = vmatmul.bf16.vlgmr.msrb.gmra.mxu2 %v413_v27  ;;  %v8810_v20 = vld [vmem:[%s11454_s1 + $0x320] sm:$0xff]  ;;  %v8833_v27 = vld [vmem:[%s11454_s1 + $0x3d8] sm:$0xff] }
  0x44   :  { %5399 = vmatpush.bf16.msra.mxu2 %v8797_v24  ;;  %5368 = vmatmul.bf16.vlgmr.msrb.gmra.mxu3 %v414_v34  ;;  %v8809_v24 = vld [vmem:[%s11454_s1 + $0x318] sm:$0xff] }
  0x45   :  { %5412 = vmatpush.bf16.msra.mxu3 %v8805_v26  ;;  %v8825_v26 = vld [vmem:[%s11454_s1 + $0x398] sm:$0xff] }
  0x46   :  { %5374 = vmatpush.bf16.msra.mxu0 %v8780_v31  ;;  %v8832_v31 = vld [vmem:[%s11454_s1 + $0x3d0] sm:$0xff] }
  0x47   :  { %5387 = vmatpush.bf16.msra.mxu1 %v8788_v32  ;;  %v8807_v32 = vld [vmem:[%s11454_s1 + $0x308] sm:$0xff]  ;;  %v45_v34 = vld [vmem:[%s11453_s0 + $0xb6] sm:$0xff] }
  0x48   :  { %5400 = vmatpush.bf16.msra.mxu2 %v8796_v33  ;;  %v26_v33 = vld [vmem:[%s11453_s0 + $0x20] sm:$0xff]  ;;  %214 = vst [vmem:[#allocation1 + $0x1] ss:$4 sm:$0xff] %v45_v34 }
  0x49   :  { %5413 = vmatpush.bf16.msra.mxu3 %v8804_v35  ;;  %v8815_v35 = vld [vmem:[%s11454_s1 + $0x348] sm:$0xff]  ;;  %213 = vst [vmem:[#allocation1] ss:$4 sm:$0xff] %v26_v33  ;;  %v8901_v33 = vld [vmem:[%s11454_s1 + $0x5f8] sm:$0xff] }
  0x4a   :  { %5375 = vmatpush.bf16.msra.mxu0 %v8779_v36  ;;  %v64_v36 = vld [vmem:[%s11453_s0 + $0x14c] sm:$0xff] }
  0x4b   :  { %5388 = vmatpush.bf16.msra.mxu1 %v8787_v37  ;;  %v8823_v37 = vld [vmem:[%s11454_s1 + $0x388] sm:$0xff]  ;;  %215 = vst [vmem:[#allocation1 + $0x2] ss:$4 sm:$0xff] %v64_v36  ;;  %v8876_v36 = vld [vmem:[%s11454_s1 + $0x530] sm:$0xff] }
  0x4c   :  { %5401 = vmatpush.bf16.msra.mxu2 %v8795_v38  ;;  %v83_v38 = vld [vmem:[%s11453_s0 + $0x1e2] sm:$0xff] }
  0x4d   :  { %5414 = vmatpush.bf16.msra.mxu3 %v8803_v39  ;;  %v8831_v39 = vld [vmem:[%s11454_s1 + $0x3c8] sm:$0xff]  ;;  %216 = vst [vmem:[#allocation1 + $0x3] ss:$4 sm:$0xff] %v83_v38  ;;  %v8892_v38 = vld [vmem:[%s11454_s1 + $0x5b0] sm:$0xff] }
  0x4e   :  { %5376 = vmatpush.bf16.msra.mxu0 %v8778_v40  ;;  %v8806_v40 = vld [vmem:[%s11454_s1 + $0x300] sm:$0xff] }
  0x4f   :  { %5389 = vmatpush.bf16.msra.mxu1 %v8786_v41  ;;  %v8814_v41 = vld [vmem:[%s11454_s1 + $0x340] sm:$0xff] }
  0x50   :  { %5402 = vmatpush.bf16.msra.mxu2 %v8794_v42  ;;  %v8822_v42 = vld [vmem:[%s11454_s1 + $0x380] sm:$0xff] }
  0x51   :  { %5415 = vmatpush.bf16.msra.mxu3 %v8802_v43  ;;  %v8845_v43 = vld [vmem:[%s11454_s1 + $0x438] sm:$0xff] }
  0x52   :  { %5377 = vmatpush.bf16.msra.mxu0 %v8777_v44  ;;  %v8853_v44 = vld [vmem:[%s11454_s1 + $0x478] sm:$0xff] }
  0x53   :  { %5390 = vmatpush.bf16.msra.mxu1 %v8785_v45  ;;  %v209_v45 = vld.sshfl [vmem:[#allocation1 + $0x20] sm:$0xff pattern:$0x73625140] }
  0x54   :  { %5403 = vmatpush.bf16.msra.mxu2 %v8793_v46  ;;  %v211_v46 = vld.sshfl [vmem:[#allocation1 + $0x30] sm:$0xff pattern:$0x73625140] }
  0x55   :  { %5416 = vmatpush.bf16.msra.mxu3 %v8801_v47  ;;  %v210_v47 = vld.sshfl [vmem:[#allocation1 + $0x28] sm:$0xff pattern:$0x73625140]  ;;  %v421_v53 = vpack.c.bf16 %v211_v46, %v211_v46 }
  0x56   :  { %5378 = vmatpush.bf16.msra.mxu0 %v8776_v48  ;;  %v8861_v48 = vld [vmem:[%s11454_s1 + $0x4b8] sm:$0xff]  ;;  %v420_v54 = vpack.c.bf16 %v210_v47, %v210_v47  ;;  %v8882_v47 = vld [vmem:[%s11454_s1 + $0x560] sm:$0xff] }
  0x57   :  { %5391 = vmatpush.bf16.msra.mxu1 %v8784_v49  ;;  %v8830_v49 = vld [vmem:[%s11454_s1 + $0x3c0] sm:$0xff] }
  0x58   :  { %5404 = vmatpush.bf16.msra.mxu2 %v8792_v50  ;;  %v212_v50 = vld.sshfl [vmem:[#allocation1 + $0x38] sm:$0xff pattern:$0x73625140] }
  0x59   :  { %5417 = vmatpush.bf16.msra.mxu3 %v8800_v51  ;;  %v419_v51 = vpack.c.bf16 %v209_v45, %v209_v45  ;;  %v8874_v45 = vld [vmem:[%s11454_s1 + $0x520] sm:$0xff] }
  0x5a   :  { %5379 = vmatpush.bf16.msra.mxu0 %v8775_v52  ;;  %v8869_v52 = vld [vmem:[%s11454_s1 + $0x4f8] sm:$0xff] }
  0x5b   :  { %5392 = vmatpush.bf16.msra.mxu1 %v8783_v55  ;;  %v422_v55 = vpack.c.bf16 %v212_v50, %v212_v50 }
  0x5c   :  { %5405 = vmatpush.bf16.msra.mxu2 %v8791_v58  ;;  %v8860_v58 = vld [vmem:[%s11454_s1 + $0x4b0] sm:$0xff] }
  0x5d   :  { %5418 = vmatpush.bf16.msra.mxu3 %v8799_v59  ;;  %v8868_v59 = vld [vmem:[%s11454_s1 + $0x4f0] sm:$0xff] }
  0x5e   :  { %5380 = vmatpush.bf16.msra.mxu0 %v8774_v60  ;;  %v8843_v60 = vld [vmem:[%s11454_s1 + $0x428] sm:$0xff] }
  0x5f   :  { %5393 = vmatpush.bf16.msra.mxu1 %v8782_v61  ;;  %v8851_v61 = vld [vmem:[%s11454_s1 + $0x468] sm:$0xff] }
  0x60   :  { %5406 = vmatpush.bf16.msra.mxu2 %v8790_v63  ;;  %v8867_v63 = vld [vmem:[%s11454_s1 + $0x4e8] sm:$0xff] }
  0x61   :  { %5419 = vmatpush.bf16.msra.mxu3 %v8798_v5  ;;  %5381 = vmatmul.bf16.vlgmr.msra.gmra.mxu0 %v415_v6  ;;  %v8849_v5 = vld [vmem:[%s11454_s1 + $0x458] sm:$0xff] }
  0x62   :  { %5425 = vmatpush.bf16.msrb.mxu0 %v8813_v0  ;;  %5394 = vmatmul.bf16.vlgmr.msra.gmra.mxu1 %v416_v10  ;;  %v8842_v0 = vld [vmem:[%s11454_s1 + $0x420] sm:$0xff]  ;;  %v8857_v6 = vld [vmem:[%s11454_s1 + $0x498] sm:$0xff]  ;;  %v8856_v10 = vld [vmem:[%s11454_s1 + $0x490] sm:$0xff] }
  0x63   :  { %5438 = vmatpush.bf16.msrb.mxu1 %v8821_v2  ;;  %5407 = vmatmul.bf16.vlgmr.msra.gmra.mxu2 %v417_v8  ;;  %v8858_v2 = vld [vmem:[%s11454_s1 + $0x4a0] sm:$0xff]  ;;  %v8840_v8 = vld [vmem:[%s11454_s1 + $0x410] sm:$0xff] }
  0x64   :  { %5451 = vmatpush.bf16.msrb.mxu2 %v8829_v3  ;;  %5420 = vmatmul.bf16.vlgmr.msra.gmra.mxu3 %v418_v12  ;;  %v8866_v3 = vld [vmem:[%s11454_s1 + $0x4e0] sm:$0xff]  ;;  %v8839_v12 = vld [vmem:[%s11454_s1 + $0x408] sm:$0xff] }
  0x65   :  { %5464 = vmatpush.bf16.msrb.mxu3 %v8837_v9  ;;  %v8848_v9 = vld [vmem:[%s11454_s1 + $0x450] sm:$0xff] }
  0x66   :  { %5426 = vmatpush.bf16.msrb.mxu0 %v8812_v11  ;;  %v8864_v11 = vld [vmem:[%s11454_s1 + $0x4d0] sm:$0xff] }
  0x67   :  { %5439 = vmatpush.bf16.msrb.mxu1 %v8820_v13  ;;  %v27_v13 = vld [vmem:[%s11453_s0 + $0x28] sm:$0xff] }
  0x68   :  { %5452 = vmatpush.bf16.msrb.mxu2 %v8828_v14  ;;  %v46_v14 = vld [vmem:[%s11453_s0 + $0xbe] sm:$0xff]  ;;  %217 = vst [vmem:[#allocation1 + $0x20] ss:$4 sm:$0xff] %v27_v13 }
  0x69   :  { %5465 = vmatpush.bf16.msrb.mxu3 %v8836_v15  ;;  %v65_v15 = vld [vmem:[%s11453_s0 + $0x154] sm:$0xff]  ;;  %218 = vst [vmem:[#allocation1 + $0x21] ss:$4 sm:$0xff] %v46_v14  ;;  %v8878_v13 = vld [vmem:[%s11454_s1 + $0x540] sm:$0xff] }
  0x6a   :  { %5427 = vmatpush.bf16.msrb.mxu0 %v8811_v16  ;;  %v8847_v16 = vld [vmem:[%s11454_s1 + $0x448] sm:$0xff]  ;;  %219 = vst [vmem:[#allocation1 + $0x22] ss:$4 sm:$0xff] %v65_v15  ;;  %v8886_v14 = vld [vmem:[%s11454_s1 + $0x580] sm:$0xff] }
  0x6b   :  { %5440 = vmatpush.bf16.msrb.mxu1 %v8819_v17  ;;  %v8855_v17 = vld [vmem:[%s11454_s1 + $0x488] sm:$0xff] }
  0x6c   :  { %5453 = vmatpush.bf16.msrb.mxu2 %v8827_v18  ;;  %v8863_v18 = vld [vmem:[%s11454_s1 + $0x4c8] sm:$0xff] }
  0x6d   :  { %5466 = vmatpush.bf16.msrb.mxu3 %v8835_v19  ;;  %v84_v19 = vld [vmem:[%s11453_s0 + $0x1ea] sm:$0xff] }
  0x6e   :  { %5428 = vmatpush.bf16.msrb.mxu0 %v8810_v20  ;;  %v8838_v20 = vld [vmem:[%s11454_s1 + $0x400] sm:$0xff]  ;;  %220 = vst [vmem:[#allocation1 + $0x23] ss:$4 sm:$0xff] %v84_v19 }
  0x6f   :  { %5441 = vmatpush.bf16.msrb.mxu1 %v8818_v21  ;;  %v8846_v21 = vld [vmem:[%s11454_s1 + $0x440] sm:$0xff] }
  0x70   :  { %5454 = vmatpush.bf16.msrb.mxu2 %v8826_v22  ;;  %v8854_v22 = vld [vmem:[%s11454_s1 + $0x480] sm:$0xff] }
  0x71   :  { %5467 = vmatpush.bf16.msrb.mxu3 %v8834_v23  ;;  %v221_v23 = vld.sshfl [vmem:[#allocation1] sm:$0xff pattern:$0x73625140] }
  0x72   :  { %5429 = vmatpush.bf16.msrb.mxu0 %v8809_v24  ;;  %v223_v24 = vld.sshfl [vmem:[#allocation1 + $0x10] sm:$0xff pattern:$0x73625140] }
  0x73   :  { %5442 = vmatpush.bf16.msrb.mxu1 %v8817_v25  ;;  %v8877_v25 = vld [vmem:[%s11454_s1 + $0x538] sm:$0xff] }
  0x74   :  { %5455 = vmatpush.bf16.msrb.mxu2 %v8825_v26  ;;  %v8885_v26 = vld [vmem:[%s11454_s1 + $0x578] sm:$0xff] }
  0x75   :  { %5468 = vmatpush.bf16.msrb.mxu3 %v8833_v27  ;;  %v222_v27 = vld.sshfl [vmem:[#allocation1 + $0x8] sm:$0xff pattern:$0x73625140]  ;;  %v225_v15 = vld.sshfl [vmem:[#allocation1 + $0x20] sm:$0xff pattern:$0x73625140] }
  0x76   :  { %5430 = vmatpush.bf16.msrb.mxu0 %v8808_v28  ;;  %v8893_v28 = vld [vmem:[%s11454_s1 + $0x5b8] sm:$0xff]  ;;  %v424_v34 = vpack.c.bf16 %v222_v27, %v222_v27  ;;  %v226_v19 = vld.sshfl [vmem:[#allocation1 + $0x28] sm:$0xff pattern:$0x73625140] }
  0x77   :  { %5443 = vmatpush.bf16.msrb.mxu1 %v8816_v29  ;;  %v8862_v29 = vld [vmem:[%s11454_s1 + $0x4c0] sm:$0xff]  ;;  %v428_v27 = vpack.c.bf16 %v226_v19, %v226_v19 }
  0x78   :  { %5456 = vmatpush.bf16.msrb.mxu2 %v8824_v30  ;;  %v224_v30 = vld.sshfl [vmem:[#allocation1 + $0x18] sm:$0xff pattern:$0x73625140] }
  0x79   :  { %5469 = vmatpush.bf16.msrb.mxu3 %v8832_v31  ;;  %v423_v31 = vpack.c.bf16 %v221_v23, %v221_v23  ;;  %v228_v23 = vld.sshfl [vmem:[#allocation1 + $0x38] sm:$0xff pattern:$0x73625140] }
  0x7a   :  { %5431 = vmatpush.bf16.msrb.mxu0 %v8807_v32  ;;  %v425_v32 = vpack.c.bf16 %v223_v24, %v223_v24  ;;  %v427_v24 = vpack.c.bf16 %v225_v15, %v225_v15 }
  0x7b   :  { %5444 = vmatpush.bf16.msrb.mxu1 %v8815_v35  ;;  %v426_v35 = vpack.c.bf16 %v224_v30, %v224_v30  ;;  %v8916_v30 = vld [vmem:[%s11454_s1 + $0x670] sm:$0xff] }
  0x7c   :  { %5457 = vmatpush.bf16.msrb.mxu2 %v8823_v37  ;;  %v8884_v37 = vld [vmem:[%s11454_s1 + $0x570] sm:$0xff] }
  0x7d   :  { %5470 = vmatpush.bf16.msrb.mxu3 %v8831_v39  ;;  %v8900_v39 = vld [vmem:[%s11454_s1 + $0x5f0] sm:$0xff] }
  0x7e   :  { %5432 = vmatpush.bf16.msrb.mxu0 %v8806_v40  ;;  %v8875_v40 = vld [vmem:[%s11454_s1 + $0x528] sm:$0xff] }
  0x7f   :  { %5445 = vmatpush.bf16.msrb.mxu1 %v8814_v41  ;;  %v8883_v41 = vld [vmem:[%s11454_s1 + $0x568] sm:$0xff] }
  0x80   :  { %5458 = vmatpush.bf16.msrb.mxu2 %v8822_v42  ;;  %v8891_v42 = vld [vmem:[%s11454_s1 + $0x5a8] sm:$0xff] }
  0x81   :  { %5471 = vmatpush.bf16.msrb.mxu3 %v8830_v49  ;;  %5433 = vmatmul.bf16.vlgmr.msrb.gmra.mxu0 %v419_v51  ;;  %v8898_v51 = vld [vmem:[%s11454_s1 + $0x5e0] sm:$0xff] }
  0x82   :  { %5477 = vmatpush.bf16.msra.mxu0 %v8845_v43  ;;  %5446 = vmatmul.bf16.vlgmr.msrb.gmra.mxu1 %v420_v54  ;;  %v9312_v43 = vld [vmem:[%s11455_s2] ss:$0 sm:$0xff]  ;;  %v8881_v54 = vld [vmem:[%s11454_s1 + $0x558] sm:$0xff] }
  0x83   :  { %5490 = vmatpush.bf16.msra.mxu1 %v8853_v44  ;;  %5459 = vmatmul.bf16.vlgmr.msrb.gmra.mxu2 %v421_v53  ;;  %v8899_v44 = vld [vmem:[%s11454_s1 + $0x5e8] sm:$0xff]  ;;  %v8873_v53 = vld [vmem:[%s11454_s1 + $0x518] sm:$0xff] }
  0x84   :  { %5503 = vmatpush.bf16.msra.mxu2 %v8861_v48  ;;  %5472 = vmatmul.bf16.vlgmr.msrb.gmra.mxu3 %v422_v55  ;;  %v8890_v48 = vld [vmem:[%s11454_s1 + $0x5a0] sm:$0xff]  ;;  %v8889_v55 = vld [vmem:[%s11454_s1 + $0x598] sm:$0xff] }
  0x85   :  { %5516 = vmatpush.bf16.msra.mxu3 %v8869_v52 }
  0x86   :  { %5478 = vmatpush.bf16.msra.mxu0 %v8844_v56  ;;  %v8897_v56 = vld [vmem:[%s11454_s1 + $0x5d8] sm:$0xff] }
  0x87   :  { %5491 = vmatpush.bf16.msra.mxu1 %v8852_v57 }
  0x88   :  { %5504 = vmatpush.bf16.msra.mxu2 %v8860_v58  ;;  %v8872_v58 = vld [vmem:[%s11454_s1 + $0x510] sm:$0xff] }
  0x89   :  { %5517 = vmatpush.bf16.msra.mxu3 %v8868_v59 }
  0x8a   :  { %5479 = vmatpush.bf16.msra.mxu0 %v8843_v60 }
  0x8b   :  { %5492 = vmatpush.bf16.msra.mxu1 %v8851_v61  ;;  %v8880_v61 = vld [vmem:[%s11454_s1 + $0x550] sm:$0xff] }
  0x8c   :  { %5505 = vmatpush.bf16.msra.mxu2 %v8859_v62  ;;  %v8888_v62 = vld [vmem:[%s11454_s1 + $0x590] sm:$0xff] }
  0x8d   :  { %5518 = vmatpush.bf16.msra.mxu3 %v8867_v63 }
  0x8e   :  { %5480 = vmatpush.bf16.msra.mxu0 %v8842_v0 }
  0x8f   :  { %5493 = vmatpush.bf16.msra.mxu1 %v8850_v1  ;;  %v8896_v1 = vld [vmem:[%s11454_s1 + $0x5d0] sm:$0xff] }
  0x90   :  { %5506 = vmatpush.bf16.msra.mxu2 %v8858_v2  ;;  %v8871_v2 = vld [vmem:[%s11454_s1 + $0x508] sm:$0xff] }
  0x91   :  { %5519 = vmatpush.bf16.msra.mxu3 %v8866_v3 }
  0x92   :  { %5481 = vmatpush.bf16.msra.mxu0 %v8841_v4  ;;  %v28_v4 = vld [vmem:[%s11453_s0 + $0x30] sm:$0xff] }
  0x93   :  { %5494 = vmatpush.bf16.msra.mxu1 %v8849_v5  ;;  %v47_v5 = vld [vmem:[%s11453_s0 + $0xc6] sm:$0xff]  ;;  %229 = vst [vmem:[#allocation1] ss:$4 sm:$0xff] %v28_v4 }
  0x94   :  { %5507 = vmatpush.bf16.msra.mxu2 %v8857_v6  ;;  %v66_v6 = vld [vmem:[%s11453_s0 + $0x15c] sm:$0xff]  ;;  %230 = vst [vmem:[#allocation1 + $0x1] ss:$4 sm:$0xff] %v47_v5 }
  0x95   :  { %5520 = vmatpush.bf16.msra.mxu3 %v8865_v7  ;;  %v8879_v7 = vld [vmem:[%s11454_s1 + $0x548] sm:$0xff]  ;;  %231 = vst [vmem:[#allocation1 + $0x2] ss:$4 sm:$0xff] %v66_v6  ;;  %v8902_v4 = vld [vmem:[%s11454_s1 + $0x600] sm:$0xff] }
  0x96   :  { %5482 = vmatpush.bf16.msra.mxu0 %v8840_v8  ;;  %v8887_v8 = vld [vmem:[%s11454_s1 + $0x588] sm:$0xff]  ;;  %v8910_v5 = vld [vmem:[%s11454_s1 + $0x640] sm:$0xff] }
  0x97   :  { %5495 = vmatpush.bf16.msra.mxu1 %v8848_v9  ;;  %v85_v9 = vld [vmem:[%s11453_s0 + $0x1f2] sm:$0xff]  ;;  %v8918_v6 = vld [vmem:[%s11454_s1 + $0x680] sm:$0xff] }
  0x98   :  { %5508 = vmatpush.bf16.msra.mxu2 %v8856_v10  ;;  %v8895_v10 = vld [vmem:[%s11454_s1 + $0x5c8] sm:$0xff]  ;;  %232 = vst [vmem:[#allocation1 + $0x3] ss:$4 sm:$0xff] %v85_v9 }
  0x99   :  { %5521 = vmatpush.bf16.msra.mxu3 %v8864_v11 }
  0x9a   :  { %5483 = vmatpush.bf16.msra.mxu0 %v8839_v12  ;;  %v8870_v12 = vld [vmem:[%s11454_s1 + $0x500] sm:$0xff] }
  0x9b   :  { %5496 = vmatpush.bf16.msra.mxu1 %v8847_v16  ;;  %v227_v16 = vld.sshfl [vmem:[#allocation1 + $0x30] sm:$0xff pattern:$0x73625140] }
  0x9c   :  { %5509 = vmatpush.bf16.msra.mxu2 %v8855_v17  ;;  %v8909_v17 = vld [vmem:[%s11454_s1 + $0x638] sm:$0xff] }
  0x9d   :  { %5522 = vmatpush.bf16.msra.mxu3 %v8863_v18  ;;  %v8917_v18 = vld [vmem:[%s11454_s1 + $0x678] sm:$0xff] }
  0x9e   :  { %5484 = vmatpush.bf16.msra.mxu0 %v8838_v20  ;;  %v5278_v46 = vpop.f32.mrf.mxu0 }
  0x9f   :  { %5497 = vmatpush.bf16.msra.mxu1 %v8846_v21  ;;  %v5279_v49 = vadd.f32 %v9312_v43, %v5278_v46  ;;  %v5291_v50 = vpop.f32.mrf.mxu1  ;;  %v8925_v21 = vld [vmem:[%s11454_s1 + $0x6b8] sm:$0xff]  ;;  %v8930_v43 = vld [vmem:[%s11454_s1 + $0x6e0] sm:$0xff] }
  0xa0   :  { %5510 = vmatpush.bf16.msra.mxu2 %v8854_v22  ;;  %v8894_v22 = vld [vmem:[%s11454_s1 + $0x5c0] sm:$0xff]  ;;  %v8913_v46 = vld [vmem:[%s11454_s1 + $0x658] sm:$0xff] }
  0xa1   :  { %5523 = vmatpush.bf16.msra.mxu3 %v8862_v29  ;;  %5485 = vmatmul.bf16.vlgmr.msra.gmra.mxu0 %v423_v31  ;;  %v5292_v52 = vadd.f32 %v5291_v50, %v5279_v49  ;;  %v8908_v29 = vld [vmem:[%s11454_s1 + $0x630] sm:$0xff]  ;;  %v8929_v49 = vld [vmem:[%s11454_s1 + $0x6d8] sm:$0xff] }
  0xa2   :  { %5529 = vmatpush.bf16.msrb.mxu0 %v8877_v25  ;;  %5498 = vmatmul.bf16.vlgmr.msra.gmra.mxu1 %v424_v34  ;;  %v429_v25 = vpack.c.bf16 %v227_v16, %v227_v16  ;;  %v8924_v31 = vld [vmem:[%s11454_s1 + $0x6b0] sm:$0xff]  ;;  %v8915_v34 = vld [vmem:[%s11454_s1 + $0x668] sm:$0xff]  ;;  %v240_v15 = vld.sshfl [vmem:[#allocation1 + $0x18] sm:$0xff pattern:$0x73625140] }
  0xa3   :  { %5542 = vmatpush.bf16.msrb.mxu1 %v8885_v26  ;;  %5511 = vmatmul.bf16.vlgmr.msra.gmra.mxu2 %v425_v32  ;;  %v8933_v26 = vld [vmem:[%s11454_s1 + $0x6f8] sm:$0xff]  ;;  %v8932_v32 = vld [vmem:[%s11454_s1 + $0x6f0] sm:$0xff] }
  0xa4   :  { %5555 = vmatpush.bf16.msrb.mxu2 %v8893_v28  ;;  %5524 = vmatmul.bf16.vlgmr.msra.gmra.mxu3 %v426_v35  ;;  %v430_v28 = vpack.c.bf16 %v228_v23, %v228_v23  ;;  %v8923_v35 = vld [vmem:[%s11454_s1 + $0x6a8] sm:$0xff]  ;;  %v8956_v23 = vld [vmem:[%s11454_s1 + $0x7b0] sm:$0xff] }
  0xa5   :  { %5568 = vmatpush.bf16.msrb.mxu3 %v8901_v33  ;;  %v8907_v33 = vld [vmem:[%s11454_s1 + $0x628] sm:$0xff] }
  0xa6   :  { %5530 = vmatpush.bf16.msrb.mxu0 %v8876_v36  ;;  %v5304_v57 = vpop.f32.mrf.mxu2  ;;  %v5280_v60 = vpop.f32.mrf.mxu0  ;;  %v8931_v36 = vld [vmem:[%s11454_s1 + $0x6e8] sm:$0xff] }
  0xa7   :  { %5543 = vmatpush.bf16.msrb.mxu1 %v8884_v37  ;;  %v5305_v59 = vadd.f32 %v5304_v57, %v5292_v52  ;;  %v5317_v63 = vpop.f32.mrf.mxu3  ;;  %v5293_v0 = vpop.f32.mrf.mxu1  ;;  %v8906_v37 = vld [vmem:[%s11454_s1 + $0x620] sm:$0xff]  ;;  %v8912_v52 = vld [vmem:[%s11454_s1 + $0x650] sm:$0xff]  ;;  %v29_v60 = vld [vmem:[%s11453_s0 + $0x38] sm:$0xff] }
  0xa8   :  { %5556 = vmatpush.bf16.msrb.mxu2 %v8892_v38  ;;  %v8914_v38 = vld [vmem:[%s11454_s1 + $0x660] sm:$0xff]  ;;  %v8919_v0 = vld [vmem:[%s11454_s1 + $0x688] sm:$0xff]  ;;  %233 = vst [vmem:[#allocation1 + $0x20] ss:$4 sm:$0xff] %v29_v60 }
  0xa9   :  { %5569 = vmatpush.bf16.msrb.mxu3 %v8900_v39  ;;  %v10007_v3 = vadd.f32 %v5317_v63, %v5305_v59  ;;  %v8922_v39 = vld [vmem:[%s11454_s1 + $0x6a0] sm:$0xff]  ;;  %v8903_v59 = vld [vmem:[%s11454_s1 + $0x608] sm:$0xff] }
  0xaa   :  { %5531 = vmatpush.bf16.msrb.mxu0 %v8875_v40  ;;  %v8911_v63 = vld [vmem:[%s11454_s1 + $0x648] sm:$0xff]  ;;  %v8934_v60 = vld [vmem:[%s11454_s1 + $0x700] sm:$0xff] }
  0xab   :  { %5544 = vmatpush.bf16.msrb.mxu1 %v8883_v41 }
  0xac   :  { %5557 = vmatpush.bf16.msrb.mxu2 %v8891_v42 }
  0xad   :  { %5570 = vmatpush.bf16.msrb.mxu3 %v8899_v44  ;;  %v8905_v44 = vld [vmem:[%s11454_s1 + $0x618] sm:$0xff] }
  0xae   :  { %5532 = vmatpush.bf16.msrb.mxu0 %v8874_v45  ;;  %v5306_v11 = vpop.f32.mrf.mxu2 }
  0xaf   :  { %5545 = vmatpush.bf16.msrb.mxu1 %v8882_v47  ;;  %v5319_v20 = vpop.f32.mrf.mxu3  ;;  %v8921_v47 = vld [vmem:[%s11454_s1 + $0x698] sm:$0xff] }
  0xb0   :  { %5558 = vmatpush.bf16.msrb.mxu2 %v8890_v48  ;;  %v8949_v11 = vld [vmem:[%s11454_s1 + $0x778] sm:$0xff]  ;;  %v434_v20 = vpack.c.bf16 %v240_v15, %v240_v15  ;;  %v8988_v15 = vld [vmem:[%s11454_s1 + $0x8b0] sm:$0xff] }
  0xb1   :  { %5571 = vmatpush.bf16.msrb.mxu3 %v8898_v51  ;;  %v8904_v51 = vld [vmem:[%s11454_s1 + $0x610] sm:$0xff] }
  0xb2   :  { %5533 = vmatpush.bf16.msrb.mxu0 %v8873_v53  ;;  %v8920_v53 = vld [vmem:[%s11454_s1 + $0x690] sm:$0xff] }
  0xb3   :  { %5546 = vmatpush.bf16.msrb.mxu1 %v8881_v54 }
  0xb4   :  { %5559 = vmatpush.bf16.msrb.mxu2 %v8889_v55 }
  0xb5   :  { %5572 = vmatpush.bf16.msrb.mxu3 %v8897_v56 }
  0xb6   :  { %5534 = vmatpush.bf16.msrb.mxu0 %v8872_v58  ;;  %v8928_v58 = vld [vmem:[%s11454_s1 + $0x6d0] sm:$0xff] }
  0xb7   :  { %5547 = vmatpush.bf16.msrb.mxu1 %v8880_v61  ;;  %v48_v61 = vld [vmem:[%s11453_s0 + $0xce] sm:$0xff] }
  0xb8   :  { %5560 = vmatpush.bf16.msrb.mxu2 %v8888_v62  ;;  %v67_v62 = vld [vmem:[%s11453_s0 + $0x164] sm:$0xff]  ;;  %234 = vst [vmem:[#allocation1 + $0x21] ss:$4 sm:$0xff] %v48_v61 }
  0xb9   :  { %5573 = vmatpush.bf16.msrb.mxu3 %v8896_v1  ;;  %235 = vst [vmem:[#allocation1 + $0x22] ss:$4 sm:$0xff] %v67_v62  ;;  %v8942_v61 = vld [vmem:[%s11454_s1 + $0x740] sm:$0xff] }
  0xba   :  { %5535 = vmatpush.bf16.msrb.mxu0 %v8871_v2  ;;  %v86_v2 = vld [vmem:[%s11453_s0 + $0x1fa] sm:$0xff] }
  0xbb   :  { %5548 = vmatpush.bf16.msrb.mxu1 %v8879_v7  ;;  %236 = vst [vmem:[#allocation1 + $0x23] ss:$4 sm:$0xff] %v86_v2  ;;  %v237_v7 = vld.sshfl [vmem:[#allocation1] sm:$0xff pattern:$0x73625140]  ;;  %v8973_v2 = vld [vmem:[%s11454_s1 + $0x838] sm:$0xff] }
  0xbc   :  { %5561 = vmatpush.bf16.msrb.mxu2 %v8887_v8  ;;  %v239_v8 = vld.sshfl [vmem:[#allocation1 + $0x10] sm:$0xff pattern:$0x73625140]  ;;  %v431_v16 = vpack.c.bf16 %v237_v7, %v237_v7  ;;  %v8950_v62 = vld [vmem:[%s11454_s1 + $0x780] sm:$0xff] }
  0xbd   :  { %5574 = vmatpush.bf16.msrb.mxu3 %v8895_v10  ;;  %v8941_v10 = vld [vmem:[%s11454_s1 + $0x738] sm:$0xff] }
  0xbe   :  { %5536 = vmatpush.bf16.msrb.mxu0 %v8870_v12  ;;  %v5330_v40 = vpop.f32.mrf.mxu0  ;;  %v238_v12 = vld.sshfl [vmem:[#allocation1 + $0x8] sm:$0xff pattern:$0x73625140] }
  0xbf   :  { %5549 = vmatpush.bf16.msrb.mxu1 %v8878_v13  ;;  %v5343_v41 = vpop.f32.mrf.mxu1  ;;  %v5331_v42 = vadd.f32 %v5330_v40, %v10007_v3  ;;  %v8927_v3 = vld [vmem:[%s11454_s1 + $0x6c8] sm:$0xff]  ;;  %v8957_v13 = vld [vmem:[%s11454_s1 + $0x7b8] sm:$0xff]  ;;  %v432_v19 = vpack.c.bf16 %v238_v12, %v238_v12 }
  0xc0   :  { %5562 = vmatpush.bf16.msrb.mxu2 %v8886_v14  ;;  %v8926_v14 = vld [vmem:[%s11454_s1 + $0x6c0] sm:$0xff] }
  0xc1   :  { %5575 = vmatpush.bf16.msrb.mxu3 %v8894_v22  ;;  %5537 = vmatmul.bf16.vlgmr.msrb.gmra.mxu0 %v427_v24  ;;  %v5344_v45 = vadd.f32 %v5343_v41, %v5331_v42  ;;  %v8948_v22 = vld [vmem:[%s11454_s1 + $0x770] sm:$0xff]  ;;  %v8961_v42 = vld [vmem:[%s11454_s1 + $0x7d8] sm:$0xff] }
  0xc2   :  { %5581 = vmatpush.bf16.msra.mxu0 %v8909_v17  ;;  %5550 = vmatmul.bf16.vlgmr.msrb.gmra.mxu1 %v428_v27  ;;  %v433_v17 = vpack.c.bf16 %v239_v8, %v239_v8  ;;  %v8964_v24 = vld [vmem:[%s11454_s1 + $0x7f0] sm:$0xff]  ;;  %v8955_v27 = vld [vmem:[%s11454_s1 + $0x7a8] sm:$0xff]  ;;  %v244_v7 = vld.sshfl [vmem:[#allocation1 + $0x38] sm:$0xff pattern:$0x73625140] }
  0xc3   :  { %5594 = vmatpush.bf16.msra.mxu1 %v8917_v18  ;;  %5563 = vmatmul.bf16.vlgmr.msrb.gmra.mxu2 %v429_v25  ;;  %v8965_v18 = vld [vmem:[%s11454_s1 + $0x7f8] sm:$0xff]  ;;  %v8939_v25 = vld [vmem:[%s11454_s1 + $0x728] sm:$0xff]  ;;  %v438_v12 = vpack.c.bf16 %v244_v7, %v244_v7  ;;  %v9020_v7 = vld [vmem:[%s11454_s1 + $0x9b0] sm:$0xff] }
  0xc4   :  { %5607 = vmatpush.bf16.msra.mxu2 %v8925_v21  ;;  %5576 = vmatmul.bf16.vlgmr.msrb.gmra.mxu3 %v430_v28  ;;  %v8940_v21 = vld [vmem:[%s11454_s1 + $0x730] sm:$0xff]  ;;  %v8963_v28 = vld [vmem:[%s11454_s1 + $0x7e8] sm:$0xff] }
  0xc5   :  { %5620 = vmatpush.bf16.msra.mxu3 %v8933_v26  ;;  %v8947_v26 = vld [vmem:[%s11454_s1 + $0x768] sm:$0xff] }
  0xc6   :  { %5582 = vmatpush.bf16.msra.mxu0 %v8908_v29  ;;  %v5356_v48 = vpop.f32.mrf.mxu2  ;;  %v5332_v55 = vpop.f32.mrf.mxu0 }
  0xc7   :  { %5595 = vmatpush.bf16.msra.mxu1 %v8916_v30  ;;  %v5357_v50 = vadd.f32 %v5356_v48, %v5344_v45  ;;  %v5369_v54 = vpop.f32.mrf.mxu3  ;;  %v5345_v57 = vpop.f32.mrf.mxu1  ;;  %v8936_v45 = vld [vmem:[%s11454_s1 + $0x710] sm:$0xff]  ;;  %v8943_v55 = vld [vmem:[%s11454_s1 + $0x748] sm:$0xff] }
  0xc8   :  { %5608 = vmatpush.bf16.msra.mxu2 %v8924_v31  ;;  %v8938_v31 = vld [vmem:[%s11454_s1 + $0x720] sm:$0xff]  ;;  %v8952_v48 = vld [vmem:[%s11454_s1 + $0x790] sm:$0xff] }
  0xc9   :  { %5621 = vmatpush.bf16.msra.mxu3 %v8932_v32  ;;  %v10112_v56 = vadd.f32 %v5369_v54, %v5357_v50  ;;  %v8946_v32 = vld [vmem:[%s11454_s1 + $0x760] sm:$0xff]  ;;  %v8960_v50 = vld [vmem:[%s11454_s1 + $0x7d0] sm:$0xff] }
  0xca   :  { %5583 = vmatpush.bf16.msra.mxu0 %v8907_v33  ;;  %v8954_v33 = vld [vmem:[%s11454_s1 + $0x7a0] sm:$0xff]  ;;  %v68_v54 = vld [vmem:[%s11453_s0 + $0x16c] sm:$0xff] }
  0xcb   :  { %5596 = vmatpush.bf16.msra.mxu1 %v8915_v34  ;;  %247 = vst [vmem:[#allocation1 + $0x2] ss:$4 sm:$0xff] %v68_v54  ;;  %v8974_v54 = vld [vmem:[%s11454_s1 + $0x840] sm:$0xff] }
  0xcc   :  { %5609 = vmatpush.bf16.msra.mxu2 %v8923_v35 }
  0xcd   :  { %5622 = vmatpush.bf16.msra.mxu3 %v8931_v36  ;;  %v8962_v36 = vld [vmem:[%s11454_s1 + $0x7e0] sm:$0xff] }
  0xce   :  { %5584 = vmatpush.bf16.msra.mxu0 %v8906_v37  ;;  %v5358_v1 = vpop.f32.mrf.mxu2  ;;  %v8937_v37 = vld [vmem:[%s11454_s1 + $0x718] sm:$0xff] }
  0xcf   :  { %5597 = vmatpush.bf16.msra.mxu1 %v8914_v38  ;;  %v5371_v9 = vpop.f32.mrf.mxu3  ;;  %v8945_v38 = vld [vmem:[%s11454_s1 + $0x758] sm:$0xff]  ;;  %v243_v1 = vld.sshfl [vmem:[#allocation1 + $0x30] sm:$0xff pattern:$0x73625140] }
  0xd0   :  { %5610 = vmatpush.bf16.msra.mxu2 %v8922_v39  ;;  %v8953_v39 = vld [vmem:[%s11454_s1 + $0x798] sm:$0xff]  ;;  %v437_v9 = vpack.c.bf16 %v243_v1, %v243_v1 }
  0xd1   :  { %5623 = vmatpush.bf16.msra.mxu3 %v8930_v43 }
  0xd2   :  { %5585 = vmatpush.bf16.msra.mxu0 %v8905_v44 }
  0xd3   :  { %5598 = vmatpush.bf16.msra.mxu1 %v8913_v46 }
  0xd4   :  { %5611 = vmatpush.bf16.msra.mxu2 %v8921_v47  ;;  %v8944_v47 = vld [vmem:[%s11454_s1 + $0x750] sm:$0xff] }
  0xd5   :  { %5624 = vmatpush.bf16.msra.mxu3 %v8929_v49 }
  0xd6   :  { %5586 = vmatpush.bf16.msra.mxu0 %v8904_v51  ;;  %v8935_v51 = vld [vmem:[%s11454_s1 + $0x708] sm:$0xff] }
  0xd7   :  { %5599 = vmatpush.bf16.msra.mxu1 %v8912_v52  ;;  %v30_v52 = vld [vmem:[%s11453_s0 + $0x40] sm:$0xff] }
  0xd8   :  { %5612 = vmatpush.bf16.msra.mxu2 %v8920_v53  ;;  %v49_v53 = vld [vmem:[%s11453_s0 + $0xd6] sm:$0xff]  ;;  %245 = vst [vmem:[#allocation1] ss:$4 sm:$0xff] %v30_v52 }
  0xd9   :  { %5625 = vmatpush.bf16.msra.mxu3 %v8928_v58  ;;  %v87_v58 = vld [vmem:[%s11453_s0 + $0x202] sm:$0xff]  ;;  %246 = vst [vmem:[#allocation1 + $0x1] ss:$4 sm:$0xff] %v49_v53 }
  0xda   :  { %5587 = vmatpush.bf16.msra.mxu0 %v8903_v59  ;;  %v8959_v59 = vld [vmem:[%s11454_s1 + $0x7c8] sm:$0xff]  ;;  %248 = vst [vmem:[#allocation1 + $0x3] ss:$4 sm:$0xff] %v87_v58  ;;  %v8966_v53 = vld [vmem:[%s11454_s1 + $0x800] sm:$0xff]  ;;  %v9005_v58 = vld [vmem:[%s11454_s1 + $0x938] sm:$0xff] }
  0xdb   :  { %5600 = vmatpush.bf16.msra.mxu1 %v8911_v63 }
  0xdc   :  { %5613 = vmatpush.bf16.msra.mxu2 %v8919_v0  ;;  %v241_v0 = vld.sshfl [vmem:[#allocation1 + $0x20] sm:$0xff pattern:$0x73625140] }
  0xdd   :  { %5626 = vmatpush.bf16.msra.mxu3 %v8927_v3  ;;  %v8981_v3 = vld [vmem:[%s11454_s1 + $0x878] sm:$0xff]  ;;  %v435_v8 = vpack.c.bf16 %v241_v0, %v241_v0 }
  0xde   :  { %5588 = vmatpush.bf16.msra.mxu0 %v8902_v4  ;;  %v5382_v29 = vpop.f32.mrf.mxu0  ;;  %v242_v4 = vld.sshfl [vmem:[#allocation1 + $0x28] sm:$0xff pattern:$0x73625140] }
  0xdf   :  { %5601 = vmatpush.bf16.msra.mxu1 %v8910_v5  ;;  %v5383_v30 = vadd.f32 %v5382_v29, %v10112_v56  ;;  %v5395_v34 = vpop.f32.mrf.mxu1  ;;  %v8951_v56 = vld [vmem:[%s11454_s1 + $0x788] sm:$0xff]  ;;  %v8989_v5 = vld [vmem:[%s11454_s1 + $0x8b8] sm:$0xff] }
  0xe0   :  { %5614 = vmatpush.bf16.msra.mxu2 %v8918_v6  ;;  %v8958_v6 = vld [vmem:[%s11454_s1 + $0x7c0] sm:$0xff]  ;;  %v8969_v29 = vld [vmem:[%s11454_s1 + $0x818] sm:$0xff] }
  0xe1   :  { %5627 = vmatpush.bf16.msra.mxu3 %v8926_v14  ;;  %5589 = vmatmul.bf16.vlgmr.msra.gmra.mxu0 %v431_v16  ;;  %v5396_v35 = vadd.f32 %v5395_v34, %v5383_v30  ;;  %v8980_v14 = vld [vmem:[%s11454_s1 + $0x870] sm:$0xff]  ;;  %v8977_v30 = vld [vmem:[%s11454_s1 + $0x858] sm:$0xff] }
  0xe2   :  { %5633 = vmatpush.bf16.msrb.mxu0 %v8941_v10  ;;  %5602 = vmatmul.bf16.vlgmr.msra.gmra.mxu1 %v432_v19  ;;  %v8997_v10 = vld [vmem:[%s11454_s1 + $0x8f8] sm:$0xff]  ;;  %v8996_v16 = vld [vmem:[%s11454_s1 + $0x8f0] sm:$0xff]  ;;  %v8987_v19 = vld [vmem:[%s11454_s1 + $0x8a8] sm:$0xff] }
  0xe3   :  { %5646 = vmatpush.bf16.msrb.mxu1 %v8949_v11  ;;  %5615 = vmatmul.bf16.vlgmr.msra.gmra.mxu2 %v433_v17  ;;  %v436_v11 = vpack.c.bf16 %v242_v4, %v242_v4  ;;  %v8971_v17 = vld [vmem:[%s11454_s1 + $0x828] sm:$0xff]  ;;  %v8993_v34 = vld [vmem:[%s11454_s1 + $0x8d8] sm:$0xff] }
  0xe4   :  { %5659 = vmatpush.bf16.msrb.mxu2 %v8957_v13  ;;  %5628 = vmatmul.bf16.vlgmr.msra.gmra.mxu3 %v434_v20  ;;  %v8972_v13 = vld [vmem:[%s11454_s1 + $0x830] sm:$0xff]  ;;  %v8995_v20 = vld [vmem:[%s11454_s1 + $0x8e8] sm:$0xff] }
  0xe5   :  { %5672 = vmatpush.bf16.msrb.mxu3 %v8965_v18  ;;  %v8979_v18 = vld [vmem:[%s11454_s1 + $0x868] sm:$0xff] }
  0xe6   :  { %5634 = vmatpush.bf16.msrb.mxu0 %v8940_v21  ;;  %v5408_v40 = vpop.f32.mrf.mxu2  ;;  %v5384_v43 = vpop.f32.mrf.mxu0 }
  0xe7   :  { %5647 = vmatpush.bf16.msrb.mxu1 %v8948_v22  ;;  %v5409_v41 = vadd.f32 %v5408_v40, %v5396_v35  ;;  %v5421_v44 = vpop.f32.mrf.mxu3  ;;  %v5397_v49 = vpop.f32.mrf.mxu1  ;;  %v8976_v40 = vld [vmem:[%s11454_s1 + $0x850] sm:$0xff]  ;;  %v8967_v43 = vld [vmem:[%s11454_s1 + $0x808] sm:$0xff] }
  0xe8   :  { %5660 = vmatpush.bf16.msrb.mxu2 %v8956_v23  ;;  %v8970_v23 = vld [vmem:[%s11454_s1 + $0x820] sm:$0xff] }
  0xe9   :  { %5673 = vmatpush.bf16.msrb.mxu3 %v8964_v24  ;;  %v10217_v46 = vadd.f32 %v5421_v44, %v5409_v41  ;;  %v8984_v41 = vld [vmem:[%s11454_s1 + $0x890] sm:$0xff]  ;;  %v31_v44 = vld [vmem:[%s11453_s0 + $0x48] sm:$0xff] }
  0xea   :  { %5635 = vmatpush.bf16.msrb.mxu0 %v8939_v25  ;;  %v8978_v25 = vld [vmem:[%s11454_s1 + $0x860] sm:$0xff]  ;;  %249 = vst [vmem:[#allocation1 + $0x20] ss:$4 sm:$0xff] %v31_v44 }
  0xeb   :  { %5648 = vmatpush.bf16.msrb.mxu1 %v8947_v26  ;;  %v8986_v26 = vld [vmem:[%s11454_s1 + $0x8a0] sm:$0xff] }
  0xec   :  { %5661 = vmatpush.bf16.msrb.mxu2 %v8955_v27 }
  0xed   :  { %5674 = vmatpush.bf16.msrb.mxu3 %v8963_v28  ;;  %v8994_v28 = vld [vmem:[%s11454_s1 + $0x8e0] sm:$0xff] }
  0xee   :  { %5636 = vmatpush.bf16.msrb.mxu0 %v8938_v31  ;;  %v5410_v57 = vpop.f32.mrf.mxu2  ;;  %v8985_v31 = vld [vmem:[%s11454_s1 + $0x898] sm:$0xff] }
  0xef   :  { %5649 = vmatpush.bf16.msrb.mxu1 %v8946_v32  ;;  %v5423_v63 = vpop.f32.mrf.mxu3  ;;  %v255_v57 = vld.sshfl [vmem:[#allocation1 + $0x10] sm:$0xff pattern:$0x73625140] }
  0xf0   :  { %5662 = vmatpush.bf16.msrb.mxu2 %v8954_v33  ;;  %v256_v63 = vld.sshfl [vmem:[#allocation1 + $0x18] sm:$0xff pattern:$0x73625140]  ;;  %v441_v1 = vpack.c.bf16 %v255_v57, %v255_v57 }
  0xf1   :  { %5675 = vmatpush.bf16.msrb.mxu3 %v8962_v36  ;;  %v442_v4 = vpack.c.bf16 %v256_v63, %v256_v63  ;;  %v9052_v63 = vld [vmem:[%s11454_s1 + $0xab0] sm:$0xff] }
  0xf2   :  { %5637 = vmatpush.bf16.msrb.mxu0 %v8937_v37  ;;  %v8968_v37 = vld [vmem:[%s11454_s1 + $0x810] sm:$0xff] }
  0xf3   :  { %5650 = vmatpush.bf16.msrb.mxu1 %v8945_v38 }
  0xf4   :  { %5663 = vmatpush.bf16.msrb.mxu2 %v8953_v39 }
  0xf5   :  { %5676 = vmatpush.bf16.msrb.mxu3 %v8961_v42  ;;  %v8992_v42 = vld [vmem:[%s11454_s1 + $0x8d0] sm:$0xff] }
  0xf6   :  { %5638 = vmatpush.bf16.msrb.mxu0 %v8936_v45  ;;  %v50_v45 = vld [vmem:[%s11453_s0 + $0xde] sm:$0xff] }
  0xf7   :  { %5651 = vmatpush.bf16.msrb.mxu1 %v8944_v47  ;;  %v8975_v47 = vld [vmem:[%s11454_s1 + $0x848] sm:$0xff]  ;;  %250 = vst [vmem:[#allocation1 + $0x21] ss:$4 sm:$0xff] %v50_v45  ;;  %v8998_v45 = vld [vmem:[%s11454_s1 + $0x900] sm:$0xff] }
  0xf8   :  { %5664 = vmatpush.bf16.msrb.mxu2 %v8952_v48  ;;  %v8983_v48 = vld [vmem:[%s11454_s1 + $0x888] sm:$0xff] }
  0xf9   :  { %5677 = vmatpush.bf16.msrb.mxu3 %v8960_v50  ;;  %v88_v50 = vld [vmem:[%s11453_s0 + $0x20a] sm:$0xff] }
  0xfa   :  { %5639 = vmatpush.bf16.msrb.mxu0 %v8935_v51  ;;  %v8991_v51 = vld [vmem:[%s11454_s1 + $0x8c8] sm:$0xff]  ;;  %252 = vst [vmem:[#allocation1 + $0x23] ss:$4 sm:$0xff] %v88_v50  ;;  %v9037_v50 = vld [vmem:[%s11454_s1 + $0xa38] sm:$0xff] }
  0xfb   :  { %5652 = vmatpush.bf16.msrb.mxu1 %v8943_v55  ;;  %v8982_v55 = vld [vmem:[%s11454_s1 + $0x880] sm:$0xff] }
  0xfc   :  { %5665 = vmatpush.bf16.msrb.mxu2 %v8951_v56  ;;  %v253_v56 = vld.sshfl [vmem:[#allocation1] sm:$0xff pattern:$0x73625140] }
  0xfd   :  { %5678 = vmatpush.bf16.msrb.mxu3 %v8959_v59  ;;  %v9013_v59 = vld [vmem:[%s11454_s1 + $0x978] sm:$0xff]  ;;  %v439_v0 = vpack.c.bf16 %v253_v56, %v253_v56 }
  0xfe   :  { %5640 = vmatpush.bf16.msrb.mxu0 %v8934_v60  ;;  %v5434_v21 = vpop.f32.mrf.mxu0  ;;  %v254_v60 = vld.sshfl [vmem:[#allocation1 + $0x8] sm:$0xff pattern:$0x73625140] }
  0xff   :  { %5653 = vmatpush.bf16.msrb.mxu1 %v8942_v61  ;;  %v5435_v22 = vadd.f32 %v5434_v21, %v10217_v46  ;;  %v5447_v24 = vpop.f32.mrf.mxu1  ;;  %v69_v46 = vld [vmem:[%s11453_s0 + $0x174] sm:$0xff] }
 0x100   :  { %5666 = vmatpush.bf16.msrb.mxu2 %v8950_v62  ;;  %251 = vst [vmem:[#allocation1 + $0x22] ss:$4 sm:$0xff] %v69_v46  ;;  %v9021_v61 = vld [vmem:[%s11454_s1 + $0x9b8] sm:$0xff]  ;;  %v8990_v62 = vld [vmem:[%s11454_s1 + $0x8c0] sm:$0xff] }
 0x101   :  { %5679 = vmatpush.bf16.msrb.mxu3 %v8958_v6  ;;  %5641 = vmatmul.bf16.vlgmr.msrb.gmra.mxu0 %v435_v8  ;;  %v5448_v27 = vadd.f32 %v5447_v24, %v5435_v22  ;;  %v9012_v6 = vld [vmem:[%s11454_s1 + $0x970] sm:$0xff]  ;;  %v9001_v21 = vld [vmem:[%s11454_s1 + $0x918] sm:$0xff]  ;;  %v9006_v46 = vld [vmem:[%s11454_s1 + $0x940] sm:$0xff] }
 0x102   :  { %5685 = vmatpush.bf16.msra.mxu0 %v8973_v2  ;;  %5654 = vmatmul.bf16.vlgmr.msrb.gmra.mxu1 %v436_v11  ;;  %v9029_v2 = vld [vmem:[%s11454_s1 + $0x9f8] sm:$0xff]  ;;  %v9028_v8 = vld [vmem:[%s11454_s1 + $0x9f0] sm:$0xff]  ;;  %v9019_v11 = vld [vmem:[%s11454_s1 + $0x9a8] sm:$0xff] }
 0x103   :  { %5698 = vmatpush.bf16.msra.mxu1 %v8981_v3  ;;  %5667 = vmatmul.bf16.vlgmr.msrb.gmra.mxu2 %v437_v9  ;;  %v440_v3 = vpack.c.bf16 %v254_v60, %v254_v60  ;;  %v9003_v9 = vld [vmem:[%s11454_s1 + $0x928] sm:$0xff]  ;;  %v9009_v22 = vld [vmem:[%s11454_s1 + $0x958] sm:$0xff] }
 0x104   :  { %5711 = vmatpush.bf16.msra.mxu2 %v8989_v5  ;;  %5680 = vmatmul.bf16.vlgmr.msrb.gmra.mxu3 %v438_v12  ;;  %v9004_v5 = vld [vmem:[%s11454_s1 + $0x930] sm:$0xff]  ;;  %v9027_v12 = vld [vmem:[%s11454_s1 + $0x9e8] sm:$0xff] }
 0x105   :  { %5724 = vmatpush.bf16.msra.mxu3 %v8997_v10  ;;  %v9011_v10 = vld [vmem:[%s11454_s1 + $0x968] sm:$0xff] }
 0x106   :  { %5686 = vmatpush.bf16.msra.mxu0 %v8972_v13  ;;  %v5460_v32 = vpop.f32.mrf.mxu2  ;;  %v5436_v36 = vpop.f32.mrf.mxu0 }
 0x107   :  { %5699 = vmatpush.bf16.msra.mxu1 %v8980_v14  ;;  %v5461_v33 = vadd.f32 %v5460_v32, %v5448_v27  ;;  %v5473_v35 = vpop.f32.mrf.mxu3  ;;  %v5449_v38 = vpop.f32.mrf.mxu1  ;;  %v9008_v32 = vld [vmem:[%s11454_s1 + $0x950] sm:$0xff] }
 0x108   :  { %5712 = vmatpush.bf16.msra.mxu2 %v8988_v15  ;;  %v9002_v15 = vld [vmem:[%s11454_s1 + $0x920] sm:$0xff]  ;;  %v32_v36 = vld [vmem:[%s11453_s0 + $0x50] sm:$0xff] }
 0x109   :  { %5725 = vmatpush.bf16.msra.mxu3 %v8996_v16  ;;  %v10328_v39 = vadd.f32 %v5473_v35, %v5461_v33  ;;  %v9016_v33 = vld [vmem:[%s11454_s1 + $0x990] sm:$0xff]  ;;  %v8999_v35 = vld [vmem:[%s11454_s1 + $0x908] sm:$0xff]  ;;  %v70_v38 = vld [vmem:[%s11453_s0 + $0x17c] sm:$0xff]  ;;  %261 = vst [vmem:[#allocation1] ss:$4 sm:$0xff] %v32_v36 }
 0x10a   :  { %5687 = vmatpush.bf16.msra.mxu0 %v8971_v17  ;;  %v9010_v17 = vld [vmem:[%s11454_s1 + $0x960] sm:$0xff]  ;;  %263 = vst [vmem:[#allocation1 + $0x2] ss:$4 sm:$0xff] %v70_v38 }
 0x10b   :  { %5700 = vmatpush.bf16.msra.mxu1 %v8979_v18  ;;  %v9018_v18 = vld [vmem:[%s11454_s1 + $0x9a0] sm:$0xff] }
 0x10c   :  { %5713 = vmatpush.bf16.msra.mxu2 %v8987_v19  ;;  %v9038_v38 = vld [vmem:[%s11454_s1 + $0xa40] sm:$0xff] }
 0x10d   :  { %5726 = vmatpush.bf16.msra.mxu3 %v8995_v20  ;;  %v9026_v20 = vld [vmem:[%s11454_s1 + $0x9e0] sm:$0xff] }
 0x10e   :  { %5688 = vmatpush.bf16.msra.mxu0 %v8970_v23  ;;  %v5462_v49 = vpop.f32.mrf.mxu2  ;;  %v9017_v23 = vld [vmem:[%s11454_s1 + $0x998] sm:$0xff] }
 0x10f   :  { %5701 = vmatpush.bf16.msra.mxu1 %v8978_v25  ;;  %v5475_v52 = vpop.f32.mrf.mxu3  ;;  %v259_v49 = vld.sshfl [vmem:[#allocation1 + $0x30] sm:$0xff pattern:$0x73625140] }
 0x110   :  { %5714 = vmatpush.bf16.msra.mxu2 %v8986_v26  ;;  %v9025_v26 = vld [vmem:[%s11454_s1 + $0x9d8] sm:$0xff]  ;;  %v258_v52 = vld.sshfl [vmem:[#allocation1 + $0x28] sm:$0xff pattern:$0x73625140]  ;;  %v445_v57 = vpack.c.bf16 %v259_v49, %v259_v49 }
 0x111   :  { %5727 = vmatpush.bf16.msra.mxu3 %v8994_v28 }
 0x112   :  { %5689 = vmatpush.bf16.msra.mxu0 %v8969_v29 }
 0x113   :  { %5702 = vmatpush.bf16.msra.mxu1 %v8977_v30  ;;  %v9000_v30 = vld [vmem:[%s11454_s1 + $0x910] sm:$0xff] }
 0x114   :  { %5715 = vmatpush.bf16.msra.mxu2 %v8985_v31 }
 0x115   :  { %5728 = vmatpush.bf16.msra.mxu3 %v8993_v34  ;;  %v9024_v34 = vld [vmem:[%s11454_s1 + $0x9d0] sm:$0xff] }
 0x116   :  { %5690 = vmatpush.bf16.msra.mxu0 %v8968_v37  ;;  %v51_v37 = vld [vmem:[%s11453_s0 + $0xe6] sm:$0xff] }
 0x117   :  { %5703 = vmatpush.bf16.msra.mxu1 %v8976_v40  ;;  %v9015_v40 = vld [vmem:[%s11454_s1 + $0x988] sm:$0xff]  ;;  %262 = vst [vmem:[#allocation1 + $0x1] ss:$4 sm:$0xff] %v51_v37  ;;  %v9030_v37 = vld [vmem:[%s11454_s1 + $0xa00] sm:$0xff] }
 0x118   :  { %5716 = vmatpush.bf16.msra.mxu2 %v8984_v41 }
 0x119   :  { %5729 = vmatpush.bf16.msra.mxu3 %v8992_v42  ;;  %v89_v42 = vld [vmem:[%s11453_s0 + $0x212] sm:$0xff] }
 0x11a   :  { %5691 = vmatpush.bf16.msra.mxu0 %v8967_v43  ;;  %v9023_v43 = vld [vmem:[%s11454_s1 + $0x9c8] sm:$0xff]  ;;  %264 = vst [vmem:[#allocation1 + $0x3] ss:$4 sm:$0xff] %v89_v42  ;;  %v9069_v42 = vld [vmem:[%s11454_s1 + $0xb38] sm:$0xff] }
 0x11b   :  { %5704 = vmatpush.bf16.msra.mxu1 %v8975_v47  ;;  %v9014_v47 = vld [vmem:[%s11454_s1 + $0x980] sm:$0xff] }
 0x11c   :  { %5717 = vmatpush.bf16.msra.mxu2 %v8983_v48  ;;  %v257_v48 = vld.sshfl [vmem:[#allocation1 + $0x20] sm:$0xff pattern:$0x73625140] }
 0x11d   :  { %5730 = vmatpush.bf16.msra.mxu3 %v8991_v51  ;;  %v9045_v51 = vld [vmem:[%s11454_s1 + $0xa78] sm:$0xff]  ;;  %v443_v56 = vpack.c.bf16 %v257_v48, %v257_v48 }
 0x11e   :  { %5692 = vmatpush.bf16.msra.mxu0 %v8966_v53  ;;  %v5486_v13 = vpop.f32.mrf.mxu0  ;;  %v9053_v53 = vld [vmem:[%s11454_s1 + $0xab8] sm:$0xff] }
 0x11f   :  { %5705 = vmatpush.bf16.msra.mxu1 %v8974_v54  ;;  %v5487_v14 = vadd.f32 %v5486_v13, %v10328_v39  ;;  %v5499_v16 = vpop.f32.mrf.mxu1  ;;  %v9007_v39 = vld [vmem:[%s11454_s1 + $0x948] sm:$0xff]  ;;  %v9022_v54 = vld [vmem:[%s11454_s1 + $0x9c0] sm:$0xff]  ;;  %v9033_v13 = vld [vmem:[%s11454_s1 + $0xa18] sm:$0xff] }
 0x120   :  { %5718 = vmatpush.bf16.msra.mxu2 %v8982_v55  ;;  %v260_v55 = vld.sshfl [vmem:[#allocation1 + $0x38] sm:$0xff pattern:$0x73625140] }
 0x121   :  { %5731 = vmatpush.bf16.msra.mxu3 %v8990_v62  ;;  %5693 = vmatmul.bf16.vlgmr.msra.gmra.mxu0 %v439_v0  ;;  %v5500_v19 = vadd.f32 %v5499_v16, %v5487_v14  ;;  %v446_v60 = vpack.c.bf16 %v260_v55, %v260_v55  ;;  %v9044_v62 = vld [vmem:[%s11454_s1 + $0xa70] sm:$0xff]  ;;  %v9041_v14 = vld [vmem:[%s11454_s1 + $0xa58] sm:$0xff] }
 0x122   :  { %5737 = vmatpush.bf16.msrb.mxu0 %v9005_v58  ;;  %5706 = vmatmul.bf16.vlgmr.msra.gmra.mxu1 %v440_v3  ;;  %v9061_v58 = vld [vmem:[%s11454_s1 + $0xaf8] sm:$0xff]  ;;  %v9060_v0 = vld [vmem:[%s11454_s1 + $0xaf0] sm:$0xff]  ;;  %v9051_v3 = vld [vmem:[%s11454_s1 + $0xaa8] sm:$0xff] }
 0x123   :  { %5750 = vmatpush.bf16.msrb.mxu1 %v9013_v59  ;;  %5719 = vmatmul.bf16.vlgmr.msra.gmra.mxu2 %v441_v1  ;;  %v444_v59 = vpack.c.bf16 %v258_v52, %v258_v52  ;;  %v9035_v1 = vld [vmem:[%s11454_s1 + $0xa28] sm:$0xff]  ;;  %v9084_v55 = vld [vmem:[%s11454_s1 + $0xbb0] sm:$0xff] }
 0x124   :  { %5763 = vmatpush.bf16.msrb.mxu2 %v9021_v61  ;;  %5732 = vmatmul.bf16.vlgmr.msra.gmra.mxu3 %v442_v4  ;;  %v9036_v61 = vld [vmem:[%s11454_s1 + $0xa30] sm:$0xff]  ;;  %v9059_v4 = vld [vmem:[%s11454_s1 + $0xae8] sm:$0xff] }
 0x125   :  { %5776 = vmatpush.bf16.msrb.mxu3 %v9029_v2  ;;  %v9043_v2 = vld [vmem:[%s11454_s1 + $0xa68] sm:$0xff] }
 0x126   :  { %5738 = vmatpush.bf16.msrb.mxu0 %v9004_v5  ;;  %v5512_v24 = vpop.f32.mrf.mxu2  ;;  %v5488_v28 = vpop.f32.mrf.mxu0 }
 0x127   :  { %5751 = vmatpush.bf16.msrb.mxu1 %v9012_v6  ;;  %v5513_v25 = vadd.f32 %v5512_v24, %v5500_v19  ;;  %v5525_v27 = vpop.f32.mrf.mxu3  ;;  %v5501_v31 = vpop.f32.mrf.mxu1  ;;  %v9040_v24 = vld [vmem:[%s11454_s1 + $0xa50] sm:$0xff]  ;;  %v33_v28 = vld [vmem:[%s11453_s0 + $0x58] sm:$0xff] }
 0x128   :  { %5764 = vmatpush.bf16.msrb.mxu2 %v9020_v7  ;;  %v9034_v7 = vld [vmem:[%s11454_s1 + $0xa20] sm:$0xff]  ;;  %v9039_v31 = vld [vmem:[%s11454_s1 + $0xa48] sm:$0xff]  ;;  %265 = vst [vmem:[#allocation1 + $0x20] ss:$4 sm:$0xff] %v33_v28 }
 0x129   :  { %5777 = vmatpush.bf16.msrb.mxu3 %v9028_v8  ;;  %v10436_v29 = vadd.f32 %v5525_v27, %v5513_v25  ;;  %v9048_v25 = vld [vmem:[%s11454_s1 + $0xa90] sm:$0xff]  ;;  %v9031_v27 = vld [vmem:[%s11454_s1 + $0xa08] sm:$0xff] }
 0x12a   :  { %5739 = vmatpush.bf16.msrb.mxu0 %v9003_v9  ;;  %v9042_v9 = vld [vmem:[%s11454_s1 + $0xa60] sm:$0xff] }
 0x12b   :  { %5752 = vmatpush.bf16.msrb.mxu1 %v9011_v10  ;;  %v9050_v10 = vld [vmem:[%s11454_s1 + $0xaa0] sm:$0xff] }
 0x12c   :  { %5765 = vmatpush.bf16.msrb.mxu2 %v9019_v11 }
 0x12d   :  { %5778 = vmatpush.bf16.msrb.mxu3 %v9027_v12  ;;  %v9058_v12 = vld [vmem:[%s11454_s1 + $0xae0] sm:$0xff] }
 0x12e   :  { %5740 = vmatpush.bf16.msrb.mxu0 %v9002_v15  ;;  %v5514_v41 = vpop.f32.mrf.mxu2  ;;  %v9049_v15 = vld [vmem:[%s11454_s1 + $0xa98] sm:$0xff] }
 0x12f   :  { %5753 = vmatpush.bf16.msrb.mxu1 %v9010_v17  ;;  %v5527_v44 = vpop.f32.mrf.mxu3  ;;  %v271_v41 = vld.sshfl [vmem:[#allocation1 + $0x10] sm:$0xff pattern:$0x73625140] }
 0x130   :  { %5766 = vmatpush.bf16.msrb.mxu2 %v9018_v18  ;;  %v9057_v18 = vld [vmem:[%s11454_s1 + $0xad8] sm:$0xff]  ;;  %v270_v44 = vld.sshfl [vmem:[#allocation1 + $0x8] sm:$0xff pattern:$0x73625140]  ;;  %v449_v49 = vpack.c.bf16 %v271_v41, %v271_v41 }
 0x131   :  { %5779 = vmatpush.bf16.msrb.mxu3 %v9026_v20 }
 0x132   :  { %5741 = vmatpush.bf16.msrb.mxu0 %v9001_v21 }
 0x133   :  { %5754 = vmatpush.bf16.msrb.mxu1 %v9009_v22  ;;  %v9032_v22 = vld [vmem:[%s11454_s1 + $0xa10] sm:$0xff] }
 0x134   :  { %5767 = vmatpush.bf16.msrb.mxu2 %v9017_v23 }
 0x135   :  { %5780 = vmatpush.bf16.msrb.mxu3 %v9025_v26  ;;  %v9056_v26 = vld [vmem:[%s11454_s1 + $0xad0] sm:$0xff] }
 0x136   :  { %5742 = vmatpush.bf16.msrb.mxu0 %v9000_v30  ;;  %v71_v30 = vld [vmem:[%s11453_s0 + $0x184] sm:$0xff] }
 0x137   :  { %5755 = vmatpush.bf16.msrb.mxu1 %v9008_v32  ;;  %v9047_v32 = vld [vmem:[%s11454_s1 + $0xa88] sm:$0xff]  ;;  %267 = vst [vmem:[#allocation1 + $0x22] ss:$4 sm:$0xff] %v71_v30  ;;  %v9070_v30 = vld [vmem:[%s11454_s1 + $0xb40] sm:$0xff] }
 0x138   :  { %5768 = vmatpush.bf16.msrb.mxu2 %v9016_v33 }
 0x139   :  { %5781 = vmatpush.bf16.msrb.mxu3 %v9024_v34  ;;  %v90_v34 = vld [vmem:[%s11453_s0 + $0x21a] sm:$0xff] }
 0x13a   :  { %5743 = vmatpush.bf16.msrb.mxu0 %v8999_v35  ;;  %v9055_v35 = vld [vmem:[%s11454_s1 + $0xac8] sm:$0xff]  ;;  %268 = vst [vmem:[#allocation1 + $0x23] ss:$4 sm:$0xff] %v90_v34  ;;  %v9101_v34 = vld [vmem:[%s11454_s1 + $0xc38] sm:$0xff] }
 0x13b   :  { %5756 = vmatpush.bf16.msrb.mxu1 %v9007_v39  ;;  %v9046_v39 = vld [vmem:[%s11454_s1 + $0xa80] sm:$0xff] }
 0x13c   :  { %5769 = vmatpush.bf16.msrb.mxu2 %v9015_v40  ;;  %v269_v40 = vld.sshfl [vmem:[#allocation1] sm:$0xff pattern:$0x73625140] }
 0x13d   :  { %5782 = vmatpush.bf16.msrb.mxu3 %v9023_v43  ;;  %v9077_v43 = vld [vmem:[%s11454_s1 + $0xb78] sm:$0xff]  ;;  %v447_v48 = vpack.c.bf16 %v269_v40, %v269_v40 }
 0x13e   :  { %5744 = vmatpush.bf16.msrb.mxu0 %v8998_v45  ;;  %v5538_v5 = vpop.f32.mrf.mxu0  ;;  %v9085_v45 = vld [vmem:[%s11454_s1 + $0xbb8] sm:$0xff] }
 0x13f   :  { %5757 = vmatpush.bf16.msrb.mxu1 %v9006_v46  ;;  %v5539_v6 = vadd.f32 %v5538_v5, %v10436_v29  ;;  %v5551_v8 = vpop.f32.mrf.mxu1  ;;  %v52_v29 = vld [vmem:[%s11453_s0 + $0xee] sm:$0xff]  ;;  %v9054_v46 = vld [vmem:[%s11454_s1 + $0xac0] sm:$0xff]  ;;  %v9065_v5 = vld [vmem:[%s11454_s1 + $0xb18] sm:$0xff] }
 0x140   :  { %5770 = vmatpush.bf16.msrb.mxu2 %v9014_v47  ;;  %266 = vst [vmem:[#allocation1 + $0x21] ss:$4 sm:$0xff] %v52_v29  ;;  %v272_v47 = vld.sshfl [vmem:[#allocation1 + $0x18] sm:$0xff pattern:$0x73625140]  ;;  %v9062_v29 = vld [vmem:[%s11454_s1 + $0xb00] sm:$0xff] }
 0x141   :  { %5783 = vmatpush.bf16.msrb.mxu3 %v9022_v54  ;;  %5745 = vmatmul.bf16.vlgmr.msrb.gmra.mxu0 %v443_v56  ;;  %v5552_v11 = vadd.f32 %v5551_v8, %v5539_v6  ;;  %v450_v52 = vpack.c.bf16 %v272_v47, %v272_v47  ;;  %v9076_v54 = vld [vmem:[%s11454_s1 + $0xb70] sm:$0xff]  ;;  %v9073_v6 = vld [vmem:[%s11454_s1 + $0xb58] sm:$0xff] }
 0x142   :  { %5789 = vmatpush.bf16.msra.mxu0 %v9037_v50  ;;  %5758 = vmatmul.bf16.vlgmr.msrb.gmra.mxu1 %v444_v59  ;;  %v9093_v50 = vld [vmem:[%s11454_s1 + $0xbf8] sm:$0xff]  ;;  %v9092_v56 = vld [vmem:[%s11454_s1 + $0xbf0] sm:$0xff]  ;;  %v9083_v59 = vld [vmem:[%s11454_s1 + $0xba8] sm:$0xff] }
 0x143   :  { %5802 = vmatpush.bf16.msra.mxu1 %v9045_v51  ;;  %5771 = vmatmul.bf16.vlgmr.msrb.gmra.mxu2 %v445_v57  ;;  %v448_v51 = vpack.c.bf16 %v270_v44, %v270_v44  ;;  %v9067_v57 = vld [vmem:[%s11454_s1 + $0xb28] sm:$0xff]  ;;  %v9116_v47 = vld [vmem:[%s11454_s1 + $0xcb0] sm:$0xff] }
 0x144   :  { %5815 = vmatpush.bf16.msra.mxu2 %v9053_v53  ;;  %5784 = vmatmul.bf16.vlgmr.msrb.gmra.mxu3 %v446_v60  ;;  %v9068_v53 = vld [vmem:[%s11454_s1 + $0xb30] sm:$0xff]  ;;  %v9091_v60 = vld [vmem:[%s11454_s1 + $0xbe8] sm:$0xff] }
 0x145   :  { %5828 = vmatpush.bf16.msra.mxu3 %v9061_v58  ;;  %v9075_v58 = vld [vmem:[%s11454_s1 + $0xb68] sm:$0xff] }
 0x146   :  { %5790 = vmatpush.bf16.msra.mxu0 %v9036_v61  ;;  %v5564_v16 = vpop.f32.mrf.mxu2  ;;  %v5540_v20 = vpop.f32.mrf.mxu0 }
 0x147   :  { %5803 = vmatpush.bf16.msra.mxu1 %v9044_v62  ;;  %v5565_v17 = vadd.f32 %v5564_v16, %v5552_v11  ;;  %v5577_v19 = vpop.f32.mrf.mxu3  ;;  %v5553_v23 = vpop.f32.mrf.mxu1  ;;  %v9072_v16 = vld [vmem:[%s11454_s1 + $0xb50] sm:$0xff]  ;;  %v34_v20 = vld [vmem:[%s11453_s0 + $0x60] sm:$0xff] }
 0x148   :  { %5816 = vmatpush.bf16.msra.mxu2 %v9052_v63  ;;  %v9066_v63 = vld [vmem:[%s11454_s1 + $0xb20] sm:$0xff]  ;;  %v9071_v23 = vld [vmem:[%s11454_s1 + $0xb48] sm:$0xff]  ;;  %277 = vst [vmem:[#allocation1] ss:$4 sm:$0xff] %v34_v20 }
 0x149   :  { %5829 = vmatpush.bf16.msra.mxu3 %v9060_v0  ;;  %v10547_v21 = vadd.f32 %v5577_v19, %v5565_v17  ;;  %v9080_v17 = vld [vmem:[%s11454_s1 + $0xb90] sm:$0xff]  ;;  %v9063_v19 = vld [vmem:[%s11454_s1 + $0xb08] sm:$0xff] }
 0x14a   :  { %5791 = vmatpush.bf16.msra.mxu0 %v9035_v1  ;;  %v9074_v1 = vld [vmem:[%s11454_s1 + $0xb60] sm:$0xff] }
 0x14b   :  { %5804 = vmatpush.bf16.msra.mxu1 %v9043_v2  ;;  %v9082_v2 = vld [vmem:[%s11454_s1 + $0xba0] sm:$0xff] }
 0x14c   :  { %5817 = vmatpush.bf16.msra.mxu2 %v9051_v3 }
 0x14d   :  { %5830 = vmatpush.bf16.msra.mxu3 %v9059_v4  ;;  %v9090_v4 = vld [vmem:[%s11454_s1 + $0xbe0] sm:$0xff] }
 0x14e   :  { %5792 = vmatpush.bf16.msra.mxu0 %v9034_v7  ;;  %v5566_v33 = vpop.f32.mrf.mxu2  ;;  %v9081_v7 = vld [vmem:[%s11454_s1 + $0xb98] sm:$0xff] }
 0x14f   :  { %5805 = vmatpush.bf16.msra.mxu1 %v9042_v9  ;;  %v5579_v36 = vpop.f32.mrf.mxu3  ;;  %v275_v33 = vld.sshfl [vmem:[#allocation1 + $0x30] sm:$0xff pattern:$0x73625140] }
 0x150   :  { %5818 = vmatpush.bf16.msra.mxu2 %v9050_v10  ;;  %v9089_v10 = vld [vmem:[%s11454_s1 + $0xbd8] sm:$0xff]  ;;  %v274_v36 = vld.sshfl [vmem:[#allocation1 + $0x28] sm:$0xff pattern:$0x73625140]  ;;  %v453_v41 = vpack.c.bf16 %v275_v33, %v275_v33 }
 0x151   :  { %5831 = vmatpush.bf16.msra.mxu3 %v9058_v12 }
 0x152   :  { %5793 = vmatpush.bf16.msra.mxu0 %v9033_v13 }
 0x153   :  { %5806 = vmatpush.bf16.msra.mxu1 %v9041_v14  ;;  %v9064_v14 = vld [vmem:[%s11454_s1 + $0xb10] sm:$0xff] }
 0x154   :  { %5819 = vmatpush.bf16.msra.mxu2 %v9049_v15 }
 0x155   :  { %5832 = vmatpush.bf16.msra.mxu3 %v9057_v18  ;;  %v9088_v18 = vld [vmem:[%s11454_s1 + $0xbd0] sm:$0xff] }
 0x156   :  { %5794 = vmatpush.bf16.msra.mxu0 %v9032_v22  ;;  %v72_v22 = vld [vmem:[%s11453_s0 + $0x18c] sm:$0xff] }
 0x157   :  { %5807 = vmatpush.bf16.msra.mxu1 %v9040_v24  ;;  %v9079_v24 = vld [vmem:[%s11454_s1 + $0xb88] sm:$0xff]  ;;  %279 = vst [vmem:[#allocation1 + $0x2] ss:$4 sm:$0xff] %v72_v22  ;;  %v9102_v22 = vld [vmem:[%s11454_s1 + $0xc40] sm:$0xff] }
 0x158   :  { %5820 = vmatpush.bf16.msra.mxu2 %v9048_v25 }
 0x159   :  { %5833 = vmatpush.bf16.msra.mxu3 %v9056_v26  ;;  %v91_v26 = vld [vmem:[%s11453_s0 + $0x222] sm:$0xff] }
 0x15a   :  { %5795 = vmatpush.bf16.msra.mxu0 %v9031_v27  ;;  %v9087_v27 = vld [vmem:[%s11454_s1 + $0xbc8] sm:$0xff]  ;;  %280 = vst [vmem:[#allocation1 + $0x3] ss:$4 sm:$0xff] %v91_v26  ;;  %v9133_v26 = vld [vmem:[%s11454_s1 + $0xd38] sm:$0xff] }
 0x15b   :  { %5808 = vmatpush.bf16.msra.mxu1 %v9039_v31  ;;  %v9078_v31 = vld [vmem:[%s11454_s1 + $0xb80] sm:$0xff] }
 0x15c   :  { %5821 = vmatpush.bf16.msra.mxu2 %v9047_v32  ;;  %v273_v32 = vld.sshfl [vmem:[#allocation1 + $0x20] sm:$0xff pattern:$0x73625140] }
 0x15d   :  { %5834 = vmatpush.bf16.msra.mxu3 %v9055_v35  ;;  %v9109_v35 = vld [vmem:[%s11454_s1 + $0xc78] sm:$0xff]  ;;  %v451_v40 = vpack.c.bf16 %v273_v32, %v273_v32 }
 0x15e   :  { %5796 = vmatpush.bf16.msra.mxu0 %v9030_v37  ;;  %v5590_v61 = vpop.f32.mrf.mxu0  ;;  %v9117_v37 = vld [vmem:[%s11454_s1 + $0xcb8] sm:$0xff] }
 0x15f   :  { %5809 = vmatpush.bf16.msra.mxu1 %v9038_v38  ;;  %v5591_v62 = vadd.f32 %v5590_v61, %v10547_v21  ;;  %v5603_v0 = vpop.f32.mrf.mxu1  ;;  %v53_v21 = vld [vmem:[%s11453_s0 + $0xf6] sm:$0xff]  ;;  %v9086_v38 = vld [vmem:[%s11454_s1 + $0xbc0] sm:$0xff] }
 0x160   :  { %5822 = vmatpush.bf16.msra.mxu2 %v9046_v39  ;;  %278 = vst [vmem:[#allocation1 + $0x1] ss:$4 sm:$0xff] %v53_v21  ;;  %v276_v39 = vld.sshfl [vmem:[#allocation1 + $0x38] sm:$0xff pattern:$0x73625140]  ;;  %v9094_v21 = vld [vmem:[%s11454_s1 + $0xc00] sm:$0xff] }
 0x161   :  { %5835 = vmatpush.bf16.msra.mxu3 %v9054_v46  ;;  %5797 = vmatmul.bf16.vlgmr.msra.gmra.mxu0 %v447_v48  ;;  %v5604_v3 = vadd.f32 %v5603_v0, %v5591_v62  ;;  %v454_v44 = vpack.c.bf16 %v276_v39, %v276_v39  ;;  %v9108_v46 = vld [vmem:[%s11454_s1 + $0xc70] sm:$0xff]  ;;  %v9097_v61 = vld [vmem:[%s11454_s1 + $0xc18] sm:$0xff] }
 0x162   :  { %5841 = vmatpush.bf16.msrb.mxu0 %v9069_v42  ;;  %5810 = vmatmul.bf16.vlgmr.msra.gmra.mxu1 %v448_v51  ;;  %v9125_v42 = vld [vmem:[%s11454_s1 + $0xcf8] sm:$0xff]  ;;  %v9124_v48 = vld [vmem:[%s11454_s1 + $0xcf0] sm:$0xff]  ;;  %v9115_v51 = vld [vmem:[%s11454_s1 + $0xca8] sm:$0xff] }
 0x163   :  { %5854 = vmatpush.bf16.msrb.mxu1 %v9077_v43  ;;  %5823 = vmatmul.bf16.vlgmr.msra.gmra.mxu2 %v449_v49  ;;  %v452_v43 = vpack.c.bf16 %v274_v36, %v274_v36  ;;  %v9099_v49 = vld [vmem:[%s11454_s1 + $0xc28] sm:$0xff]  ;;  %v9105_v62 = vld [vmem:[%s11454_s1 + $0xc58] sm:$0xff]  ;;  %v9148_v39 = vld [vmem:[%s11454_s1 + $0xdb0] sm:$0xff] }
 0x164   :  { %5867 = vmatpush.bf16.msrb.mxu2 %v9085_v45  ;;  %5836 = vmatmul.bf16.vlgmr.msra.gmra.mxu3 %v450_v52  ;;  %v9100_v45 = vld [vmem:[%s11454_s1 + $0xc30] sm:$0xff]  ;;  %v9123_v52 = vld [vmem:[%s11454_s1 + $0xce8] sm:$0xff] }
 0x165   :  { %5880 = vmatpush.bf16.msrb.mxu3 %v9093_v50  ;;  %v9107_v50 = vld [vmem:[%s11454_s1 + $0xc68] sm:$0xff] }
 0x166   :  { %5842 = vmatpush.bf16.msrb.mxu0 %v9068_v53  ;;  %v5616_v8 = vpop.f32.mrf.mxu2  ;;  %v5592_v12 = vpop.f32.mrf.mxu0 }
 0x167   :  { %5855 = vmatpush.bf16.msrb.mxu1 %v9076_v54  ;;  %v5617_v9 = vadd.f32 %v5616_v8, %v5604_v3  ;;  %v5629_v11 = vpop.f32.mrf.mxu3  ;;  %v5605_v15 = vpop.f32.mrf.mxu1  ;;  %v9104_v8 = vld [vmem:[%s11454_s1 + $0xc50] sm:$0xff]  ;;  %v35_v12 = vld [vmem:[%s11453_s0 + $0x68] sm:$0xff] }
 0x168   :  { %5868 = vmatpush.bf16.msrb.mxu2 %v9084_v55  ;;  %v9098_v55 = vld [vmem:[%s11454_s1 + $0xc20] sm:$0xff]  ;;  %v9103_v15 = vld [vmem:[%s11454_s1 + $0xc48] sm:$0xff]  ;;  %281 = vst [vmem:[#allocation1 + $0x20] ss:$4 sm:$0xff] %v35_v12 }
 0x169   :  { %5881 = vmatpush.bf16.msrb.mxu3 %v9092_v56  ;;  %v10658_v13 = vadd.f32 %v5629_v11, %v5617_v9  ;;  %v9112_v9 = vld [vmem:[%s11454_s1 + $0xc90] sm:$0xff]  ;;  %v9095_v11 = vld [vmem:[%s11454_s1 + $0xc08] sm:$0xff] }
 0x16a   :  { %5843 = vmatpush.bf16.msrb.mxu0 %v9067_v57  ;;  %v9106_v57 = vld [vmem:[%s11454_s1 + $0xc60] sm:$0xff] }
 0x16b   :  { %5856 = vmatpush.bf16.msrb.mxu1 %v9075_v58  ;;  %v9114_v58 = vld [vmem:[%s11454_s1 + $0xca0] sm:$0xff] }
 0x16c   :  { %5869 = vmatpush.bf16.msrb.mxu2 %v9083_v59 }
 0x16d   :  { %5882 = vmatpush.bf16.msrb.mxu3 %v9091_v60  ;;  %v9122_v60 = vld [vmem:[%s11454_s1 + $0xce0] sm:$0xff] }
 0x16e   :  { %5844 = vmatpush.bf16.msrb.mxu0 %v9066_v63  ;;  %v5618_v25 = vpop.f32.mrf.mxu2  ;;  %v9113_v63 = vld [vmem:[%s11454_s1 + $0xc98] sm:$0xff] }
 0x16f   :  { %5857 = vmatpush.bf16.msrb.mxu1 %v9074_v1  ;;  %v5631_v28 = vpop.f32.mrf.mxu3  ;;  %v287_v25 = vld.sshfl [vmem:[#allocation1 + $0x10] sm:$0xff pattern:$0x73625140] }
 0x170   :  { %5870 = vmatpush.bf16.msrb.mxu2 %v9082_v2  ;;  %v9121_v2 = vld [vmem:[%s11454_s1 + $0xcd8] sm:$0xff]  ;;  %v286_v28 = vld.sshfl [vmem:[#allocation1 + $0x8] sm:$0xff pattern:$0x73625140]  ;;  %v457_v33 = vpack.c.bf16 %v287_v25, %v287_v25 }
 0x171   :  { %5883 = vmatpush.bf16.msrb.mxu3 %v9090_v4 }
 0x172   :  { %5845 = vmatpush.bf16.msrb.mxu0 %v9065_v5 }
 0x173   :  { %5858 = vmatpush.bf16.msrb.mxu1 %v9073_v6  ;;  %v9096_v6 = vld [vmem:[%s11454_s1 + $0xc10] sm:$0xff] }
 0x174   :  { %5871 = vmatpush.bf16.msrb.mxu2 %v9081_v7 }
 0x175   :  { %5884 = vmatpush.bf16.msrb.mxu3 %v9089_v10  ;;  %v9120_v10 = vld [vmem:[%s11454_s1 + $0xcd0] sm:$0xff] }
 0x176   :  { %5846 = vmatpush.bf16.msrb.mxu0 %v9064_v14  ;;  %v73_v14 = vld [vmem:[%s11453_s0 + $0x194] sm:$0xff] }
 0x177   :  { %5859 = vmatpush.bf16.msrb.mxu1 %v9072_v16  ;;  %v9111_v16 = vld [vmem:[%s11454_s1 + $0xc88] sm:$0xff]  ;;  %283 = vst [vmem:[#allocation1 + $0x22] ss:$4 sm:$0xff] %v73_v14  ;;  %v9134_v14 = vld [vmem:[%s11454_s1 + $0xd40] sm:$0xff] }
 0x178   :  { %5872 = vmatpush.bf16.msrb.mxu2 %v9080_v17 }
 0x179   :  { %5885 = vmatpush.bf16.msrb.mxu3 %v9088_v18  ;;  %v92_v18 = vld [vmem:[%s11453_s0 + $0x22a] sm:$0xff] }
 0x17a   :  { %5847 = vmatpush.bf16.msrb.mxu0 %v9063_v19  ;;  %v9119_v19 = vld [vmem:[%s11454_s1 + $0xcc8] sm:$0xff]  ;;  %284 = vst [vmem:[#allocation1 + $0x23] ss:$4 sm:$0xff] %v92_v18  ;;  %v9165_v18 = vld [vmem:[%s11454_s1 + $0xe38] sm:$0xff] }
 0x17b   :  { %5860 = vmatpush.bf16.msrb.mxu1 %v9071_v23  ;;  %v9110_v23 = vld [vmem:[%s11454_s1 + $0xc80] sm:$0xff] }
 0x17c   :  { %5873 = vmatpush.bf16.msrb.mxu2 %v9079_v24  ;;  %v285_v24 = vld.sshfl [vmem:[#allocation1] sm:$0xff pattern:$0x73625140] }
 0x17d   :  { %5886 = vmatpush.bf16.msrb.mxu3 %v9087_v27  ;;  %v9141_v27 = vld [vmem:[%s11454_s1 + $0xd78] sm:$0xff]  ;;  %v455_v32 = vpack.c.bf16 %v285_v24, %v285_v24 }
 0x17e   :  { %5848 = vmatpush.bf16.msrb.mxu0 %v9062_v29  ;;  %v5642_v53 = vpop.f32.mrf.mxu0  ;;  %v9149_v29 = vld [vmem:[%s11454_s1 + $0xdb8] sm:$0xff] }
 0x17f   :  { %5861 = vmatpush.bf16.msrb.mxu1 %v9070_v30  ;;  %v5643_v54 = vadd.f32 %v5642_v53, %v10658_v13  ;;  %v5655_v56 = vpop.f32.mrf.mxu1  ;;  %v54_v13 = vld [vmem:[%s11453_s0 + $0xfe] sm:$0xff] }
 0x180   :  { %5874 = vmatpush.bf16.msrb.mxu2 %v9078_v31  ;;  %282 = vst [vmem:[#allocation1 + $0x21] ss:$4 sm:$0xff] %v54_v13  ;;  %v9118_v30 = vld [vmem:[%s11454_s1 + $0xcc0] sm:$0xff]  ;;  %v288_v31 = vld.sshfl [vmem:[#allocation1 + $0x18] sm:$0xff pattern:$0x73625140] }
 0x181   :  { %5887 = vmatpush.bf16.msrb.mxu3 %v9086_v38  ;;  %5849 = vmatmul.bf16.vlgmr.msrb.gmra.mxu0 %v451_v40  ;;  %v5656_v59 = vadd.f32 %v5655_v56, %v5643_v54  ;;  %v458_v36 = vpack.c.bf16 %v288_v31, %v288_v31  ;;  %v9140_v38 = vld [vmem:[%s11454_s1 + $0xd70] sm:$0xff]  ;;  %v9129_v53 = vld [vmem:[%s11454_s1 + $0xd18] sm:$0xff]  ;;  %v9126_v13 = vld [vmem:[%s11454_s1 + $0xd00] sm:$0xff] }
 0x182   :  { %5893 = vmatpush.bf16.msra.mxu0 %v9101_v34  ;;  %5862 = vmatmul.bf16.vlgmr.msrb.gmra.mxu1 %v452_v43  ;;  %v9157_v34 = vld [vmem:[%s11454_s1 + $0xdf8] sm:$0xff]  ;;  %v9156_v40 = vld [vmem:[%s11454_s1 + $0xdf0] sm:$0xff]  ;;  %v9147_v43 = vld [vmem:[%s11454_s1 + $0xda8] sm:$0xff] }
 0x183   :  { %5906 = vmatpush.bf16.msra.mxu1 %v9109_v35  ;;  %5875 = vmatmul.bf16.vlgmr.msrb.gmra.mxu2 %v453_v41  ;;  %v456_v35 = vpack.c.bf16 %v286_v28, %v286_v28  ;;  %v9131_v41 = vld [vmem:[%s11454_s1 + $0xd28] sm:$0xff]  ;;  %v9137_v54 = vld [vmem:[%s11454_s1 + $0xd58] sm:$0xff]  ;;  %v9180_v31 = vld [vmem:[%s11454_s1 + $0xeb0] sm:$0xff] }
 0x184   :  { %5919 = vmatpush.bf16.msra.mxu2 %v9117_v37  ;;  %5888 = vmatmul.bf16.vlgmr.msrb.gmra.mxu3 %v454_v44  ;;  %v9132_v37 = vld [vmem:[%s11454_s1 + $0xd30] sm:$0xff]  ;;  %v9155_v44 = vld [vmem:[%s11454_s1 + $0xde8] sm:$0xff] }
 0x185   :  { %5932 = vmatpush.bf16.msra.mxu3 %v9125_v42  ;;  %v9139_v42 = vld [vmem:[%s11454_s1 + $0xd68] sm:$0xff] }
 0x186   :  { %5894 = vmatpush.bf16.msra.mxu0 %v9100_v45  ;;  %v5668_v0 = vpop.f32.mrf.mxu2  ;;  %v5644_v4 = vpop.f32.mrf.mxu0 }
 0x187   :  { %5907 = vmatpush.bf16.msra.mxu1 %v9108_v46  ;;  %v5669_v1 = vadd.f32 %v5668_v0, %v5656_v59  ;;  %v5681_v3 = vpop.f32.mrf.mxu3  ;;  %v5657_v7 = vpop.f32.mrf.mxu1  ;;  %v9136_v0 = vld [vmem:[%s11454_s1 + $0xd50] sm:$0xff] }
 0x188   :  { %5920 = vmatpush.bf16.msra.mxu2 %v9116_v47  ;;  %v9130_v47 = vld [vmem:[%s11454_s1 + $0xd20] sm:$0xff]  ;;  %v36_v4 = vld [vmem:[%s11453_s0 + $0x70] sm:$0xff]  ;;  %v9135_v7 = vld [vmem:[%s11454_s1 + $0xd48] sm:$0xff] }
 0x189   :  { %5933 = vmatpush.bf16.msra.mxu3 %v9124_v48  ;;  %v10769_v5 = vadd.f32 %v5681_v3, %v5669_v1  ;;  %v9144_v1 = vld [vmem:[%s11454_s1 + $0xd90] sm:$0xff]  ;;  %v9127_v3 = vld [vmem:[%s11454_s1 + $0xd08] sm:$0xff]  ;;  %293 = vst [vmem:[#allocation1] ss:$4 sm:$0xff] %v36_v4 }
 0x18a   :  { %5895 = vmatpush.bf16.msra.mxu0 %v9099_v49  ;;  %v9138_v49 = vld [vmem:[%s11454_s1 + $0xd60] sm:$0xff] }
 0x18b   :  { %5908 = vmatpush.bf16.msra.mxu1 %v9107_v50  ;;  %v9146_v50 = vld [vmem:[%s11454_s1 + $0xda0] sm:$0xff] }
 0x18c   :  { %5921 = vmatpush.bf16.msra.mxu2 %v9115_v51 }
 0x18d   :  { %5934 = vmatpush.bf16.msra.mxu3 %v9123_v52  ;;  %v9154_v52 = vld [vmem:[%s11454_s1 + $0xde0] sm:$0xff] }
 0x18e   :  { %5896 = vmatpush.bf16.msra.mxu0 %v9098_v55  ;;  %v5670_v17 = vpop.f32.mrf.mxu2  ;;  %v9145_v55 = vld [vmem:[%s11454_s1 + $0xd98] sm:$0xff] }
 0x18f   :  { %5909 = vmatpush.bf16.msra.mxu1 %v9106_v57  ;;  %v5683_v20 = vpop.f32.mrf.mxu3  ;;  %v291_v17 = vld.sshfl [vmem:[#allocation1 + $0x30] sm:$0xff pattern:$0x73625140] }
 0x190   :  { %5922 = vmatpush.bf16.msra.mxu2 %v9114_v58  ;;  %v9153_v58 = vld [vmem:[%s11454_s1 + $0xdd8] sm:$0xff]  ;;  %v290_v20 = vld.sshfl [vmem:[#allocation1 + $0x28] sm:$0xff pattern:$0x73625140]  ;;  %v461_v25 = vpack.c.bf16 %v291_v17, %v291_v17 }
 0x191   :  { %5935 = vmatpush.bf16.msra.mxu3 %v9122_v60 }
 0x192   :  { %5897 = vmatpush.bf16.msra.mxu0 %v9097_v61 }
 0x193   :  { %5910 = vmatpush.bf16.msra.mxu1 %v9105_v62  ;;  %v9128_v62 = vld [vmem:[%s11454_s1 + $0xd10] sm:$0xff] }
 0x194   :  { %5923 = vmatpush.bf16.msra.mxu2 %v9113_v63 }
 0x195   :  { %5936 = vmatpush.bf16.msra.mxu3 %v9121_v2  ;;  %v9152_v2 = vld [vmem:[%s11454_s1 + $0xdd0] sm:$0xff] }
 0x196   :  { %5898 = vmatpush.bf16.msra.mxu0 %v9096_v6  ;;  %v74_v6 = vld [vmem:[%s11453_s0 + $0x19c] sm:$0xff] }
 0x197   :  { %5911 = vmatpush.bf16.msra.mxu1 %v9104_v8  ;;  %v9143_v8 = vld [vmem:[%s11454_s1 + $0xd88] sm:$0xff]  ;;  %295 = vst [vmem:[#allocation1 + $0x2] ss:$4 sm:$0xff] %v74_v6  ;;  %v9166_v6 = vld [vmem:[%s11454_s1 + $0xe40] sm:$0xff] }
 0x198   :  { %5924 = vmatpush.bf16.msra.mxu2 %v9112_v9 }
 0x199   :  { %5937 = vmatpush.bf16.msra.mxu3 %v9120_v10  ;;  %v93_v10 = vld [vmem:[%s11453_s0 + $0x232] sm:$0xff] }
 0x19a   :  { %5899 = vmatpush.bf16.msra.mxu0 %v9095_v11  ;;  %v9151_v11 = vld [vmem:[%s11454_s1 + $0xdc8] sm:$0xff]  ;;  %296 = vst [vmem:[#allocation1 + $0x3] ss:$4 sm:$0xff] %v93_v10  ;;  %v9197_v10 = vld [vmem:[%s11454_s1 + $0xf38] sm:$0xff] }
 0x19b   :  { %5912 = vmatpush.bf16.msra.mxu1 %v9103_v15  ;;  %v9142_v15 = vld [vmem:[%s11454_s1 + $0xd80] sm:$0xff] }
 0x19c   :  { %5925 = vmatpush.bf16.msra.mxu2 %v9111_v16  ;;  %v289_v16 = vld.sshfl [vmem:[#allocation1 + $0x20] sm:$0xff pattern:$0x73625140] }
 0x19d   :  { %5938 = vmatpush.bf16.msra.mxu3 %v9119_v19  ;;  %v9173_v19 = vld [vmem:[%s11454_s1 + $0xe78] sm:$0xff]  ;;  %v459_v24 = vpack.c.bf16 %v289_v16, %v289_v16 }
 0x19e   :  { %5900 = vmatpush.bf16.msra.mxu0 %v9094_v21  ;;  %v5694_v45 = vpop.f32.mrf.mxu0  ;;  %v9181_v21 = vld [vmem:[%s11454_s1 + $0xeb8] sm:$0xff] }
 0x19f   :  { %5913 = vmatpush.bf16.msra.mxu1 %v9102_v22  ;;  %v5695_v46 = vadd.f32 %v5694_v45, %v10769_v5  ;;  %v5707_v48 = vpop.f32.mrf.mxu1  ;;  %v55_v5 = vld [vmem:[%s11453_s0 + $0x106] sm:$0xff]  ;;  %v9161_v45 = vld [vmem:[%s11454_s1 + $0xe18] sm:$0xff] }
 0x1a0   :  { %5926 = vmatpush.bf16.msra.mxu2 %v9110_v23  ;;  %294 = vst [vmem:[#allocation1 + $0x1] ss:$4 sm:$0xff] %v55_v5  ;;  %v9150_v22 = vld [vmem:[%s11454_s1 + $0xdc0] sm:$0xff]  ;;  %v292_v23 = vld.sshfl [vmem:[#allocation1 + $0x38] sm:$0xff pattern:$0x73625140] }
 0x1a1   :  { %5939 = vmatpush.bf16.msra.mxu3 %v9118_v30  ;;  %5901 = vmatmul.bf16.vlgmr.msra.gmra.mxu0 %v455_v32  ;;  %v5708_v51 = vadd.f32 %v5707_v48, %v5695_v46  ;;  %v462_v28 = vpack.c.bf16 %v292_v23, %v292_v23  ;;  %v9172_v30 = vld [vmem:[%s11454_s1 + $0xe70] sm:$0xff]  ;;  %v9169_v46 = vld [vmem:[%s11454_s1 + $0xe58] sm:$0xff]  ;;  %v9158_v5 = vld [vmem:[%s11454_s1 + $0xe00] sm:$0xff] }
 0x1a2   :  { %5945 = vmatpush.bf16.msrb.mxu0 %v9133_v26  ;;  %5914 = vmatmul.bf16.vlgmr.msra.gmra.mxu1 %v456_v35  ;;  %v9189_v26 = vld [vmem:[%s11454_s1 + $0xef8] sm:$0xff]  ;;  %v9188_v32 = vld [vmem:[%s11454_s1 + $0xef0] sm:$0xff]  ;;  %v9179_v35 = vld [vmem:[%s11454_s1 + $0xea8] sm:$0xff] }
 0x1a3   :  { %5958 = vmatpush.bf16.msrb.mxu1 %v9141_v27  ;;  %5927 = vmatmul.bf16.vlgmr.msra.gmra.mxu2 %v457_v33  ;;  %v460_v27 = vpack.c.bf16 %v290_v20, %v290_v20  ;;  %v9163_v33 = vld [vmem:[%s11454_s1 + $0xe28] sm:$0xff]  ;;  %v9212_v23 = vld [vmem:[%s11454_s1 + $0xfb0] sm:$0xff] }
 0x1a4   :  { %5971 = vmatpush.bf16.msrb.mxu2 %v9149_v29  ;;  %5940 = vmatmul.bf16.vlgmr.msra.gmra.mxu3 %v458_v36  ;;  %v9164_v29 = vld [vmem:[%s11454_s1 + $0xe30] sm:$0xff]  ;;  %v9187_v36 = vld [vmem:[%s11454_s1 + $0xee8] sm:$0xff] }
 0x1a5   :  { %5984 = vmatpush.bf16.msrb.mxu3 %v9157_v34  ;;  %v9171_v34 = vld [vmem:[%s11454_s1 + $0xe68] sm:$0xff] }
 0x1a6   :  { %5946 = vmatpush.bf16.msrb.mxu0 %v9132_v37  ;;  %v5720_v56 = vpop.f32.mrf.mxu2  ;;  %v5696_v60 = vpop.f32.mrf.mxu0 }
 0x1a7   :  { %5959 = vmatpush.bf16.msrb.mxu1 %v9140_v38  ;;  %v5721_v57 = vadd.f32 %v5720_v56, %v5708_v51  ;;  %v5733_v59 = vpop.f32.mrf.mxu3  ;;  %v5709_v63 = vpop.f32.mrf.mxu1  ;;  %v9168_v56 = vld [vmem:[%s11454_s1 + $0xe50] sm:$0xff]  ;;  %v37_v60 = vld [vmem:[%s11453_s0 + $0x78] sm:$0xff] }
 0x1a8   :  { %5972 = vmatpush.bf16.msrb.mxu2 %v9148_v39  ;;  %v9162_v39 = vld [vmem:[%s11454_s1 + $0xe20] sm:$0xff]  ;;  %v9167_v63 = vld [vmem:[%s11454_s1 + $0xe48] sm:$0xff]  ;;  %297 = vst [vmem:[#allocation1 + $0x20] ss:$4 sm:$0xff] %v37_v60 }
 0x1a9   :  { %5985 = vmatpush.bf16.msrb.mxu3 %v9156_v40  ;;  %v10880_v61 = vadd.f32 %v5733_v59, %v5721_v57  ;;  %v9176_v57 = vld [vmem:[%s11454_s1 + $0xe90] sm:$0xff]  ;;  %v9159_v59 = vld [vmem:[%s11454_s1 + $0xe08] sm:$0xff] }
 0x1aa   :  { %5947 = vmatpush.bf16.msrb.mxu0 %v9131_v41  ;;  %v9170_v41 = vld [vmem:[%s11454_s1 + $0xe60] sm:$0xff] }
 0x1ab   :  { %5960 = vmatpush.bf16.msrb.mxu1 %v9139_v42  ;;  %v9178_v42 = vld [vmem:[%s11454_s1 + $0xea0] sm:$0xff] }
 0x1ac   :  { %5973 = vmatpush.bf16.msrb.mxu2 %v9147_v43 }
 0x1ad   :  { %5986 = vmatpush.bf16.msrb.mxu3 %v9155_v44  ;;  %v9186_v44 = vld [vmem:[%s11454_s1 + $0xee0] sm:$0xff] }
 0x1ae   :  { %5948 = vmatpush.bf16.msrb.mxu0 %v9130_v47  ;;  %v5722_v9 = vpop.f32.mrf.mxu2  ;;  %v9177_v47 = vld [vmem:[%s11454_s1 + $0xe98] sm:$0xff] }
 0x1af   :  { %5961 = vmatpush.bf16.msrb.mxu1 %v9138_v49  ;;  %v5735_v12 = vpop.f32.mrf.mxu3  ;;  %v303_v9 = vld.sshfl [vmem:[#allocation1 + $0x10] sm:$0xff pattern:$0x73625140] }
 0x1b0   :  { %5974 = vmatpush.bf16.msrb.mxu2 %v9146_v50  ;;  %v9185_v50 = vld [vmem:[%s11454_s1 + $0xed8] sm:$0xff]  ;;  %v302_v12 = vld.sshfl [vmem:[#allocation1 + $0x8] sm:$0xff pattern:$0x73625140]  ;;  %v465_v17 = vpack.c.bf16 %v303_v9, %v303_v9 }
 0x1b1   :  { %5987 = vmatpush.bf16.msrb.mxu3 %v9154_v52 }
 0x1b2   :  { %5949 = vmatpush.bf16.msrb.mxu0 %v9129_v53 }
 0x1b3   :  { %5962 = vmatpush.bf16.msrb.mxu1 %v9137_v54  ;;  %v9160_v54 = vld [vmem:[%s11454_s1 + $0xe10] sm:$0xff] }
 0x1b4   :  { %5975 = vmatpush.bf16.msrb.mxu2 %v9145_v55 }
 0x1b5   :  { %5988 = vmatpush.bf16.msrb.mxu3 %v9153_v58  ;;  %v9184_v58 = vld [vmem:[%s11454_s1 + $0xed0] sm:$0xff] }
 0x1b6   :  { %5950 = vmatpush.bf16.msrb.mxu0 %v9128_v62  ;;  %v75_v62 = vld [vmem:[%s11453_s0 + $0x1a4] sm:$0xff] }
 0x1b7   :  { %5963 = vmatpush.bf16.msrb.mxu1 %v9136_v0  ;;  %v9175_v0 = vld [vmem:[%s11454_s1 + $0xe88] sm:$0xff]  ;;  %299 = vst [vmem:[#allocation1 + $0x22] ss:$4 sm:$0xff] %v75_v62  ;;  %v9198_v62 = vld [vmem:[%s11454_s1 + $0xf40] sm:$0xff] }
 0x1b8   :  { %5976 = vmatpush.bf16.msrb.mxu2 %v9144_v1 }
 0x1b9   :  { %5989 = vmatpush.bf16.msrb.mxu3 %v9152_v2  ;;  %v94_v2 = vld [vmem:[%s11453_s0 + $0x23a] sm:$0xff] }
 0x1ba   :  { %5951 = vmatpush.bf16.msrb.mxu0 %v9127_v3  ;;  %v9183_v3 = vld [vmem:[%s11454_s1 + $0xec8] sm:$0xff]  ;;  %300 = vst [vmem:[#allocation1 + $0x23] ss:$4 sm:$0xff] %v94_v2  ;;  %v9229_v2 = vld [vmem:[%s11454_s1 + $0x1038] sm:$0xff] }
 0x1bb   :  { %5964 = vmatpush.bf16.msrb.mxu1 %v9135_v7  ;;  %v9174_v7 = vld [vmem:[%s11454_s1 + $0xe80] sm:$0xff] }
 0x1bc   :  { %5977 = vmatpush.bf16.msrb.mxu2 %v9143_v8  ;;  %v301_v8 = vld.sshfl [vmem:[#allocation1] sm:$0xff pattern:$0x73625140] }
 0x1bd   :  { %5990 = vmatpush.bf16.msrb.mxu3 %v9151_v11  ;;  %v9205_v11 = vld [vmem:[%s11454_s1 + $0xf78] sm:$0xff]  ;;  %v463_v16 = vpack.c.bf16 %v301_v8, %v301_v8 }
 0x1be   :  { %5952 = vmatpush.bf16.msrb.mxu0 %v9126_v13  ;;  %v5746_v37 = vpop.f32.mrf.mxu0  ;;  %v9213_v13 = vld [vmem:[%s11454_s1 + $0xfb8] sm:$0xff] }
 0x1bf   :  { %5965 = vmatpush.bf16.msrb.mxu1 %v9134_v14  ;;  %v5747_v38 = vadd.f32 %v5746_v37, %v10880_v61  ;;  %v5759_v40 = vpop.f32.mrf.mxu1  ;;  %v56_v61 = vld [vmem:[%s11453_s0 + $0x10e] sm:$0xff]  ;;  %v9182_v14 = vld [vmem:[%s11454_s1 + $0xec0] sm:$0xff]  ;;  %v9193_v37 = vld [vmem:[%s11454_s1 + $0xf18] sm:$0xff] }
 0x1c0   :  { %5978 = vmatpush.bf16.msrb.mxu2 %v9142_v15  ;;  %298 = vst [vmem:[#allocation1 + $0x21] ss:$4 sm:$0xff] %v56_v61  ;;  %v304_v15 = vld.sshfl [vmem:[#allocation1 + $0x18] sm:$0xff pattern:$0x73625140]  ;;  %v9190_v61 = vld [vmem:[%s11454_s1 + $0xf00] sm:$0xff] }
 0x1c1   :  { %5991 = vmatpush.bf16.msrb.mxu3 %v9150_v22  ;;  %5953 = vmatmul.bf16.vlgmr.msrb.gmra.mxu0 %v459_v24  ;;  %v5760_v43 = vadd.f32 %v5759_v40, %v5747_v38  ;;  %v466_v20 = vpack.c.bf16 %v304_v15, %v304_v15  ;;  %v9204_v22 = vld [vmem:[%s11454_s1 + $0xf70] sm:$0xff]  ;;  %v9201_v38 = vld [vmem:[%s11454_s1 + $0xf58] sm:$0xff] }
 0x1c2   :  { %5997 = vmatpush.bf16.msra.mxu0 %v9165_v18  ;;  %5966 = vmatmul.bf16.vlgmr.msrb.gmra.mxu1 %v460_v27  ;;  %v9221_v18 = vld [vmem:[%s11454_s1 + $0xff8] sm:$0xff]  ;;  %v9220_v24 = vld [vmem:[%s11454_s1 + $0xff0] sm:$0xff]  ;;  %v9211_v27 = vld [vmem:[%s11454_s1 + $0xfa8] sm:$0xff] }
 0x1c3   :  { %6010 = vmatpush.bf16.msra.mxu1 %v9173_v19  ;;  %5979 = vmatmul.bf16.vlgmr.msrb.gmra.mxu2 %v461_v25  ;;  %v464_v19 = vpack.c.bf16 %v302_v12, %v302_v12  ;;  %v9195_v25 = vld [vmem:[%s11454_s1 + $0xf28] sm:$0xff]  ;;  %v9244_v15 = vld [vmem:[%s11454_s1 + $0x10b0] sm:$0xff] }
 0x1c4   :  { %6023 = vmatpush.bf16.msra.mxu2 %v9181_v21  ;;  %5992 = vmatmul.bf16.vlgmr.msrb.gmra.mxu3 %v462_v28  ;;  %v9196_v21 = vld [vmem:[%s11454_s1 + $0xf30] sm:$0xff]  ;;  %v9219_v28 = vld [vmem:[%s11454_s1 + $0xfe8] sm:$0xff] }
 0x1c5   :  { %6036 = vmatpush.bf16.msra.mxu3 %v9189_v26  ;;  %v9203_v26 = vld [vmem:[%s11454_s1 + $0xf68] sm:$0xff] }
 0x1c6   :  { %5998 = vmatpush.bf16.msra.mxu0 %v9164_v29  ;;  %v5772_v48 = vpop.f32.mrf.mxu2  ;;  %v5748_v52 = vpop.f32.mrf.mxu0 }
 0x1c7   :  { %6011 = vmatpush.bf16.msra.mxu1 %v9172_v30  ;;  %v5773_v49 = vadd.f32 %v5772_v48, %v5760_v43  ;;  %v5785_v51 = vpop.f32.mrf.mxu3  ;;  %v5761_v55 = vpop.f32.mrf.mxu1  ;;  %v9200_v48 = vld [vmem:[%s11454_s1 + $0xf50] sm:$0xff]  ;;  %v38_v52 = vld [vmem:[%s11453_s0 + $0x80] sm:$0xff] }
 0x1c8   :  { %6024 = vmatpush.bf16.msra.mxu2 %v9180_v31  ;;  %v9194_v31 = vld [vmem:[%s11454_s1 + $0xf20] sm:$0xff]  ;;  %v9199_v55 = vld [vmem:[%s11454_s1 + $0xf48] sm:$0xff]  ;;  %309 = vst [vmem:[#allocation1] ss:$4 sm:$0xff] %v38_v52 }
 0x1c9   :  { %6037 = vmatpush.bf16.msra.mxu3 %v9188_v32  ;;  %v10991_v53 = vadd.f32 %v5785_v51, %v5773_v49  ;;  %v9208_v49 = vld [vmem:[%s11454_s1 + $0xf90] sm:$0xff]  ;;  %v9191_v51 = vld [vmem:[%s11454_s1 + $0xf08] sm:$0xff] }
 0x1ca   :  { %5999 = vmatpush.bf16.msra.mxu0 %v9163_v33  ;;  %v9202_v33 = vld [vmem:[%s11454_s1 + $0xf60] sm:$0xff] }
 0x1cb   :  { %6012 = vmatpush.bf16.msra.mxu1 %v9171_v34  ;;  %v9210_v34 = vld [vmem:[%s11454_s1 + $0xfa0] sm:$0xff] }
 0x1cc   :  { %6025 = vmatpush.bf16.msra.mxu2 %v9179_v35 }
 0x1cd   :  { %6038 = vmatpush.bf16.msra.mxu3 %v9187_v36  ;;  %v9218_v36 = vld [vmem:[%s11454_s1 + $0xfe0] sm:$0xff] }
 0x1ce   :  { %6000 = vmatpush.bf16.msra.mxu0 %v9162_v39  ;;  %v5774_v1 = vpop.f32.mrf.mxu2  ;;  %v9209_v39 = vld [vmem:[%s11454_s1 + $0xf98] sm:$0xff] }
 0x1cf   :  { %6013 = vmatpush.bf16.msra.mxu1 %v9170_v41  ;;  %v5787_v4 = vpop.f32.mrf.mxu3  ;;  %v307_v1 = vld.sshfl [vmem:[#allocation1 + $0x30] sm:$0xff pattern:$0x73625140] }
 0x1d0   :  { %6026 = vmatpush.bf16.msra.mxu2 %v9178_v42  ;;  %v9217_v42 = vld [vmem:[%s11454_s1 + $0xfd8] sm:$0xff]  ;;  %v306_v4 = vld.sshfl [vmem:[#allocation1 + $0x28] sm:$0xff pattern:$0x73625140]  ;;  %v469_v9 = vpack.c.bf16 %v307_v1, %v307_v1 }
 0x1d1   :  { %6039 = vmatpush.bf16.msra.mxu3 %v9186_v44 }
 0x1d2   :  { %6001 = vmatpush.bf16.msra.mxu0 %v9161_v45 }
 0x1d3   :  { %6014 = vmatpush.bf16.msra.mxu1 %v9169_v46  ;;  %v9192_v46 = vld [vmem:[%s11454_s1 + $0xf10] sm:$0xff] }
 0x1d4   :  { %6027 = vmatpush.bf16.msra.mxu2 %v9177_v47 }
 0x1d5   :  { %6040 = vmatpush.bf16.msra.mxu3 %v9185_v50  ;;  %v9216_v50 = vld [vmem:[%s11454_s1 + $0xfd0] sm:$0xff] }
 0x1d6   :  { %6002 = vmatpush.bf16.msra.mxu0 %v9160_v54  ;;  %v76_v54 = vld [vmem:[%s11453_s0 + $0x1ac] sm:$0xff] }
 0x1d7   :  { %6015 = vmatpush.bf16.msra.mxu1 %v9168_v56  ;;  %v9207_v56 = vld [vmem:[%s11454_s1 + $0xf88] sm:$0xff]  ;;  %311 = vst [vmem:[#allocation1 + $0x2] ss:$4 sm:$0xff] %v76_v54  ;;  %v9230_v54 = vld [vmem:[%s11454_s1 + $0x1040] sm:$0xff] }
 0x1d8   :  { %6028 = vmatpush.bf16.msra.mxu2 %v9176_v57 }
 0x1d9   :  { %6041 = vmatpush.bf16.msra.mxu3 %v9184_v58  ;;  %v95_v58 = vld [vmem:[%s11453_s0 + $0x242] sm:$0xff] }
 0x1da   :  { %6003 = vmatpush.bf16.msra.mxu0 %v9159_v59  ;;  %v9215_v59 = vld [vmem:[%s11454_s1 + $0xfc8] sm:$0xff]  ;;  %312 = vst [vmem:[#allocation1 + $0x3] ss:$4 sm:$0xff] %v95_v58  ;;  %v9261_v58 = vld [vmem:[%s11454_s1 + $0x1138] sm:$0xff] }
 0x1db   :  { %6016 = vmatpush.bf16.msra.mxu1 %v9167_v63  ;;  %v9206_v63 = vld [vmem:[%s11454_s1 + $0xf80] sm:$0xff] }
 0x1dc   :  { %6029 = vmatpush.bf16.msra.mxu2 %v9175_v0  ;;  %v305_v0 = vld.sshfl [vmem:[#allocation1 + $0x20] sm:$0xff pattern:$0x73625140] }
 0x1dd   :  { %6042 = vmatpush.bf16.msra.mxu3 %v9183_v3  ;;  %v9237_v3 = vld [vmem:[%s11454_s1 + $0x1078] sm:$0xff]  ;;  %v467_v8 = vpack.c.bf16 %v305_v0, %v305_v0 }
 0x1de   :  { %6004 = vmatpush.bf16.msra.mxu0 %v9158_v5  ;;  %v5798_v29 = vpop.f32.mrf.mxu0  ;;  %v9245_v5 = vld [vmem:[%s11454_s1 + $0x10b8] sm:$0xff] }
 0x1df   :  { %6017 = vmatpush.bf16.msra.mxu1 %v9166_v6  ;;  %v5799_v30 = vadd.f32 %v5798_v29, %v10991_v53  ;;  %v5811_v32 = vpop.f32.mrf.mxu1  ;;  %v57_v53 = vld [vmem:[%s11453_s0 + $0x116] sm:$0xff]  ;;  %v9214_v6 = vld [vmem:[%s11454_s1 + $0xfc0] sm:$0xff] }
 0x1e0   :  { %6030 = vmatpush.bf16.msra.mxu2 %v9174_v7  ;;  %310 = vst [vmem:[#allocation1 + $0x1] ss:$4 sm:$0xff] %v57_v53  ;;  %v308_v7 = vld.sshfl [vmem:[#allocation1 + $0x38] sm:$0xff pattern:$0x73625140]  ;;  %v9222_v53 = vld [vmem:[%s11454_s1 + $0x1000] sm:$0xff] }
 0x1e1   :  { %6043 = vmatpush.bf16.msra.mxu3 %v9182_v14  ;;  %6005 = vmatmul.bf16.vlgmr.msra.gmra.mxu0 %v463_v16  ;;  %v5812_v35 = vadd.f32 %v5811_v32, %v5799_v30  ;;  %v470_v12 = vpack.c.bf16 %v308_v7, %v308_v7  ;;  %v9236_v14 = vld [vmem:[%s11454_s1 + $0x1070] sm:$0xff]  ;;  %v9225_v29 = vld [vmem:[%s11454_s1 + $0x1018] sm:$0xff] }
 0x1e2   :  { %6049 = vmatpush.bf16.msrb.mxu0 %v9197_v10  ;;  %6018 = vmatmul.bf16.vlgmr.msra.gmra.mxu1 %v464_v19  ;;  %v9253_v10 = vld [vmem:[%s11454_s1 + $0x10f8] sm:$0xff]  ;;  %v9252_v16 = vld [vmem:[%s11454_s1 + $0x10f0] sm:$0xff]  ;;  %v9243_v19 = vld [vmem:[%s11454_s1 + $0x10a8] sm:$0xff] }
 0x1e3   :  { %6062 = vmatpush.bf16.msrb.mxu1 %v9205_v11  ;;  %6031 = vmatmul.bf16.vlgmr.msra.gmra.mxu2 %v465_v17  ;;  %v468_v11 = vpack.c.bf16 %v306_v4, %v306_v4  ;;  %v9227_v17 = vld [vmem:[%s11454_s1 + $0x1028] sm:$0xff]  ;;  %v9233_v30 = vld [vmem:[%s11454_s1 + $0x1058] sm:$0xff]  ;;  %v9276_v7 = vld [vmem:[%s11454_s1 + $0x11b0] sm:$0xff] }
 0x1e4   :  { %6075 = vmatpush.bf16.msrb.mxu2 %v9213_v13  ;;  %6044 = vmatmul.bf16.vlgmr.msra.gmra.mxu3 %v466_v20  ;;  %v9228_v13 = vld [vmem:[%s11454_s1 + $0x1030] sm:$0xff]  ;;  %v9251_v20 = vld [vmem:[%s11454_s1 + $0x10e8] sm:$0xff] }
 0x1e5   :  { %6088 = vmatpush.bf16.msrb.mxu3 %v9221_v18  ;;  %v9235_v18 = vld [vmem:[%s11454_s1 + $0x1068] sm:$0xff] }
 0x1e6   :  { %6050 = vmatpush.bf16.msrb.mxu0 %v9196_v21  ;;  %v5824_v40 = vpop.f32.mrf.mxu2  ;;  %v5800_v44 = vpop.f32.mrf.mxu0 }
 0x1e7   :  { %6063 = vmatpush.bf16.msrb.mxu1 %v9204_v22  ;;  %v5825_v41 = vadd.f32 %v5824_v40, %v5812_v35  ;;  %v5837_v43 = vpop.f32.mrf.mxu3  ;;  %v5813_v47 = vpop.f32.mrf.mxu1  ;;  %v9232_v40 = vld [vmem:[%s11454_s1 + $0x1050] sm:$0xff]  ;;  %v58_v44 = vld [vmem:[%s11453_s0 + $0x11e] sm:$0xff] }
 0x1e8   :  { %6076 = vmatpush.bf16.msrb.mxu2 %v9212_v23  ;;  %v9226_v23 = vld [vmem:[%s11454_s1 + $0x1020] sm:$0xff]  ;;  %v96_v47 = vld [vmem:[%s11453_s0 + $0x24a] sm:$0xff]  ;;  %314 = vst [vmem:[#allocation1 + $0x21] ss:$4 sm:$0xff] %v58_v44 }
 0x1e9   :  { %6089 = vmatpush.bf16.msrb.mxu3 %v9220_v24  ;;  %v11102_v45 = vadd.f32 %v5837_v43, %v5825_v41  ;;  %v9240_v41 = vld [vmem:[%s11454_s1 + $0x1090] sm:$0xff]  ;;  %v39_v43 = vld [vmem:[%s11453_s0 + $0x88] sm:$0xff]  ;;  %316 = vst [vmem:[#allocation1 + $0x23] ss:$4 sm:$0xff] %v96_v47  ;;  %v9254_v44 = vld [vmem:[%s11454_s1 + $0x1100] sm:$0xff] }
 0x1ea   :  { %6051 = vmatpush.bf16.msrb.mxu0 %v9195_v25  ;;  %v9234_v25 = vld [vmem:[%s11454_s1 + $0x1060] sm:$0xff]  ;;  %313 = vst [vmem:[#allocation1 + $0x20] ss:$4 sm:$0xff] %v39_v43  ;;  %v9279_v43 = vld [vmem:[%s11454_s1 + $0x11c8] sm:$0xff] }
 0x1eb   :  { %6064 = vmatpush.bf16.msrb.mxu1 %v9203_v26  ;;  %v9242_v26 = vld [vmem:[%s11454_s1 + $0x10a0] sm:$0xff] }
 0x1ec   :  { %6077 = vmatpush.bf16.msrb.mxu2 %v9211_v27 }
 0x1ed   :  { %6090 = vmatpush.bf16.msrb.mxu3 %v9219_v28  ;;  %v9250_v28 = vld [vmem:[%s11454_s1 + $0x10e0] sm:$0xff] }
 0x1ee   :  { %6052 = vmatpush.bf16.msrb.mxu0 %v9194_v31  ;;  %v5826_v57 = vpop.f32.mrf.mxu2  ;;  %v9241_v31 = vld [vmem:[%s11454_s1 + $0x1098] sm:$0xff] }
 0x1ef   :  { %6065 = vmatpush.bf16.msrb.mxu1 %v9202_v33  ;;  %v5839_v60 = vpop.f32.mrf.mxu3  ;;  %v319_v57 = vld.sshfl [vmem:[#allocation1 + $0x10] sm:$0xff pattern:$0x73625140] }
 0x1f0   :  { %6078 = vmatpush.bf16.msrb.mxu2 %v9210_v34  ;;  %v9249_v34 = vld [vmem:[%s11454_s1 + $0x10d8] sm:$0xff]  ;;  %v318_v60 = vld.sshfl [vmem:[#allocation1 + $0x8] sm:$0xff pattern:$0x73625140]  ;;  %v473_v1 = vpack.c.bf16 %v319_v57, %v319_v57 }
 0x1f1   :  { %6091 = vmatpush.bf16.msrb.mxu3 %v9218_v36 }
 0x1f2   :  { %6053 = vmatpush.bf16.msrb.mxu0 %v9193_v37 }
 0x1f3   :  { %6066 = vmatpush.bf16.msrb.mxu1 %v9201_v38  ;;  %v9224_v38 = vld [vmem:[%s11454_s1 + $0x1010] sm:$0xff] }
 0x1f4   :  { %6079 = vmatpush.bf16.msrb.mxu2 %v9209_v39 }
 0x1f5   :  { %6092 = vmatpush.bf16.msrb.mxu3 %v9217_v42  ;;  %v9248_v42 = vld [vmem:[%s11454_s1 + $0x10d0] sm:$0xff] }
 0x1f6   :  { %6054 = vmatpush.bf16.msrb.mxu0 %v9192_v46  ;;  %v77_v46 = vld [vmem:[%s11453_s0 + $0x1b4] sm:$0xff] }
 0x1f7   :  { %6067 = vmatpush.bf16.msrb.mxu1 %v9200_v48  ;;  %v9231_v48 = vld [vmem:[%s11454_s1 + $0x1048] sm:$0xff]  ;;  %315 = vst [vmem:[#allocation1 + $0x22] ss:$4 sm:$0xff] %v77_v46  ;;  %v9306_v46 = vld [vmem:[%s11454_s1 + $0x12a0] sm:$0x10] }
 0x1f8   :  { %6080 = vmatpush.bf16.msrb.mxu2 %v9208_v49  ;;  %v9239_v49 = vld [vmem:[%s11454_s1 + $0x1088] sm:$0xff] }
 0x1f9   :  { %6093 = vmatpush.bf16.msrb.mxu3 %v9216_v50 }
 0x1fa   :  { %6055 = vmatpush.bf16.msrb.mxu0 %v9191_v51  ;;  %v9247_v51 = vld [vmem:[%s11454_s1 + $0x10c8] sm:$0xff] }
 0x1fb   :  { %6068 = vmatpush.bf16.msrb.mxu1 %v9199_v55  ;;  %v9238_v55 = vld [vmem:[%s11454_s1 + $0x1080] sm:$0xff] }
 0x1fc   :  { %6081 = vmatpush.bf16.msrb.mxu2 %v9207_v56  ;;  %v317_v56 = vld.sshfl [vmem:[#allocation1] sm:$0xff pattern:$0x73625140] }
 0x1fd   :  { %6094 = vmatpush.bf16.msrb.mxu3 %v9215_v59  ;;  %v9269_v59 = vld [vmem:[%s11454_s1 + $0x1178] sm:$0xff]  ;;  %v471_v0 = vpack.c.bf16 %v317_v56, %v317_v56  ;;  %v9278_v56 = vld [vmem:[%s11454_s1 + $0x11c0] sm:$0xff] }
 0x1fe   :  { %6056 = vmatpush.bf16.msrb.mxu0 %v9190_v61  ;;  %v5850_v21 = vpop.f32.mrf.mxu0  ;;  %v9277_v61 = vld [vmem:[%s11454_s1 + $0x11b8] sm:$0xff] }
 0x1ff   :  { %6069 = vmatpush.bf16.msrb.mxu1 %v9198_v62  ;;  %v5851_v22 = vadd.f32 %v5850_v21, %v11102_v45  ;;  %v5863_v24 = vpop.f32.mrf.mxu1  ;;  %v9223_v45 = vld [vmem:[%s11454_s1 + $0x1008] sm:$0xff]  ;;  %v9246_v62 = vld [vmem:[%s11454_s1 + $0x10c0] sm:$0xff] }
 0x200   :  { %6082 = vmatpush.bf16.msrb.mxu2 %v9206_v63  ;;  %v320_v63 = vld.sshfl [vmem:[#allocation1 + $0x18] sm:$0xff pattern:$0x73625140]  ;;  %v59_v21 = vld [vmem:[%s11453_s0 + $0x126] sm:$0x3f] }
 0x201   :  { %6095 = vmatpush.bf16.msrb.mxu3 %v9214_v6  ;;  %6057 = vmatmul.bf16.vlgmr.msrb.gmra.mxu0 %v467_v8  ;;  %v5864_v27 = vadd.f32 %v5863_v24, %v5851_v22  ;;  %v474_v4 = vpack.c.bf16 %v320_v63, %v320_v63  ;;  %v9268_v6 = vld [vmem:[%s11454_s1 + $0x1170] sm:$0xff]  ;;  %v78_v22 = vld [vmem:[%s11453_s0 + $0x1bc] sm:$0x3f]  ;;  %326 = vst [vmem:[#allocation1 + $0x1] ss:$4 sm:$0xff] %v59_v21 }
 0x202   :  { %6101 = vmatpush.bf16.msra.mxu0 %v9229_v2  ;;  %6070 = vmatmul.bf16.vlgmr.msrb.gmra.mxu1 %v468_v11  ;;  %v9285_v2 = vld [vmem:[%s11454_s1 + $0x11f8] sm:$0xff]  ;;  %v9284_v8 = vld [vmem:[%s11454_s1 + $0x11f0] sm:$0xff]  ;;  %v9275_v11 = vld [vmem:[%s11454_s1 + $0x11a8] sm:$0xff]  ;;  %327 = vst [vmem:[#allocation1 + $0x2] ss:$4 sm:$0xff] %v78_v22 }
 0x203   :  { %6114 = vmatpush.bf16.msra.mxu1 %v9237_v3  ;;  %6083 = vmatmul.bf16.vlgmr.msrb.gmra.mxu2 %v469_v9  ;;  %v472_v3 = vpack.c.bf16 %v318_v60, %v318_v60  ;;  %v9259_v9 = vld [vmem:[%s11454_s1 + $0x1128] sm:$0xff]  ;;  %v97_v24 = vld [vmem:[%s11453_s0 + $0x252] sm:$0x3f] }
 0x204   :  { %6127 = vmatpush.bf16.msra.mxu2 %v9245_v5  ;;  %6096 = vmatmul.bf16.vlgmr.msrb.gmra.mxu3 %v470_v12  ;;  %v9260_v5 = vld [vmem:[%s11454_s1 + $0x1130] sm:$0xff]  ;;  %v9283_v12 = vld [vmem:[%s11454_s1 + $0x11e8] sm:$0xff]  ;;  %328 = vst [vmem:[#allocation1 + $0x3] ss:$4 sm:$0xff] %v97_v24 }
 0x205   :  { %6140 = vmatpush.bf16.msra.mxu3 %v9253_v10  ;;  %v9267_v10 = vld [vmem:[%s11454_s1 + $0x1168] sm:$0xff]  ;;  %v9292_v63 = vld [vmem:[%s11454_s1 + $0x1230] sm:$0xff] }
 0x206   :  { %6102 = vmatpush.bf16.msra.mxu0 %v9228_v13  ;;  %v5876_v32 = vpop.f32.mrf.mxu2  ;;  %v5852_v36 = vpop.f32.mrf.mxu0  ;;  %v9288_v21 = vld [vmem:[%s11454_s1 + $0x1210] sm:$0xff] }
 0x207   :  { %6115 = vmatpush.bf16.msra.mxu1 %v9236_v14  ;;  %v5877_v33 = vadd.f32 %v5876_v32, %v5864_v27  ;;  %v5889_v35 = vpop.f32.mrf.mxu3  ;;  %v5865_v39 = vpop.f32.mrf.mxu1  ;;  %v9273_v27 = vld [vmem:[%s11454_s1 + $0x1198] sm:$0xff]  ;;  %v9264_v36 = vld [vmem:[%s11454_s1 + $0x1150] sm:$0xff] }
 0x208   :  { %6128 = vmatpush.bf16.msra.mxu2 %v9244_v15  ;;  %v9258_v15 = vld [vmem:[%s11454_s1 + $0x1120] sm:$0xff]  ;;  %v9255_v39 = vld [vmem:[%s11454_s1 + $0x1108] sm:$0xff] }
 0x209   :  { %6141 = vmatpush.bf16.msra.mxu3 %v9252_v16  ;;  %v11213_v37 = vadd.f32 %v5889_v35, %v5877_v33 }
 0x20a   :  { %6103 = vmatpush.bf16.msra.mxu0 %v9227_v17  ;;  %v9266_v17 = vld [vmem:[%s11454_s1 + $0x1160] sm:$0xff] }
 0x20b   :  { %6116 = vmatpush.bf16.msra.mxu1 %v9235_v18  ;;  %v9274_v18 = vld [vmem:[%s11454_s1 + $0x11a0] sm:$0xff] }
 0x20c   :  { %6129 = vmatpush.bf16.msra.mxu2 %v9243_v19  ;;  %v40_v19 = vld [vmem:[%s11453_s0 + $0x90] sm:$0x3f] }
 0x20d   :  { %6142 = vmatpush.bf16.msra.mxu3 %v9251_v20  ;;  %325 = vst [vmem:[#allocation1] ss:$4 sm:$0xff] %v40_v19 }
 0x20e   :  { %6104 = vmatpush.bf16.msra.mxu0 %v9226_v23  ;;  %v5878_v50 = vpop.f32.mrf.mxu2  ;;  %v9282_v23 = vld [vmem:[%s11454_s1 + $0x11e0] sm:$0xff] }
 0x20f   :  { %6117 = vmatpush.bf16.msra.mxu1 %v9234_v25  ;;  %v5891_v52 = vpop.f32.mrf.mxu3  ;;  %v9257_v25 = vld [vmem:[%s11454_s1 + $0x1118] sm:$0xff]  ;;  %v321_v50 = vld.sshfl [vmem:[#allocation1 + $0x20] sm:$0xff pattern:$0x73625140] }
 0x210   :  { %6130 = vmatpush.bf16.msra.mxu2 %v9242_v26  ;;  %v9265_v26 = vld [vmem:[%s11454_s1 + $0x1158] sm:$0xff]  ;;  %v322_v52 = vld.sshfl [vmem:[#allocation1 + $0x28] sm:$0xff pattern:$0x73625140]  ;;  %v475_v57 = vpack.c.bf16 %v321_v50, %v321_v50 }
 0x211   :  { %6143 = vmatpush.bf16.msra.mxu3 %v9250_v28  ;;  %v476_v60 = vpack.c.bf16 %v322_v52, %v322_v52 }
 0x212   :  { %6105 = vmatpush.bf16.msra.mxu0 %v9225_v29 }
 0x213   :  { %6118 = vmatpush.bf16.msra.mxu1 %v9233_v30  ;;  %v9281_v30 = vld [vmem:[%s11454_s1 + $0x11d8] sm:$0xff] }
 0x214   :  { %6131 = vmatpush.bf16.msra.mxu2 %v9241_v31 }
 0x215   :  { %6144 = vmatpush.bf16.msra.mxu3 %v9249_v34  ;;  %v9256_v34 = vld [vmem:[%s11454_s1 + $0x1110] sm:$0xff] }
 0x216   :  { %6106 = vmatpush.bf16.msra.mxu0 %v9224_v38  ;;  %v9280_v38 = vld [vmem:[%s11454_s1 + $0x11d0] sm:$0xff] }
 0x217   :  { %6119 = vmatpush.bf16.msra.mxu1 %v9232_v40  ;;  %v9263_v40 = vld [vmem:[%s11454_s1 + $0x1148] sm:$0xff] }
 0x218   :  { %6132 = vmatpush.bf16.msra.mxu2 %v9240_v41  ;;  %v9271_v41 = vld [vmem:[%s11454_s1 + $0x1188] sm:$0xff] }
 0x219   :  { %6145 = vmatpush.bf16.msra.mxu3 %v9248_v42 }
 0x21a   :  { %6107 = vmatpush.bf16.msra.mxu0 %v9223_v45  ;;  %v8698_v45 = vld [vmem:[%s11454_s1 + $0x12a0] sm:$0xf] }
 0x21b   :  { %6120 = vmatpush.bf16.msra.mxu1 %v9231_v48  ;;  %v9262_v48 = vld [vmem:[%s11454_s1 + $0x1140] sm:$0xff] }
 0x21c   :  { %6133 = vmatpush.bf16.msra.mxu2 %v9239_v49  ;;  %v9270_v49 = vld [vmem:[%s11454_s1 + $0x1180] sm:$0xff] }
 0x21d   :  { %6146 = vmatpush.bf16.msra.mxu3 %v9247_v51  ;;  %v323_v51 = vld.sshfl [vmem:[#allocation1 + $0x30] sm:$0xff pattern:$0x73625140] }
 0x21e   :  { %6108 = vmatpush.bf16.msra.mxu0 %v9222_v53  ;;  %v5902_v13 = vpop.f32.mrf.mxu0  ;;  %v9293_v53 = vld [vmem:[%s11454_s1 + $0x1238] sm:$0xff] }
 0x21f   :  { %6121 = vmatpush.bf16.msra.mxu1 %v9230_v54  ;;  %v5903_v14 = vadd.f32 %v5902_v13, %v11213_v37  ;;  %v5915_v16 = vpop.f32.mrf.mxu1  ;;  %v9272_v37 = vld [vmem:[%s11454_s1 + $0x1190] sm:$0xff]  ;;  %v9301_v54 = vld [vmem:[%s11454_s1 + $0x1278] sm:$0xff] }
 0x220   :  { %6134 = vmatpush.bf16.msra.mxu2 %v9238_v55  ;;  %v8699_v55 = vor.u32 %v9306_v46, %v8698_v45  ;;  %v9297_v13 = vld [vmem:[%s11454_s1 + $0x1258] sm:$0xff] }
 0x221   :  { %6147 = vmatpush.bf16.msra.mxu3 %v9246_v62  ;;  %6109 = vmatmul.bf16.vlgmr.msra.gmra.mxu0 %v471_v0  ;;  %v5916_v20 = vadd.f32 %v5915_v16, %v5903_v14  ;;  %v9300_v0 = vld [vmem:[%s11454_s1 + $0x1270] sm:$0xff]  ;;  %v9302_v16 = vld [vmem:[%s11454_s1 + $0x1280] sm:$0xff] }
 0x222   :  { %6153 = vmatpush.bf16.msrb.mxu0 %v9261_v58  ;;  %6122 = vmatmul.bf16.vlgmr.msra.gmra.mxu1 %v472_v3  ;;  %v324_v58 = vld.sshfl [vmem:[#allocation1 + $0x38] sm:$0xff pattern:$0x73625140]  ;;  %v9299_v3 = vld [vmem:[%s11454_s1 + $0x1268] sm:$0xff] }
 0x223   :  { %6166 = vmatpush.bf16.msrb.mxu1 %v9269_v59  ;;  %6135 = vmatmul.bf16.vlgmr.msra.gmra.mxu2 %v473_v1  ;;  %v477_v59 = vpack.c.bf16 %v323_v51, %v323_v51  ;;  %v478_v62 = vpack.c.bf16 %v324_v58, %v324_v58  ;;  %v9305_v1 = vld [vmem:[%s11454_s1 + $0x1298] sm:$0xff] }
 0x224   :  { %6179 = vmatpush.bf16.msrb.mxu2 %v9277_v61  ;;  %6148 = vmatmul.bf16.vlgmr.msra.gmra.mxu3 %v474_v4  ;;  %v5267_v61 = vsel %vm5265_vm0, %v8699_v55, 0  ;;  %v9304_v4 = vld [vmem:[%s11454_s1 + $0x1290] sm:$0xff] }
 0x225   :  { %6192 = vmatpush.bf16.msrb.mxu3 %v9285_v2  ;;  %v9291_v2 = vld [vmem:[%s11454_s1 + $0x1228] sm:$0xff] }
 0x226   :  { %6154 = vmatpush.bf16.msrb.mxu0 %v9260_v5  ;;  %v5928_v28 = vpop.f32.mrf.mxu2  ;;  %v5904_v32 = vpop.f32.mrf.mxu0 }
 0x227   :  { %6167 = vmatpush.bf16.msrb.mxu1 %v9268_v6  ;;  %v5929_v29 = vadd.f32 %v5928_v28, %v5916_v20  ;;  %v5941_v31 = vpop.f32.mrf.mxu3  ;;  %v5917_v35 = vpop.f32.mrf.mxu1  ;;  %v330_v32 = vld.sshfl [vmem:[#allocation1 + $0x8] sm:$0xff pattern:$0x73625140] }
 0x228   :  { %6180 = vmatpush.bf16.msrb.mxu2 %v9276_v7  ;;  %v9290_v7 = vld [vmem:[%s11454_s1 + $0x1220] sm:$0xff] }
 0x229   :  { %6193 = vmatpush.bf16.msrb.mxu3 %v9284_v8  ;;  %v11336_v33 = vadd.f32 %v5941_v31, %v5929_v29  ;;  %v9286_v29 = vld [vmem:[%s11454_s1 + $0x1200] sm:$0xff] }
 0x22a   :  { %6155 = vmatpush.bf16.msrb.mxu0 %v9259_v9  ;;  %v9298_v9 = vld [vmem:[%s11454_s1 + $0x1260] sm:$0xff] }
 0x22b   :  { %6168 = vmatpush.bf16.msrb.mxu1 %v9267_v10  ;;  %v9294_v31 = vld [vmem:[%s11454_s1 + $0x1240] sm:$0xff] }
 0x22c   :  { %6181 = vmatpush.bf16.msrb.mxu2 %v9275_v11  ;;  %v9303_v11 = vld [vmem:[%s11454_s1 + $0x1288] sm:$0xff] }
 0x22d   :  { %6194 = vmatpush.bf16.msrb.mxu3 %v9283_v12  ;;  %v9289_v12 = vld [vmem:[%s11454_s1 + $0x1218] sm:$0xff] }
 0x22e   :  { %6156 = vmatpush.bf16.msrb.mxu0 %v9258_v15  ;;  %v5930_v42 = vpop.f32.mrf.mxu2 }
 0x22f   :  { %6169 = vmatpush.bf16.msrb.mxu1 %v9266_v17  ;;  %v5943_v47 = vpop.f32.mrf.mxu3 }
 0x230   :  { %6182 = vmatpush.bf16.msrb.mxu2 %v9274_v18  ;;  %v331_v18 = vld.sshfl [vmem:[#allocation1 + $0x10] sm:$0xff pattern:$0x73625140] }
 0x231   :  { %6195 = vmatpush.bf16.msrb.mxu3 %v9282_v23  ;;  %v9296_v23 = vld [vmem:[%s11454_s1 + $0x1250] sm:$0xff]  ;;  %v481_v24 = vpack.c.bf16 %v331_v18, %v331_v18 }
 0x232   :  { %6157 = vmatpush.bf16.msrb.mxu0 %v9257_v25  ;;  %v9287_v25 = vld [vmem:[%s11454_s1 + $0x1208] sm:$0xff] }
 0x233   :  { %6170 = vmatpush.bf16.msrb.mxu1 %v9265_v26  ;;  %v9295_v26 = vld [vmem:[%s11454_s1 + $0x1248] sm:$0xff] }
 0x234   :  { %6183 = vmatpush.bf16.msrb.mxu2 %v9273_v27 }
 0x235   :  { %6196 = vmatpush.bf16.msrb.mxu3 %v9281_v30  ;;  %v329_v30 = vld.sshfl [vmem:[#allocation1] sm:$0xff pattern:$0x73625140] }
 0x236   :  { %6158 = vmatpush.bf16.msrb.mxu0 %v9256_v34  ;;  %v480_v34 = vpack.c.bf16 %v330_v32, %v330_v32  ;;  %v9313_v32 = vld [vmem:[%s11457_s4] ss:$0 sm:$0xff] }
 0x237   :  { %6171 = vmatpush.bf16.msrb.mxu1 %v9264_v36 }
 0x238   :  { %6184 = vmatpush.bf16.msrb.mxu2 %v9272_v37 }
 0x239   :  { %6197 = vmatpush.bf16.msrb.mxu3 %v9280_v38 }
 0x23a   :  { %6159 = vmatpush.bf16.msrb.mxu0 %v9255_v39 }
 0x23b   :  { %6172 = vmatpush.bf16.msrb.mxu1 %v9263_v40 }
 0x23c   :  { %6185 = vmatpush.bf16.msrb.mxu2 %v9271_v41 }
 0x23d   :  { %6198 = vmatpush.bf16.msrb.mxu3 %v9279_v43 }
 0x23e   :  { %6160 = vmatpush.bf16.msrb.mxu0 %v9254_v44  ;;  %v5954_v5 = vpop.f32.mrf.mxu0 }
 0x23f   :  { %6173 = vmatpush.bf16.msrb.mxu1 %v9262_v48  ;;  %v5955_v6 = vadd.f32 %v5954_v5, %v11336_v33  ;;  %v5967_v8 = vpop.f32.mrf.mxu1  ;;  %v479_v33 = vpack.c.bf16 %v329_v30, %v329_v30 }
 0x240   :  { %6186 = vmatpush.bf16.msrb.mxu2 %v9270_v49 }
 0x241   :  { %6199 = vmatpush.bf16.msrb.mxu3 %v9278_v56  ;;  %6161 = vmatmul.bf16.vlgmr.msrb.gmra.mxu0 %v475_v57  ;;  %v5968_v10 = vadd.f32 %v5967_v8, %v5955_v6  ;;  %v9307_v6 = vld [vmem:[%s11456_s3] sm:$0xff] }
 0x242   :  { %6205 = vmatpush.bf16.msra.mxu0 %v9293_v53  ;;  %6174 = vmatmul.bf16.vlgmr.msrb.gmra.mxu1 %v476_v60 }
 0x243   :  { %6218 = vmatpush.bf16.msra.mxu1 %v9301_v54  ;;  %6187 = vmatmul.bf16.vlgmr.msrb.gmra.mxu2 %v477_v59 }
 0x244   :  { %6234 = vmatpush.bf16.msra.mxu2 %v5267_v61  ;;  %6200 = vmatmul.bf16.vlgmr.msrb.gmra.mxu3 %v478_v62 }
 0x246   :  { %6206 = vmatpush.bf16.msra.mxu0 %v9292_v63  ;;  %v5980_v14 = vpop.f32.mrf.mxu2  ;;  %v5956_v19 = vpop.f32.mrf.mxu0  ;;  %v9308_v63 = vld [vmem:[%s11456_s3 + $0x8] sm:$0xff] }
 0x247   :  { %6219 = vmatpush.bf16.msra.mxu1 %v9300_v0  ;;  %v5981_v15 = vadd.f32 %v5980_v14, %v5968_v10  ;;  %v5993_v17 = vpop.f32.mrf.mxu3  ;;  %v5969_v22 = vpop.f32.mrf.mxu1  ;;  %6276 = vmatpush.bf16.msra.mxu3 %v9308_v63 }
 0x248   :  { %6235 = vmatpush.bf16.msra.mxu2 %v9305_v1 }
 0x249   :  { %v5994_v20 = vadd.f32 %v5993_v17, %v5981_v15 }
 0x24a   :  { %6207 = vmatpush.bf16.msra.mxu0 %v9291_v2 }
 0x24b   :  { %6220 = vmatpush.bf16.msra.mxu1 %v9299_v3  ;;  %6277 = vmatpush.bf16.msra.mxu3 %v9307_v6 }
 0x24c   :  { %6236 = vmatpush.bf16.msra.mxu2 %v9304_v4 }
 0x24e   :  { %6208 = vmatpush.bf16.msra.mxu0 %v9290_v7  ;;  %v5982_v27 = vpop.f32.mrf.mxu2 }
 0x24f   :  { %6221 = vmatpush.bf16.msra.mxu1 %v9298_v9  ;;  %v5995_v28 = vpop.f32.mrf.mxu3 }
 0x250   :  { %6237 = vmatpush.bf16.msra.mxu2 %v9303_v11 }
 0x252   :  { %6209 = vmatpush.bf16.msra.mxu0 %v9289_v12 }
 0x253   :  { %6222 = vmatpush.bf16.msra.mxu1 %v9297_v13 }
 0x254   :  { %6238 = vmatpush.bf16.msra.mxu2 %v9302_v16 }
 0x256   :  { %6210 = vmatpush.bf16.msra.mxu0 %v9288_v21 }
 0x257   :  { %6223 = vmatpush.bf16.msra.mxu1 %v9296_v23  ;;  %8700 = vmatmul.msk.bf16.vlgmr.msra.gmra.mxu2 %vm5261_vm1, %v481_v24 }
 0x25a   :  { %6211 = vmatpush.bf16.msra.mxu0 %v9287_v25 }
 0x25b   :  { %6224 = vmatpush.bf16.msra.mxu1 %v9295_v26 }
 0x25e   :  { %6212 = vmatpush.bf16.msra.mxu0 %v9286_v29  ;;  %v6006_v35 = vpop.f32.mrf.mxu0 }
 0x25f   :  { %6225 = vmatpush.bf16.msra.mxu1 %v9294_v31  ;;  %v6007_v36 = vadd.f32 %v6006_v35, %v5994_v20  ;;  %v6019_v37 = vpop.f32.mrf.mxu1 }
 0x261   :  { %6213 = vmatmul.bf16.vlgmr.msra.gmra.mxu0 %v479_v33  ;;  %v6020_v38 = vadd.f32 %v6019_v37, %v6007_v36 }
 0x262   :  { %6226 = vmatmul.bf16.vlgmr.msra.gmra.mxu1 %v480_v34 }
 0x266   :  { %v6032_v39 = vpop.f32.mrf.mxu2  ;;  %v6008_v42 = vpop.f32.mrf.mxu0 }
 0x267   :  { %v6033_v40 = vadd.f32 %v6032_v39, %v6020_v38  ;;  %v6045_v41 = vpop.f32.mrf.mxu3  ;;  %v6021_v44 = vpop.f32.mrf.mxu1 }
 0x269   :  { %v6046_v43 = vadd.f32 %v6045_v41, %v6033_v40 }
 0x26e   :  { %v6034_v45 = vpop.f32.mrf.mxu2 }
 0x26f   :  { %v6047_v46 = vpop.f32.mrf.mxu3 }
 0x27e   :  { %v6058_v47 = vpop.f32.mrf.mxu0 }
 0x27f   :  { %v6059_v48 = vadd.f32 %v6058_v47, %v6046_v43  ;;  %v6071_v49 = vpop.f32.mrf.mxu1 }
 0x281   :  { %v6072_v50 = vadd.f32 %v6071_v49, %v6059_v48 }
 0x286   :  { %v6084_v51 = vpop.f32.mrf.mxu2  ;;  %v6060_v53 = vpop.f32.mrf.mxu0 }
 0x287   :  { %v6097_v52 = vpop.f32.mrf.mxu3  ;;  %v6073_v54 = vpop.f32.mrf.mxu1  ;;  %v6085_v3 = vadd.f32 %v6084_v51, %v6072_v50 }
 0x289   :  { %v6098_v5 = vadd.f32 %v6097_v52, %v6085_v3 }
 0x28e   :  { %v6086_v55 = vpop.f32.mrf.mxu2 }
 0x28f   :  { %v6099_v56 = vpop.f32.mrf.mxu3 }
 0x29e   :  { %v6110_v57 = vpop.f32.mrf.mxu0 }
 0x29f   :  { %v6123_v58 = vpop.f32.mrf.mxu1  ;;  %v6111_v7 = vadd.f32 %v6110_v57, %v6098_v5 }
 0x2a1   :  { %v6124_v12 = vadd.f32 %v6123_v58, %v6111_v7 }
 0x2a6   :  { %v6136_v59 = vpop.f32.mrf.mxu2  ;;  %v6112_v61 = vpop.f32.mrf.mxu0 }
 0x2a7   :  { %v6149_v60 = vpop.f32.mrf.mxu3  ;;  %v6125_v62 = vpop.f32.mrf.mxu1  ;;  %v6137_v13 = vadd.f32 %v6136_v59, %v6124_v12 }
 0x2a9   :  { %v6150_v15 = vadd.f32 %v6149_v60, %v6137_v13 }
 0x2ae   :  { %v6138_v0 = vpop.f32.mrf.mxu2 }
 0x2af   :  { %v6151_v1 = vpop.f32.mrf.mxu3 }
 0x2be   :  { %v6162_v2 = vpop.f32.mrf.mxu0 }
 0x2bf   :  { %v6175_v4 = vpop.f32.mrf.mxu1  ;;  %v6163_v17 = vadd.f32 %v6162_v2, %v6150_v15 }
 0x2c1   :  { %v6176_v18 = vadd.f32 %v6175_v4, %v6163_v17 }
 0x2c6   :  { %v6188_v8 = vpop.f32.mrf.mxu2  ;;  %v6164_v9 = vpop.f32.mrf.mxu0 }
 0x2c7   :  { %v6201_v10 = vpop.f32.mrf.mxu3  ;;  %v6177_v11 = vpop.f32.mrf.mxu1  ;;  %v6189_v19 = vadd.f32 %v6188_v8, %v6176_v18 }
 0x2c9   :  { %v6202_v21 = vadd.f32 %v6201_v10, %v6189_v19 }
 0x2ce   :  { %v6190_v14 = vpop.f32.mrf.mxu2 }
 0x2cf   :  { %v6203_v16 = vpop.f32.mrf.mxu3 }
 0x2da   :  { %v6240_v20 = vpop.f32.mrf.mxu2 }
 0x2de   :  { %v6214_v22 = vpop.f32.mrf.mxu0 }
 0x2df   :  { %v6215_v23 = vadd.f32 %v6214_v22, %v6202_v21  ;;  %v6227_v24 = vpop.f32.mrf.mxu1 }
 0x2e1   :  { %v6228_v25 = vadd.f32 %v6227_v24, %v6215_v23 }
 0x2e2   :  { %v6242_v27 = vpop.f32.mrf.mxu2 }
 0x2e3   :  { %v6241_v26 = vadd.f32 %v6240_v20, %v6228_v25 }
 0x2e5   :  { %v6244_v28 = vmax.f32 %v6241_v26, 0.0 }
 0x2e6   :  { %v6216_v29 = vpop.f32.mrf.mxu0 }
 0x2e7   :  { %v6245_v30 = vpack.c.bf16 %v6244_v28, %v6244_v28  ;;  %v6229_v31 = vpop.f32.mrf.mxu1 }
 0x2e9   :  { %8709 = vmatmul.msk.bf16.vlgmr.msra.gmra.mxu3 %vm6266_vm2, %v6245_v30 }
 0x36c   :  { %v6279_v33 = vpop.f32.mrf.mxu3 }
 0x36d   :  { %v6280_v34 = vadd.f32 %v9313_v32, %v6279_v33 }
 0x36f   :  { %6283 = vmax.xlane.f32.xlu0 %v6280_v34 }
 0x374   :  { %v6281_v35 = vpop.f32.mrf.mxu3 }
 0x3e2   :  { %v6284_v36 = vpop.xlane.xlu0 %6283 }
 0x3e3   :  { %v6285_v37 = vsub.f32 %v6280_v34, %v6284_v36 }
 0x3e5   :  { %v6286_v38 = vmul.f32 1.442695, %v6285_v37 }
 0x3e7   :  { %9314 = vpow2.f32 %v6286_v38 }
 0x3ed   :  { %v9315_v39 = vpop.eup %9314 }
 0x3ee   :  { %6288 = vadd.xlane.f32.xlu0 %v9315_v39 }
 0x461   :  { %v6289_v40 = vpop.xlane.xlu0 %6288 }
 0x462   :  { %9316 = vlog2.f32 %v6289_v40 }
 0x468   :  { %v9317_v41 = vpop.eup %9316 }
 0x469   :  { %v6291_v42 = vmul.f32 0.6931472, %v9317_v41 }
 0x46b   :  { %v6292_v43 = vsub.f32 %v6285_v37, %v6291_v42 }
 0x46d   :  { %6293 = vst [vmem:[#allocation2] sm:$0xff] %v6292_v43 }
 0x46e   :  { %6297 = vsyncadd [#allocation3], 96  ;;  %s6300_s4 = sshll.u32 %s11458_s5, 4  ;;  %s9344_s9 = smov [#allocation2]   ;;  %s6301_s4 = int_to_ptr.hbm [resolvable:$true] %s6300_s4 }
 0x46f   :  { %s6298_s10 = sshll.u32 %s9344_s9, 4  ;;  %s9345_s11 = smov 32   ;;  %s6299_s10 = int_to_ptr.vmem [resolvable:$true] %s6298_s10 }
 0x470   :  { %s9346_s12 = smov 2  }
 0x471   :  { %6306 = dma.vmem_to_hbm [thread:$0]  %s6299_s10, 32, %s6301_s4, [#allocation3], %s9345_s11, %s9345_s11, %s9346_s12  }
 0x472   :  { %9342 = dma.done.wait [#allocation3], 128  }
 0x473   :  { %9343 = vsyncadd [#allocation3], 4294967168 }
 0x474   :  { %6311 = vsyncpa [#allocation3], 1 }

// kernel: tpu_custom_call.1
= control target key start
LH: loop header
LB: loop body
LE: loop exit
PB: predicated region body
PF: predicated region fallthrough
CT: control target
= control target key end

     0   :  { %10 = vsyncpa [#allocation3], 0  ;;  %vm5265_vm0 = vcmask 1044480   ;;  %vm5261_vm1 = vcmask 605184   ;;  %vm6266_vm2 = vcmask 261120   ;;  %s11453_s0 = inlined_call_operand.vmem [shape: f32[2,9546], index: 0, kind: input, shape index: {}]   ;;  %s11454_s1 = inlined_call_operand.vmem [shape: bf16[9546,32], index: 1, kind: input, shape index: {}]   ;;  %s11455_s2 = inlined_call_operand.vmem [shape: f32[1,32], index: 2, kind: input, shape index: {}]   ;;  %s11456_s3 = inlined_call_operand.vmem [shape: bf16[32,128], index: 3, kind: input, shape index: {}]   ;;  %s11457_s4 = inlined_call_operand.vmem [shape: f32[1,128], index: 4, kind: input, shape index: {}]   ;;  %s11458_s5 = inlined_call_operand.hbm [shape: f32[2,128], index: 5, kind: output, shape index: {}]  }
   0x1   :  { %v8717_v0 = vld [vmem:[%s11454_s1 + $0x38] sm:$0xff]  ;;  %v8716_v4 = vld [vmem:[%s11454_s1 + $0x30] sm:$0xff]  ;;  %v8715_v8 = vld [vmem:[%s11454_s1 + $0x28] sm:$0xff] }
   0x2   :  { %v8725_v1 = vld [vmem:[%s11454_s1 + $0x78] sm:$0xff]  ;;  %5269 = vmatpush.bf16.msra.mxu0 %v8717_v0  ;;  %v8724_v5 = vld [vmem:[%s11454_s1 + $0x70] sm:$0xff]  ;;  %v8723_v9 = vld [vmem:[%s11454_s1 + $0x68] sm:$0xff] }
   0x3   :  { %v8733_v2 = vld [vmem:[%s11454_s1 + $0xb8] sm:$0xff]  ;;  %5282 = vmatpush.bf16.msra.mxu1 %v8725_v1  ;;  %v8732_v6 = vld [vmem:[%s11454_s1 + $0xb0] sm:$0xff]  ;;  %v8731_v10 = vld [vmem:[%s11454_s1 + $0xa8] sm:$0xff] }
   0x4   :  { %v8741_v3 = vld [vmem:[%s11454_s1 + $0xf8] sm:$0xff]  ;;  %5295 = vmatpush.bf16.msra.mxu2 %v8733_v2  ;;  %v8740_v7 = vld [vmem:[%s11454_s1 + $0xf0] sm:$0xff]  ;;  %v8739_v11 = vld [vmem:[%s11454_s1 + $0xe8] sm:$0xff] }
   0x5   :  { %5308 = vmatpush.bf16.msra.mxu3 %v8741_v3  ;;  %v8714_v12 = vld [vmem:[%s11454_s1 + $0x20] sm:$0xff]  ;;  %v8713_v16 = vld [vmem:[%s11454_s1 + $0x18] sm:$0xff]  ;;  %v8712_v20 = vld [vmem:[%s11454_s1 + $0x10] sm:$0xff] }
   0x6   :  { %5270 = vmatpush.bf16.msra.mxu0 %v8716_v4  ;;  %v8722_v13 = vld [vmem:[%s11454_s1 + $0x60] sm:$0xff]  ;;  %v8721_v17 = vld [vmem:[%s11454_s1 + $0x58] sm:$0xff]  ;;  %v8720_v21 = vld [vmem:[%s11454_s1 + $0x50] sm:$0xff] }
   0x7   :  { %5283 = vmatpush.bf16.msra.mxu1 %v8724_v5  ;;  %v8730_v14 = vld [vmem:[%s11454_s1 + $0xa0] sm:$0xff]  ;;  %v8729_v18 = vld [vmem:[%s11454_s1 + $0x98] sm:$0xff]  ;;  %v60_v24 = vld [vmem:[%s11453_s0 + $0x12c] sm:$0xff] }
   0x8   :  { %5296 = vmatpush.bf16.msra.mxu2 %v8732_v6  ;;  %v8738_v15 = vld [vmem:[%s11454_s1 + $0xe0] sm:$0xff]  ;;  %v8737_v19 = vld [vmem:[%s11454_s1 + $0xd8] sm:$0xff]  ;;  %v8728_v26 = vld [vmem:[%s11454_s1 + $0x90] sm:$0xff]  ;;  %178 = vst [vmem:[#allocation1 + $0x2] ss:$4 sm:$0xff] %v60_v24 }
   0x9   :  { %5309 = vmatpush.bf16.msra.mxu3 %v8740_v7  ;;  %v22_v22 = vld [vmem:[%s11453_s0] sm:$0xff]  ;;  %v41_v23 = vld [vmem:[%s11453_s0 + $0x96] sm:$0xff]  ;;  %v8711_v28 = vld [vmem:[%s11454_s1 + $0x8] sm:$0xff] }
   0xa   :  { %5271 = vmatpush.bf16.msra.mxu0 %v8715_v8  ;;  %v79_v25 = vld [vmem:[%s11453_s0 + $0x1c2] sm:$0xff]  ;;  %174 = vst [vmem:[#allocation1] ss:$4 sm:$0xff] %v22_v22  ;;  %v8736_v27 = vld [vmem:[%s11454_s1 + $0xd0] sm:$0xff]  ;;  %v8749_v37 = vld [vmem:[%s11454_s1 + $0x138] sm:$0xff] }
   0xb   :  { %5284 = vmatpush.bf16.msra.mxu1 %v8723_v9  ;;  %176 = vst [vmem:[#allocation1 + $0x1] ss:$4 sm:$0xff] %v41_v23  ;;  %v8719_v29 = vld [vmem:[%s11454_s1 + $0x48] sm:$0xff]  ;;  %v8710_v32 = vld [vmem:[%s11454_s1] sm:$0xff]  ;;  %v8757_v38 = vld [vmem:[%s11454_s1 + $0x178] sm:$0xff] }
   0xc   :  { %5297 = vmatpush.bf16.msra.mxu2 %v8731_v10  ;;  %180 = vst [vmem:[#allocation1 + $0x3] ss:$4 sm:$0xff] %v79_v25  ;;  %v8727_v30 = vld [vmem:[%s11454_s1 + $0x88] sm:$0xff]  ;;  %v42_v34 = vld [vmem:[%s11453_s0 + $0x9e] sm:$0xff]  ;;  %v61_v40 = vld [vmem:[%s11453_s0 + $0x134] sm:$0xff] }
   0xd   :  { %5310 = vmatpush.bf16.msra.mxu3 %v8739_v11  ;;  %v8735_v31 = vld [vmem:[%s11454_s1 + $0xc8] sm:$0xff]  ;;  %v8718_v35 = vld [vmem:[%s11454_s1 + $0x40] sm:$0xff]  ;;  %v8765_v39 = vld [vmem:[%s11454_s1 + $0x1b8] sm:$0xff]  ;;  %184 = vst [vmem:[#allocation1 + $0x21] ss:$4 sm:$0xff] %v42_v34 }
   0xe   :  { %5272 = vmatpush.bf16.msra.mxu0 %v8714_v12  ;;  %v23_v33 = vld [vmem:[%s11453_s0 + $0x8] sm:$0xff]  ;;  %v8726_v36 = vld [vmem:[%s11454_s1 + $0x80] sm:$0xff]  ;;  %v8773_v44 = vld [vmem:[%s11454_s1 + $0x1f8] sm:$0xff]  ;;  %186 = vst [vmem:[#allocation1 + $0x22] ss:$4 sm:$0xff] %v61_v40 }
   0xf   :  { %5285 = vmatpush.bf16.msra.mxu1 %v8722_v13  ;;  %182 = vst [vmem:[#allocation1 + $0x20] ss:$4 sm:$0xff] %v23_v33  ;;  %v8734_v43 = vld [vmem:[%s11454_s1 + $0xc0] sm:$0xff]  ;;  %v80_v49 = vld [vmem:[%s11453_s0 + $0x1ca] sm:$0xff]  ;;  %v8745_v0 = vld [vmem:[%s11454_s1 + $0x118] sm:$0xff] }
  0x10   :  { %5298 = vmatpush.bf16.msra.mxu2 %v8730_v14  ;;  %v8748_v50 = vld [vmem:[%s11454_s1 + $0x130] sm:$0xff]  ;;  %188 = vst [vmem:[#allocation1 + $0x23] ss:$4 sm:$0xff] %v80_v49  ;;  %v8747_v56 = vld [vmem:[%s11454_s1 + $0x128] sm:$0xff]  ;;  %v8746_v60 = vld [vmem:[%s11454_s1 + $0x120] sm:$0xff] }
  0x11   :  { %5311 = vmatpush.bf16.msra.mxu3 %v8738_v15  ;;  %v8756_v52 = vld [vmem:[%s11454_s1 + $0x170] sm:$0xff]  ;;  %v8755_v57 = vld [vmem:[%s11454_s1 + $0x168] sm:$0xff]  ;;  %v8754_v61 = vld [vmem:[%s11454_s1 + $0x160] sm:$0xff] }
  0x12   :  { %5273 = vmatpush.bf16.msra.mxu0 %v8713_v16  ;;  %v8764_v53 = vld [vmem:[%s11454_s1 + $0x1b0] sm:$0xff]  ;;  %v8763_v58 = vld [vmem:[%s11454_s1 + $0x1a8] sm:$0xff]  ;;  %v8762_v62 = vld [vmem:[%s11454_s1 + $0x1a0] sm:$0xff] }
  0x13   :  { %5286 = vmatpush.bf16.msra.mxu1 %v8721_v17  ;;  %v191_v41 = vld.sshfl [vmem:[#allocation1 + $0x10] sm:$0xff pattern:$0x73625140]  ;;  %v189_v42 = vld.sshfl [vmem:[#allocation1] sm:$0xff pattern:$0x73625140] }
  0x14   :  { %5299 = vmatpush.bf16.msra.mxu2 %v8729_v18  ;;  %v407_v45 = vpack.c.bf16 %v189_v42, %v189_v42  ;;  %v190_v46 = vld.sshfl [vmem:[#allocation1 + $0x8] sm:$0xff pattern:$0x73625140]  ;;  %v409_v47 = vpack.c.bf16 %v191_v41, %v191_v41  ;;  %v192_v48 = vld.sshfl [vmem:[#allocation1 + $0x18] sm:$0xff pattern:$0x73625140] }
  0x15   :  { %5312 = vmatpush.bf16.msra.mxu3 %v8737_v19  ;;  %v408_v51 = vpack.c.bf16 %v190_v46, %v190_v46  ;;  %v410_v54 = vpack.c.bf16 %v192_v48, %v192_v48  ;;  %v8772_v55 = vld [vmem:[%s11454_s1 + $0x1f0] sm:$0xff]  ;;  %v8771_v59 = vld [vmem:[%s11454_s1 + $0x1e8] sm:$0xff]  ;;  %v8770_v63 = vld [vmem:[%s11454_s1 + $0x1e0] sm:$0xff] }
  0x16   :  { %5274 = vmatpush.bf16.msra.mxu0 %v8712_v20  ;;  %v8753_v1 = vld [vmem:[%s11454_s1 + $0x158] sm:$0xff]  ;;  %v8744_v4 = vld [vmem:[%s11454_s1 + $0x110] sm:$0xff]  ;;  %v43_v9 = vld [vmem:[%s11453_s0 + $0xa6] sm:$0xff] }
  0x17   :  { %5287 = vmatpush.bf16.msra.mxu1 %v8720_v21  ;;  %v8761_v2 = vld [vmem:[%s11454_s1 + $0x198] sm:$0xff]  ;;  %v8752_v5 = vld [vmem:[%s11454_s1 + $0x150] sm:$0xff]  ;;  %v8743_v10 = vld [vmem:[%s11454_s1 + $0x108] sm:$0xff]  ;;  %198 = vst [vmem:[#allocation1 + $0x1] ss:$4 sm:$0xff] %v43_v9 }
  0x18   :  { %5300 = vmatpush.bf16.msra.mxu2 %v8728_v26  ;;  %v8769_v3 = vld [vmem:[%s11454_s1 + $0x1d8] sm:$0xff]  ;;  %v8760_v6 = vld [vmem:[%s11454_s1 + $0x190] sm:$0xff]  ;;  %v8751_v13 = vld [vmem:[%s11454_s1 + $0x148] sm:$0xff] }
  0x19   :  { %5313 = vmatpush.bf16.msra.mxu3 %v8736_v27  ;;  %v8768_v7 = vld [vmem:[%s11454_s1 + $0x1d0] sm:$0xff]  ;;  %v62_v11 = vld [vmem:[%s11453_s0 + $0x13c] sm:$0xff]  ;;  %v8759_v14 = vld [vmem:[%s11454_s1 + $0x188] sm:$0xff] }
  0x1a   :  { %5275 = vmatpush.bf16.msra.mxu0 %v8711_v28  ;;  %v24_v8 = vld [vmem:[%s11453_s0 + $0x10] sm:$0xff]  ;;  %199 = vst [vmem:[#allocation1 + $0x2] ss:$4 sm:$0xff] %v62_v11  ;;  %v8767_v15 = vld [vmem:[%s11454_s1 + $0x1c8] sm:$0xff]  ;;  %v8742_v16 = vld [vmem:[%s11454_s1 + $0x100] sm:$0xff] }
  0x1b   :  { %5288 = vmatpush.bf16.msra.mxu1 %v8719_v29  ;;  %v81_v12 = vld [vmem:[%s11453_s0 + $0x1d2] sm:$0xff]  ;;  %197 = vst [vmem:[#allocation1] ss:$4 sm:$0xff] %v24_v8  ;;  %v8750_v17 = vld [vmem:[%s11454_s1 + $0x140] sm:$0xff] }
  0x1c   :  { %5301 = vmatpush.bf16.msra.mxu2 %v8727_v30  ;;  %200 = vst [vmem:[#allocation1 + $0x3] ss:$4 sm:$0xff] %v81_v12  ;;  %v8758_v18 = vld [vmem:[%s11454_s1 + $0x180] sm:$0xff]  ;;  %v8781_v19 = vld [vmem:[%s11454_s1 + $0x238] sm:$0xff]  ;;  %v8796_v33 = vld [vmem:[%s11454_s1 + $0x2b0] sm:$0xff] }
  0x1d   :  { %5314 = vmatpush.bf16.msra.mxu3 %v8735_v31  ;;  %v8789_v20 = vld [vmem:[%s11454_s1 + $0x278] sm:$0xff]  ;;  %v195_v21 = vld.sshfl [vmem:[#allocation1 + $0x30] sm:$0xff pattern:$0x73625140]  ;;  %v8766_v25 = vld [vmem:[%s11454_s1 + $0x1c0] sm:$0xff] }
  0x1e   :  { %5276 = vmatpush.bf16.msra.mxu0 %v8710_v32  ;;  %v193_v22 = vld.sshfl [vmem:[#allocation1 + $0x20] sm:$0xff pattern:$0x73625140]  ;;  %v194_v23 = vld.sshfl [vmem:[#allocation1 + $0x28] sm:$0xff pattern:$0x73625140]  ;;  %v413_v27 = vpack.c.bf16 %v195_v21, %v195_v21 }
  0x1f   :  { %5289 = vmatpush.bf16.msra.mxu1 %v8718_v35  ;;  %v8797_v24 = vld [vmem:[%s11454_s1 + $0x2b8] sm:$0xff]  ;;  %v411_v29 = vpack.c.bf16 %v193_v22, %v193_v22  ;;  %v412_v30 = vpack.c.bf16 %v194_v23, %v194_v23  ;;  %v8780_v31 = vld [vmem:[%s11454_s1 + $0x230] sm:$0xff]  ;;  %v8778_v40 = vld [vmem:[%s11454_s1 + $0x220] sm:$0xff] }
  0x20   :  { %5302 = vmatpush.bf16.msra.mxu2 %v8726_v36  ;;  %v8805_v26 = vld [vmem:[%s11454_s1 + $0x2f8] sm:$0xff]  ;;  %v8788_v32 = vld [vmem:[%s11454_s1 + $0x270] sm:$0xff]  ;;  %v8779_v36 = vld [vmem:[%s11454_s1 + $0x228] sm:$0xff] }
  0x21   :  { %5315 = vmatpush.bf16.msra.mxu3 %v8734_v43  ;;  %5277 = vmatmul.bf16.vlgmr.msra.gmra.mxu0 %v407_v45  ;;  %v196_v28 = vld.sshfl [vmem:[#allocation1 + $0x38] sm:$0xff pattern:$0x73625140]  ;;  %v8804_v35 = vld [vmem:[%s11454_s1 + $0x2f0] sm:$0xff]  ;;  %v8786_v41 = vld [vmem:[%s11454_s1 + $0x260] sm:$0xff] }
  0x22   :  { %5321 = vmatpush.bf16.msrb.mxu0 %v8749_v37  ;;  %5290 = vmatmul.bf16.vlgmr.msra.gmra.mxu1 %v408_v51  ;;  %v414_v34 = vpack.c.bf16 %v196_v28, %v196_v28  ;;  %v8787_v37 = vld [vmem:[%s11454_s1 + $0x268] sm:$0xff]  ;;  %v8794_v42 = vld [vmem:[%s11454_s1 + $0x2a0] sm:$0xff]  ;;  %v8785_v45 = vld [vmem:[%s11454_s1 + $0x258] sm:$0xff] }
  0x23   :  { %5334 = vmatpush.bf16.msrb.mxu1 %v8757_v38  ;;  %5303 = vmatmul.bf16.vlgmr.msra.gmra.mxu2 %v409_v47  ;;  %v8795_v38 = vld [vmem:[%s11454_s1 + $0x2a8] sm:$0xff]  ;;  %v8802_v43 = vld [vmem:[%s11454_s1 + $0x2e0] sm:$0xff]  ;;  %v8793_v46 = vld [vmem:[%s11454_s1 + $0x298] sm:$0xff] }
  0x24   :  { %5347 = vmatpush.bf16.msrb.mxu2 %v8765_v39  ;;  %5316 = vmatmul.bf16.vlgmr.msra.gmra.mxu3 %v410_v54  ;;  %v8803_v39 = vld [vmem:[%s11454_s1 + $0x2e8] sm:$0xff]  ;;  %v8801_v47 = vld [vmem:[%s11454_s1 + $0x2d8] sm:$0xff]  ;;  %v8776_v48 = vld [vmem:[%s11454_s1 + $0x210] sm:$0xff] }
  0x25   :  { %5360 = vmatpush.bf16.msrb.mxu3 %v8773_v44  ;;  %v8777_v44 = vld [vmem:[%s11454_s1 + $0x218] sm:$0xff]  ;;  %v8784_v49 = vld [vmem:[%s11454_s1 + $0x250] sm:$0xff]  ;;  %v8818_v21 = vld [vmem:[%s11454_s1 + $0x360] sm:$0xff] }
  0x26   :  { %5322 = vmatpush.bf16.msrb.mxu0 %v8748_v50  ;;  %v8792_v50 = vld [vmem:[%s11454_s1 + $0x290] sm:$0xff]  ;;  %v8837_v9 = vld [vmem:[%s11454_s1 + $0x3f8] sm:$0xff]  ;;  %v8826_v22 = vld [vmem:[%s11454_s1 + $0x3a0] sm:$0xff] }
  0x27   :  { %5335 = vmatpush.bf16.msrb.mxu1 %v8756_v52  ;;  %v8800_v51 = vld [vmem:[%s11454_s1 + $0x2d0] sm:$0xff]  ;;  %v8775_v52 = vld [vmem:[%s11454_s1 + $0x208] sm:$0xff]  ;;  %v8834_v23 = vld [vmem:[%s11454_s1 + $0x3e0] sm:$0xff] }
  0x28   :  { %5348 = vmatpush.bf16.msrb.mxu2 %v8764_v53  ;;  %v25_v53 = vld [vmem:[%s11453_s0 + $0x18] sm:$0xff]  ;;  %v44_v54 = vld [vmem:[%s11453_s0 + $0xae] sm:$0xff] }
  0x29   :  { %5361 = vmatpush.bf16.msrb.mxu3 %v8772_v55  ;;  %v8783_v55 = vld [vmem:[%s11454_s1 + $0x248] sm:$0xff]  ;;  %201 = vst [vmem:[#allocation1 + $0x20] ss:$4 sm:$0xff] %v25_v53  ;;  %v8812_v11 = vld [vmem:[%s11454_s1 + $0x330] sm:$0xff] }
  0x2a   :  { %5323 = vmatpush.bf16.msrb.mxu0 %v8747_v56  ;;  %v63_v56 = vld [vmem:[%s11453_s0 + $0x144] sm:$0xff]  ;;  %202 = vst [vmem:[#allocation1 + $0x21] ss:$4 sm:$0xff] %v44_v54  ;;  %v8808_v28 = vld [vmem:[%s11454_s1 + $0x310] sm:$0xff] }
  0x2b   :  { %5336 = vmatpush.bf16.msrb.mxu1 %v8755_v57  ;;  %v82_v57 = vld [vmem:[%s11453_s0 + $0x1da] sm:$0xff]  ;;  %203 = vst [vmem:[#allocation1 + $0x22] ss:$4 sm:$0xff] %v63_v56  ;;  %v8844_v56 = vld [vmem:[%s11454_s1 + $0x430] sm:$0xff] }
  0x2c   :  { %5349 = vmatpush.bf16.msrb.mxu2 %v8763_v58  ;;  %v8791_v58 = vld [vmem:[%s11454_s1 + $0x288] sm:$0xff]  ;;  %204 = vst [vmem:[#allocation1 + $0x23] ss:$4 sm:$0xff] %v82_v57  ;;  %v8852_v57 = vld [vmem:[%s11454_s1 + $0x470] sm:$0xff] }
  0x2d   :  { %5362 = vmatpush.bf16.msrb.mxu3 %v8771_v59  ;;  %v8799_v59 = vld [vmem:[%s11454_s1 + $0x2c8] sm:$0xff] }
  0x2e   :  { %5324 = vmatpush.bf16.msrb.mxu0 %v8746_v60  ;;  %v8774_v60 = vld [vmem:[%s11454_s1 + $0x200] sm:$0xff] }
  0x2f   :  { %5337 = vmatpush.bf16.msrb.mxu1 %v8754_v61  ;;  %v8782_v61 = vld [vmem:[%s11454_s1 + $0x240] sm:$0xff] }
  0x30   :  { %5350 = vmatpush.bf16.msrb.mxu2 %v8762_v62  ;;  %v205_v62 = vld.sshfl [vmem:[#allocation1] sm:$0xff pattern:$0x73625140] }
  0x31   :  { %5363 = vmatpush.bf16.msrb.mxu3 %v8770_v63  ;;  %v8790_v63 = vld [vmem:[%s11454_s1 + $0x280] sm:$0xff] }
  0x32   :  { %5325 = vmatpush.bf16.msrb.mxu0 %v8745_v0  ;;  %v8813_v0 = vld [vmem:[%s11454_s1 + $0x338] sm:$0xff] }
  0x33   :  { %5338 = vmatpush.bf16.msrb.mxu1 %v8753_v1  ;;  %v207_v1 = vld.sshfl [vmem:[#allocation1 + $0x10] sm:$0xff pattern:$0x73625140] }
  0x34   :  { %5351 = vmatpush.bf16.msrb.mxu2 %v8761_v2  ;;  %v8821_v2 = vld [vmem:[%s11454_s1 + $0x378] sm:$0xff]  ;;  %v417_v8 = vpack.c.bf16 %v207_v1, %v207_v1  ;;  %v8850_v1 = vld [vmem:[%s11454_s1 + $0x460] sm:$0xff] }
  0x35   :  { %5364 = vmatpush.bf16.msrb.mxu3 %v8769_v3  ;;  %v8829_v3 = vld [vmem:[%s11454_s1 + $0x3b8] sm:$0xff] }
  0x36   :  { %5326 = vmatpush.bf16.msrb.mxu0 %v8744_v4  ;;  %v206_v4 = vld.sshfl [vmem:[#allocation1 + $0x8] sm:$0xff pattern:$0x73625140] }
  0x37   :  { %5339 = vmatpush.bf16.msrb.mxu1 %v8752_v5  ;;  %v8798_v5 = vld [vmem:[%s11454_s1 + $0x2c0] sm:$0xff] }
  0x38   :  { %5352 = vmatpush.bf16.msrb.mxu2 %v8760_v6  ;;  %v415_v6 = vpack.c.bf16 %v205_v62, %v205_v62  ;;  %v8859_v62 = vld [vmem:[%s11454_s1 + $0x4a8] sm:$0xff] }
  0x39   :  { %5365 = vmatpush.bf16.msrb.mxu3 %v8768_v7  ;;  %v208_v7 = vld.sshfl [vmem:[#allocation1 + $0x18] sm:$0xff pattern:$0x73625140] }
  0x3a   :  { %5327 = vmatpush.bf16.msrb.mxu0 %v8743_v10  ;;  %v416_v10 = vpack.c.bf16 %v206_v4, %v206_v4  ;;  %v418_v12 = vpack.c.bf16 %v208_v7, %v208_v7  ;;  %v8841_v4 = vld [vmem:[%s11454_s1 + $0x418] sm:$0xff] }
  0x3b   :  { %5340 = vmatpush.bf16.msrb.mxu1 %v8751_v13  ;;  %v8820_v13 = vld [vmem:[%s11454_s1 + $0x370] sm:$0xff]  ;;  %v8865_v7 = vld [vmem:[%s11454_s1 + $0x4d8] sm:$0xff] }
  0x3c   :  { %5353 = vmatpush.bf16.msrb.mxu2 %v8759_v14  ;;  %v8828_v14 = vld [vmem:[%s11454_s1 + $0x3b0] sm:$0xff] }
  0x3d   :  { %5366 = vmatpush.bf16.msrb.mxu3 %v8767_v15  ;;  %v8836_v15 = vld [vmem:[%s11454_s1 + $0x3f0] sm:$0xff] }
  0x3e   :  { %5328 = vmatpush.bf16.msrb.mxu0 %v8742_v16  ;;  %v8811_v16 = vld [vmem:[%s11454_s1 + $0x328] sm:$0xff] }
  0x3f   :  { %5341 = vmatpush.bf16.msrb.mxu1 %v8750_v17  ;;  %v8819_v17 = vld [vmem:[%s11454_s1 + $0x368] sm:$0xff] }
  0x40   :  { %5354 = vmatpush.bf16.msrb.mxu2 %v8758_v18  ;;  %v8827_v18 = vld [vmem:[%s11454_s1 + $0x3a8] sm:$0xff] }
  0x41   :  { %5367 = vmatpush.bf16.msrb.mxu3 %v8766_v25  ;;  %5329 = vmatmul.bf16.vlgmr.msrb.gmra.mxu0 %v411_v29  ;;  %v8817_v25 = vld [vmem:[%s11454_s1 + $0x358] sm:$0xff]  ;;  %v8816_v29 = vld [vmem:[%s11454_s1 + $0x350] sm:$0xff] }
  0x42   :  { %5373 = vmatpush.bf16.msra.mxu0 %v8781_v19  ;;  %5342 = vmatmul.bf16.vlgmr.msrb.gmra.mxu1 %v412_v30  ;;  %v8835_v19 = vld [vmem:[%s11454_s1 + $0x3e8] sm:$0xff]  ;;  %v8824_v30 = vld [vmem:[%s11454_s1 + $0x390] sm:$0xff] }
  0x43   :  { %5386 = vmatpush.bf16.msra.mxu1 %v8789_v20  ;;  %5355 = vmatmul.bf16.vlgmr.msrb.gmra.mxu2 %v413_v27  ;;  %v8810_v20 = vld [vmem:[%s11454_s1 + $0x320] sm:$0xff]  ;;  %v8833_v27 = vld [vmem:[%s11454_s1 + $0x3d8] sm:$0xff] }
  0x44   :  { %5399 = vmatpush.bf16.msra.mxu2 %v8797_v24  ;;  %5368 = vmatmul.bf16.vlgmr.msrb.gmra.mxu3 %v414_v34  ;;  %v8809_v24 = vld [vmem:[%s11454_s1 + $0x318] sm:$0xff] }
  0x45   :  { %5412 = vmatpush.bf16.msra.mxu3 %v8805_v26  ;;  %v8825_v26 = vld [vmem:[%s11454_s1 + $0x398] sm:$0xff] }
  0x46   :  { %5374 = vmatpush.bf16.msra.mxu0 %v8780_v31  ;;  %v8832_v31 = vld [vmem:[%s11454_s1 + $0x3d0] sm:$0xff] }
  0x47   :  { %5387 = vmatpush.bf16.msra.mxu1 %v8788_v32  ;;  %v8807_v32 = vld [vmem:[%s11454_s1 + $0x308] sm:$0xff]  ;;  %v45_v34 = vld [vmem:[%s11453_s0 + $0xb6] sm:$0xff] }
  0x48   :  { %5400 = vmatpush.bf16.msra.mxu2 %v8796_v33  ;;  %v26_v33 = vld [vmem:[%s11453_s0 + $0x20] sm:$0xff]  ;;  %214 = vst [vmem:[#allocation1 + $0x1] ss:$4 sm:$0xff] %v45_v34 }
  0x49   :  { %5413 = vmatpush.bf16.msra.mxu3 %v8804_v35  ;;  %v8815_v35 = vld [vmem:[%s11454_s1 + $0x348] sm:$0xff]  ;;  %213 = vst [vmem:[#allocation1] ss:$4 sm:$0xff] %v26_v33  ;;  %v8901_v33 = vld [vmem:[%s11454_s1 + $0x5f8] sm:$0xff] }
  0x4a   :  { %5375 = vmatpush.bf16.msra.mxu0 %v8779_v36  ;;  %v64_v36 = vld [vmem:[%s11453_s0 + $0x14c] sm:$0xff] }
  0x4b   :  { %5388 = vmatpush.bf16.msra.mxu1 %v8787_v37  ;;  %v8823_v37 = vld [vmem:[%s11454_s1 + $0x388] sm:$0xff]  ;;  %215 = vst [vmem:[#allocation1 + $0x2] ss:$4 sm:$0xff] %v64_v36  ;;  %v8876_v36 = vld [vmem:[%s11454_s1 + $0x530] sm:$0xff] }
  0x4c   :  { %5401 = vmatpush.bf16.msra.mxu2 %v8795_v38  ;;  %v83_v38 = vld [vmem:[%s11453_s0 + $0x1e2] sm:$0xff] }
  0x4d   :  { %5414 = vmatpush.bf16.msra.mxu3 %v8803_v39  ;;  %v8831_v39 = vld [vmem:[%s11454_s1 + $0x3c8] sm:$0xff]  ;;  %216 = vst [vmem:[#allocation1 + $0x3] ss:$4 sm:$0xff] %v83_v38  ;;  %v8892_v38 = vld [vmem:[%s11454_s1 + $0x5b0] sm:$0xff] }
  0x4e   :  { %5376 = vmatpush.bf16.msra.mxu0 %v8778_v40  ;;  %v8806_v40 = vld [vmem:[%s11454_s1 + $0x300] sm:$0xff] }
  0x4f   :  { %5389 = vmatpush.bf16.msra.mxu1 %v8786_v41  ;;  %v8814_v41 = vld [vmem:[%s11454_s1 + $0x340] sm:$0xff] }
  0x50   :  { %5402 = vmatpush.bf16.msra.mxu2 %v8794_v42  ;;  %v8822_v42 = vld [vmem:[%s11454_s1 + $0x380] sm:$0xff] }
  0x51   :  { %5415 = vmatpush.bf16.msra.mxu3 %v8802_v43  ;;  %v8845_v43 = vld [vmem:[%s11454_s1 + $0x438] sm:$0xff] }
  0x52   :  { %5377 = vmatpush.bf16.msra.mxu0 %v8777_v44  ;;  %v8853_v44 = vld [vmem:[%s11454_s1 + $0x478] sm:$0xff] }
  0x53   :  { %5390 = vmatpush.bf16.msra.mxu1 %v8785_v45  ;;  %v209_v45 = vld.sshfl [vmem:[#allocation1 + $0x20] sm:$0xff pattern:$0x73625140] }
  0x54   :  { %5403 = vmatpush.bf16.msra.mxu2 %v8793_v46  ;;  %v211_v46 = vld.sshfl [vmem:[#allocation1 + $0x30] sm:$0xff pattern:$0x73625140] }
  0x55   :  { %5416 = vmatpush.bf16.msra.mxu3 %v8801_v47  ;;  %v210_v47 = vld.sshfl [vmem:[#allocation1 + $0x28] sm:$0xff pattern:$0x73625140]  ;;  %v421_v53 = vpack.c.bf16 %v211_v46, %v211_v46 }
  0x56   :  { %5378 = vmatpush.bf16.msra.mxu0 %v8776_v48  ;;  %v8861_v48 = vld [vmem:[%s11454_s1 + $0x4b8] sm:$0xff]  ;;  %v420_v54 = vpack.c.bf16 %v210_v47, %v210_v47  ;;  %v8882_v47 = vld [vmem:[%s11454_s1 + $0x560] sm:$0xff] }
  0x57   :  { %5391 = vmatpush.bf16.msra.mxu1 %v8784_v49  ;;  %v8830_v49 = vld [vmem:[%s11454_s1 + $0x3c0] sm:$0xff] }
  0x58   :  { %5404 = vmatpush.bf16.msra.mxu2 %v8792_v50  ;;  %v212_v50 = vld.sshfl [vmem:[#allocation1 + $0x38] sm:$0xff pattern:$0x73625140] }
  0x59   :  { %5417 = vmatpush.bf16.msra.mxu3 %v8800_v51  ;;  %v419_v51 = vpack.c.bf16 %v209_v45, %v209_v45  ;;  %v8874_v45 = vld [vmem:[%s11454_s1 + $0x520] sm:$0xff] }
  0x5a   :  { %5379 = vmatpush.bf16.msra.mxu0 %v8775_v52  ;;  %v8869_v52 = vld [vmem:[%s11454_s1 + $0x4f8] sm:$0xff] }
  0x5b   :  { %5392 = vmatpush.bf16.msra.mxu1 %v8783_v55  ;;  %v422_v55 = vpack.c.bf16 %v212_v50, %v212_v50 }
  0x5c   :  { %5405 = vmatpush.bf16.msra.mxu2 %v8791_v58  ;;  %v8860_v58 = vld [vmem:[%s11454_s1 + $0x4b0] sm:$0xff] }
  0x5d   :  { %5418 = vmatpush.bf16.msra.mxu3 %v8799_v59  ;;  %v8868_v59 = vld [vmem:[%s11454_s1 + $0x4f0] sm:$0xff] }
  0x5e   :  { %5380 = vmatpush.bf16.msra.mxu0 %v8774_v60  ;;  %v8843_v60 = vld [vmem:[%s11454_s1 + $0x428] sm:$0xff] }
  0x5f   :  { %5393 = vmatpush.bf16.msra.mxu1 %v8782_v61  ;;  %v8851_v61 = vld [vmem:[%s11454_s1 + $0x468] sm:$0xff] }
  0x60   :  { %5406 = vmatpush.bf16.msra.mxu2 %v8790_v63  ;;  %v8867_v63 = vld [vmem:[%s11454_s1 + $0x4e8] sm:$0xff] }
  0x61   :  { %5419 = vmatpush.bf16.msra.mxu3 %v8798_v5  ;;  %5381 = vmatmul.bf16.vlgmr.msra.gmra.mxu0 %v415_v6  ;;  %v8849_v5 = vld [vmem:[%s11454_s1 + $0x458] sm:$0xff] }
  0x62   :  { %5425 = vmatpush.bf16.msrb.mxu0 %v8813_v0  ;;  %5394 = vmatmul.bf16.vlgmr.msra.gmra.mxu1 %v416_v10  ;;  %v8842_v0 = vld [vmem:[%s11454_s1 + $0x420] sm:$0xff]  ;;  %v8857_v6 = vld [vmem:[%s11454_s1 + $0x498] sm:$0xff]  ;;  %v8856_v10 = vld [vmem:[%s11454_s1 + $0x490] sm:$0xff] }
  0x63   :  { %5438 = vmatpush.bf16.msrb.mxu1 %v8821_v2  ;;  %5407 = vmatmul.bf16.vlgmr.msra.gmra.mxu2 %v417_v8  ;;  %v8858_v2 = vld [vmem:[%s11454_s1 + $0x4a0] sm:$0xff]  ;;  %v8840_v8 = vld [vmem:[%s11454_s1 + $0x410] sm:$0xff] }
  0x64   :  { %5451 = vmatpush.bf16.msrb.mxu2 %v8829_v3  ;;  %5420 = vmatmul.bf16.vlgmr.msra.gmra.mxu3 %v418_v12  ;;  %v8866_v3 = vld [vmem:[%s11454_s1 + $0x4e0] sm:$0xff]  ;;  %v8839_v12 = vld [vmem:[%s11454_s1 + $0x408] sm:$0xff] }
  0x65   :  { %5464 = vmatpush.bf16.msrb.mxu3 %v8837_v9  ;;  %v8848_v9 = vld [vmem:[%s11454_s1 + $0x450] sm:$0xff] }
  0x66   :  { %5426 = vmatpush.bf16.msrb.mxu0 %v8812_v11  ;;  %v8864_v11 = vld [vmem:[%s11454_s1 + $0x4d0] sm:$0xff] }
  0x67   :  { %5439 = vmatpush.bf16.msrb.mxu1 %v8820_v13  ;;  %v27_v13 = vld [vmem:[%s11453_s0 + $0x28] sm:$0xff] }
  0x68   :  { %5452 = vmatpush.bf16.msrb.mxu2 %v8828_v14  ;;  %v46_v14 = vld [vmem:[%s11453_s0 + $0xbe] sm:$0xff]  ;;  %217 = vst [vmem:[#allocation1 + $0x20] ss:$4 sm:$0xff] %v27_v13 }
  0x69   :  { %5465 = vmatpush.bf16.msrb.mxu3 %v8836_v15  ;;  %v65_v15 = vld [vmem:[%s11453_s0 + $0x154] sm:$0xff]  ;;  %218 = vst [vmem:[#allocation1 + $0x21] ss:$4 sm:$0xff] %v46_v14  ;;  %v8878_v13 = vld [vmem:[%s11454_s1 + $0x540] sm:$0xff] }
  0x6a   :  { %5427 = vmatpush.bf16.msrb.mxu0 %v8811_v16  ;;  %v8847_v16 = vld [vmem:[%s11454_s1 + $0x448] sm:$0xff]  ;;  %219 = vst [vmem:[#allocation1 + $0x22] ss:$4 sm:$0xff] %v65_v15  ;;  %v8886_v14 = vld [vmem:[%s11454_s1 + $0x580] sm:$0xff] }
  0x6b   :  { %5440 = vmatpush.bf16.msrb.mxu1 %v8819_v17  ;;  %v8855_v17 = vld [vmem:[%s11454_s1 + $0x488] sm:$0xff] }
  0x6c   :  { %5453 = vmatpush.bf16.msrb.mxu2 %v8827_v18  ;;  %v8863_v18 = vld [vmem:[%s11454_s1 + $0x4c8] sm:$0xff] }
  0x6d   :  { %5466 = vmatpush.bf16.msrb.mxu3 %v8835_v19  ;;  %v84_v19 = vld [vmem:[%s11453_s0 + $0x1ea] sm:$0xff] }
  0x6e   :  { %5428 = vmatpush.bf16.msrb.mxu0 %v8810_v20  ;;  %v8838_v20 = vld [vmem:[%s11454_s1 + $0x400] sm:$0xff]  ;;  %220 = vst [vmem:[#allocation1 + $0x23] ss:$4 sm:$0xff] %v84_v19 }
  0x6f   :  { %5441 = vmatpush.bf16.msrb.mxu1 %v8818_v21  ;;  %v8846_v21 = vld [vmem:[%s11454_s1 + $0x440] sm:$0xff] }
  0x70   :  { %5454 = vmatpush.bf16.msrb.mxu2 %v8826_v22  ;;  %v8854_v22 = vld [vmem:[%s11454_s1 + $0x480] sm:$0xff] }
  0x71   :  { %5467 = vmatpush.bf16.msrb.mxu3 %v8834_v23  ;;  %v221_v23 = vld.sshfl [vmem:[#allocation1] sm:$0xff pattern:$0x73625140] }
  0x72   :  { %5429 = vmatpush.bf16.msrb.mxu0 %v8809_v24  ;;  %v223_v24 = vld.sshfl [vmem:[#allocation1 + $0x10] sm:$0xff pattern:$0x73625140] }
  0x73   :  { %5442 = vmatpush.bf16.msrb.mxu1 %v8817_v25  ;;  %v8877_v25 = vld [vmem:[%s11454_s1 + $0x538] sm:$0xff] }
  0x74   :  { %5455 = vmatpush.bf16.msrb.mxu2 %v8825_v26  ;;  %v8885_v26 = vld [vmem:[%s11454_s1 + $0x578] sm:$0xff] }
  0x75   :  { %5468 = vmatpush.bf16.msrb.mxu3 %v8833_v27  ;;  %v222_v27 = vld.sshfl [vmem:[#allocation1 + $0x8] sm:$0xff pattern:$0x73625140]  ;;  %v225_v15 = vld.sshfl [vmem:[#allocation1 + $0x20] sm:$0xff pattern:$0x73625140] }
  0x76   :  { %5430 = vmatpush.bf16.msrb.mxu0 %v8808_v28  ;;  %v8893_v28 = vld [vmem:[%s11454_s1 + $0x5b8] sm:$0xff]  ;;  %v424_v34 = vpack.c.bf16 %v222_v27, %v222_v27  ;;  %v226_v19 = vld.sshfl [vmem:[#allocation1 + $0x28] sm:$0xff pattern:$0x73625140] }
  0x77   :  { %5443 = vmatpush.bf16.msrb.mxu1 %v8816_v29  ;;  %v8862_v29 = vld [vmem:[%s11454_s1 + $0x4c0] sm:$0xff]  ;;  %v428_v27 = vpack.c.bf16 %v226_v19, %v226_v19 }
  0x78   :  { %5456 = vmatpush.bf16.msrb.mxu2 %v8824_v30  ;;  %v224_v30 = vld.sshfl [vmem:[#allocation1 + $0x18] sm:$0xff pattern:$0x73625140] }
  0x79   :  { %5469 = vmatpush.bf16.msrb.mxu3 %v8832_v31  ;;  %v423_v31 = vpack.c.bf16 %v221_v23, %v221_v23  ;;  %v228_v23 = vld.sshfl [vmem:[#allocation1 + $0x38] sm:$0xff pattern:$0x73625140] }
  0x7a   :  { %5431 = vmatpush.bf16.msrb.mxu0 %v8807_v32  ;;  %v425_v32 = vpack.c.bf16 %v223_v24, %v223_v24  ;;  %v427_v24 = vpack.c.bf16 %v225_v15, %v225_v15 }
  0x7b   :  { %5444 = vmatpush.bf16.msrb.mxu1 %v8815_v35  ;;  %v426_v35 = vpack.c.bf16 %v224_v30, %v224_v30  ;;  %v8916_v30 = vld [vmem:[%s11454_s1 + $0x670] sm:$0xff] }
  0x7c   :  { %5457 = vmatpush.bf16.msrb.mxu2 %v8823_v37  ;;  %v8884_v37 = vld [vmem:[%s11454_s1 + $0x570] sm:$0xff] }
  0x7d   :  { %5470 = vmatpush.bf16.msrb.mxu3 %v8831_v39  ;;  %v8900_v39 = vld [vmem:[%s11454_s1 + $0x5f0] sm:$0xff] }
  0x7e   :  { %5432 = vmatpush.bf16.msrb.mxu0 %v8806_v40  ;;  %v8875_v40 = vld [vmem:[%s11454_s1 + $0x528] sm:$0xff] }
  0x7f   :  { %5445 = vmatpush.bf16.msrb.mxu1 %v8814_v41  ;;  %v8883_v41 = vld [vmem:[%s11454_s1 + $0x568] sm:$0xff] }
  0x80   :  { %5458 = vmatpush.bf16.msrb.mxu2 %v8822_v42  ;;  %v8891_v42 = vld [vmem:[%s11454_s1 + $0x5a8] sm:$0xff] }
  0x81   :  { %5471 = vmatpush.bf16.msrb.mxu3 %v8830_v49  ;;  %5433 = vmatmul.bf16.vlgmr.msrb.gmra.mxu0 %v419_v51  ;;  %v8898_v51 = vld [vmem:[%s11454_s1 + $0x5e0] sm:$0xff] }
  0x82   :  { %5477 = vmatpush.bf16.msra.mxu0 %v8845_v43  ;;  %5446 = vmatmul.bf16.vlgmr.msrb.gmra.mxu1 %v420_v54  ;;  %v9312_v43 = vld [vmem:[%s11455_s2] ss:$0 sm:$0xff]  ;;  %v8881_v54 = vld [vmem:[%s11454_s1 + $0x558] sm:$0xff] }
  0x83   :  { %5490 = vmatpush.bf16.msra.mxu1 %v8853_v44  ;;  %5459 = vmatmul.bf16.vlgmr.msrb.gmra.mxu2 %v421_v53  ;;  %v8899_v44 = vld [vmem:[%s11454_s1 + $0x5e8] sm:$0xff]  ;;  %v8873_v53 = vld [vmem:[%s11454_s1 + $0x518] sm:$0xff] }
  0x84   :  { %5503 = vmatpush.bf16.msra.mxu2 %v8861_v48  ;;  %5472 = vmatmul.bf16.vlgmr.msrb.gmra.mxu3 %v422_v55  ;;  %v8890_v48 = vld [vmem:[%s11454_s1 + $0x5a0] sm:$0xff]  ;;  %v8889_v55 = vld [vmem:[%s11454_s1 + $0x598] sm:$0xff] }
  0x85   :  { %5516 = vmatpush.bf16.msra.mxu3 %v8869_v52 }
  0x86   :  { %5478 = vmatpush.bf16.msra.mxu0 %v8844_v56  ;;  %v8897_v56 = vld [vmem:[%s11454_s1 + $0x5d8] sm:$0xff] }
  0x87   :  { %5491 = vmatpush.bf16.msra.mxu1 %v8852_v57 }
  0x88   :  { %5504 = vmatpush.bf16.msra.mxu2 %v8860_v58  ;;  %v8872_v58 = vld [vmem:[%s11454_s1 + $0x510] sm:$0xff] }
  0x89   :  { %5517 = vmatpush.bf16.msra.mxu3 %v8868_v59 }
  0x8a   :  { %5479 = vmatpush.bf16.msra.mxu0 %v8843_v60 }
  0x8b   :  { %5492 = vmatpush.bf16.msra.mxu1 %v8851_v61  ;;  %v8880_v61 = vld [vmem:[%s11454_s1 + $0x550] sm:$0xff] }
  0x8c   :  { %5505 = vmatpush.bf16.msra.mxu2 %v8859_v62  ;;  %v8888_v62 = vld [vmem:[%s11454_s1 + $0x590] sm:$0xff] }
  0x8d   :  { %5518 = vmatpush.bf16.msra.mxu3 %v8867_v63 }
  0x8e   :  { %5480 = vmatpush.bf16.msra.mxu0 %v8842_v0 }
  0x8f   :  { %5493 = vmatpush.bf16.msra.mxu1 %v8850_v1  ;;  %v8896_v1 = vld [vmem:[%s11454_s1 + $0x5d0] sm:$0xff] }
  0x90   :  { %5506 = vmatpush.bf16.msra.mxu2 %v8858_v2  ;;  %v8871_v2 = vld [vmem:[%s11454_s1 + $0x508] sm:$0xff] }
  0x91   :  { %5519 = vmatpush.bf16.msra.mxu3 %v8866_v3 }
  0x92   :  { %5481 = vmatpush.bf16.msra.mxu0 %v8841_v4  ;;  %v28_v4 = vld [vmem:[%s11453_s0 + $0x30] sm:$0xff] }
  0x93   :  { %5494 = vmatpush.bf16.msra.mxu1 %v8849_v5  ;;  %v47_v5 = vld [vmem:[%s11453_s0 + $0xc6] sm:$0xff]  ;;  %229 = vst [vmem:[#allocation1] ss:$4 sm:$0xff] %v28_v4 }
  0x94   :  { %5507 = vmatpush.bf16.msra.mxu2 %v8857_v6  ;;  %v66_v6 = vld [vmem:[%s11453_s0 + $0x15c] sm:$0xff]  ;;  %230 = vst [vmem:[#allocation1 + $0x1] ss:$4 sm:$0xff] %v47_v5 }
  0x95   :  { %5520 = vmatpush.bf16.msra.mxu3 %v8865_v7  ;;  %v8879_v7 = vld [vmem:[%s11454_s1 + $0x548] sm:$0xff]  ;;  %231 = vst [vmem:[#allocation1 + $0x2] ss:$4 sm:$0xff] %v66_v6  ;;  %v8902_v4 = vld [vmem:[%s11454_s1 + $0x600] sm:$0xff] }
  0x96   :  { %5482 = vmatpush.bf16.msra.mxu0 %v8840_v8  ;;  %v8887_v8 = vld [vmem:[%s11454_s1 + $0x588] sm:$0xff]  ;;  %v8910_v5 = vld [vmem:[%s11454_s1 + $0x640] sm:$0xff] }
  0x97   :  { %5495 = vmatpush.bf16.msra.mxu1 %v8848_v9  ;;  %v85_v9 = vld [vmem:[%s11453_s0 + $0x1f2] sm:$0xff]  ;;  %v8918_v6 = vld [vmem:[%s11454_s1 + $0x680] sm:$0xff] }
  0x98   :  { %5508 = vmatpush.bf16.msra.mxu2 %v8856_v10  ;;  %v8895_v10 = vld [vmem:[%s11454_s1 + $0x5c8] sm:$0xff]  ;;  %232 = vst [vmem:[#allocation1 + $0x3] ss:$4 sm:$0xff] %v85_v9 }
  0x99   :  { %5521 = vmatpush.bf16.msra.mxu3 %v8864_v11 }
  0x9a   :  { %5483 = vmatpush.bf16.msra.mxu0 %v8839_v12  ;;  %v8870_v12 = vld [vmem:[%s11454_s1 + $0x500] sm:$0xff] }
  0x9b   :  { %5496 = vmatpush.bf16.msra.mxu1 %v8847_v16  ;;  %v227_v16 = vld.sshfl [vmem:[#allocation1 + $0x30] sm:$0xff pattern:$0x73625140] }
  0x9c   :  { %5509 = vmatpush.bf16.msra.mxu2 %v8855_v17  ;;  %v8909_v17 = vld [vmem:[%s11454_s1 + $0x638] sm:$0xff] }
  0x9d   :  { %5522 = vmatpush.bf16.msra.mxu3 %v8863_v18  ;;  %v8917_v18 = vld [vmem:[%s11454_s1 + $0x678] sm:$0xff] }
  0x9e   :  { %5484 = vmatpush.bf16.msra.mxu0 %v8838_v20  ;;  %v5278_v46 = vpop.f32.mrf.mxu0 }
  0x9f   :  { %5497 = vmatpush.bf16.msra.mxu1 %v8846_v21  ;;  %v5279_v49 = vadd.f32 %v9312_v43, %v5278_v46  ;;  %v5291_v50 = vpop.f32.mrf.mxu1  ;;  %v8925_v21 = vld [vmem:[%s11454_s1 + $0x6b8] sm:$0xff]  ;;  %v8930_v43 = vld [vmem:[%s11454_s1 + $0x6e0] sm:$0xff] }
  0xa0   :  { %5510 = vmatpush.bf16.msra.mxu2 %v8854_v22  ;;  %v8894_v22 = vld [vmem:[%s11454_s1 + $0x5c0] sm:$0xff]  ;;  %v8913_v46 = vld [vmem:[%s11454_s1 + $0x658] sm:$0xff] }
  0xa1   :  { %5523 = vmatpush.bf16.msra.mxu3 %v8862_v29  ;;  %5485 = vmatmul.bf16.vlgmr.msra.gmra.mxu0 %v423_v31  ;;  %v5292_v52 = vadd.f32 %v5291_v50, %v5279_v49  ;;  %v8908_v29 = vld [vmem:[%s11454_s1 + $0x630] sm:$0xff]  ;;  %v8929_v49 = vld [vmem:[%s11454_s1 + $0x6d8] sm:$0xff] }
  0xa2   :  { %5529 = vmatpush.bf16.msrb.mxu0 %v8877_v25  ;;  %5498 = vmatmul.bf16.vlgmr.msra.gmra.mxu1 %v424_v34  ;;  %v429_v25 = vpack.c.bf16 %v227_v16, %v227_v16  ;;  %v8924_v31 = vld [vmem:[%s11454_s1 + $0x6b0] sm:$0xff]  ;;  %v8915_v34 = vld [vmem:[%s11454_s1 + $0x668] sm:$0xff]  ;;  %v240_v15 = vld.sshfl [vmem:[#allocation1 + $0x18] sm:$0xff pattern:$0x73625140] }
  0xa3   :  { %5542 = vmatpush.bf16.msrb.mxu1 %v8885_v26  ;;  %5511 = vmatmul.bf16.vlgmr.msra.gmra.mxu2 %v425_v32  ;;  %v8933_v26 = vld [vmem:[%s11454_s1 + $0x6f8] sm:$0xff]  ;;  %v8932_v32 = vld [vmem:[%s11454_s1 + $0x6f0] sm:$0xff] }
  0xa4   :  { %5555 = vmatpush.bf16.msrb.mxu2 %v8893_v28  ;;  %5524 = vmatmul.bf16.vlgmr.msra.gmra.mxu3 %v426_v35  ;;  %v430_v28 = vpack.c.bf16 %v228_v23, %v228_v23  ;;  %v8923_v35 = vld [vmem:[%s11454_s1 + $0x6a8] sm:$0xff]  ;;  %v8956_v23 = vld [vmem:[%s11454_s1 + $0x7b0] sm:$0xff] }
  0xa5   :  { %5568 = vmatpush.bf16.msrb.mxu3 %v8901_v33  ;;  %v8907_v33 = vld [vmem:[%s11454_s1 + $0x628] sm:$0xff] }
  0xa6   :  { %5530 = vmatpush.bf16.msrb.mxu0 %v8876_v36  ;;  %v5304_v57 = vpop.f32.mrf.mxu2  ;;  %v5280_v60 = vpop.f32.mrf.mxu0  ;;  %v8931_v36 = vld [vmem:[%s11454_s1 + $0x6e8] sm:$0xff] }
  0xa7   :  { %5543 = vmatpush.bf16.msrb.mxu1 %v8884_v37  ;;  %v5305_v59 = vadd.f32 %v5304_v57, %v5292_v52  ;;  %v5317_v63 = vpop.f32.mrf.mxu3  ;;  %v5293_v0 = vpop.f32.mrf.mxu1  ;;  %v8906_v37 = vld [vmem:[%s11454_s1 + $0x620] sm:$0xff]  ;;  %v8912_v52 = vld [vmem:[%s11454_s1 + $0x650] sm:$0xff]  ;;  %v29_v60 = vld [vmem:[%s11453_s0 + $0x38] sm:$0xff] }
  0xa8   :  { %5556 = vmatpush.bf16.msrb.mxu2 %v8892_v38  ;;  %v8914_v38 = vld [vmem:[%s11454_s1 + $0x660] sm:$0xff]  ;;  %v8919_v0 = vld [vmem:[%s11454_s1 + $0x688] sm:$0xff]  ;;  %233 = vst [vmem:[#allocation1 + $0x20] ss:$4 sm:$0xff] %v29_v60 }
  0xa9   :  { %5569 = vmatpush.bf16.msrb.mxu3 %v8900_v39  ;;  %v10007_v3 = vadd.f32 %v5317_v63, %v5305_v59  ;;  %v8922_v39 = vld [vmem:[%s11454_s1 + $0x6a0] sm:$0xff]  ;;  %v8903_v59 = vld [vmem:[%s11454_s1 + $0x608] sm:$0xff] }
  0xaa   :  { %5531 = vmatpush.bf16.msrb.mxu0 %v8875_v40  ;;  %v8911_v63 = vld [vmem:[%s11454_s1 + $0x648] sm:$0xff]  ;;  %v8934_v60 = vld [vmem:[%s11454_s1 + $0x700] sm:$0xff] }
  0xab   :  { %5544 = vmatpush.bf16.msrb.mxu1 %v8883_v41 }
  0xac   :  { %5557 = vmatpush.bf16.msrb.mxu2 %v8891_v42 }
  0xad   :  { %5570 = vmatpush.bf16.msrb.mxu3 %v8899_v44  ;;  %v8905_v44 = vld [vmem:[%s11454_s1 + $0x618] sm:$0xff] }
  0xae   :  { %5532 = vmatpush.bf16.msrb.mxu0 %v8874_v45  ;;  %v5306_v11 = vpop.f32.mrf.mxu2 }
  0xaf   :  { %5545 = vmatpush.bf16.msrb.mxu1 %v8882_v47  ;;  %v5319_v20 = vpop.f32.mrf.mxu3  ;;  %v8921_v47 = vld [vmem:[%s11454_s1 + $0x698] sm:$0xff] }
  0xb0   :  { %5558 = vmatpush.bf16.msrb.mxu2 %v8890_v48  ;;  %v8949_v11 = vld [vmem:[%s11454_s1 + $0x778] sm:$0xff]  ;;  %v434_v20 = vpack.c.bf16 %v240_v15, %v240_v15  ;;  %v8988_v15 = vld [vmem:[%s11454_s1 + $0x8b0] sm:$0xff] }
  0xb1   :  { %5571 = vmatpush.bf16.msrb.mxu3 %v8898_v51  ;;  %v8904_v51 = vld [vmem:[%s11454_s1 + $0x610] sm:$0xff] }
  0xb2   :  { %5533 = vmatpush.bf16.msrb.mxu0 %v8873_v53  ;;  %v8920_v53 = vld [vmem:[%s11454_s1 + $0x690] sm:$0xff] }
  0xb3   :  { %5546 = vmatpush.bf16.msrb.mxu1 %v8881_v54 }
  0xb4   :  { %5559 = vmatpush.bf16.msrb.mxu2 %v8889_v55 }
  0xb5   :  { %5572 = vmatpush.bf16.msrb.mxu3 %v8897_v56 }
  0xb6   :  { %5534 = vmatpush.bf16.msrb.mxu0 %v8872_v58  ;;  %v8928_v58 = vld [vmem:[%s11454_s1 + $0x6d0] sm:$0xff] }
  0xb7   :  { %5547 = vmatpush.bf16.msrb.mxu1 %v8880_v61  ;;  %v48_v61 = vld [vmem:[%s11453_s0 + $0xce] sm:$0xff] }
  0xb8   :  { %5560 = vmatpush.bf16.msrb.mxu2 %v8888_v62  ;;  %v67_v62 = vld [vmem:[%s11453_s0 + $0x164] sm:$0xff]  ;;  %234 = vst [vmem:[#allocation1 + $0x21] ss:$4 sm:$0xff] %v48_v61 }
  0xb9   :  { %5573 = vmatpush.bf16.msrb.mxu3 %v8896_v1  ;;  %235 = vst [vmem:[#allocation1 + $0x22] ss:$4 sm:$0xff] %v67_v62  ;;  %v8942_v61 = vld [vmem:[%s11454_s1 + $0x740] sm:$0xff] }
  0xba   :  { %5535 = vmatpush.bf16.msrb.mxu0 %v8871_v2  ;;  %v86_v2 = vld [vmem:[%s11453_s0 + $0x1fa] sm:$0xff] }
  0xbb   :  { %5548 = vmatpush.bf16.msrb.mxu1 %v8879_v7  ;;  %236 = vst [vmem:[#allocation1 + $0x23] ss:$4 sm:$0xff] %v86_v2  ;;  %v237_v7 = vld.sshfl [vmem:[#allocation1] sm:$0xff pattern:$0x73625140]  ;;  %v8973_v2 = vld [vmem:[%s11454_s1 + $0x838] sm:$0xff] }
  0xbc   :  { %5561 = vmatpush.bf16.msrb.mxu2 %v8887_v8  ;;  %v239_v8 = vld.sshfl [vmem:[#allocation1 + $0x10] sm:$0xff pattern:$0x73625140]  ;;  %v431_v16 = vpack.c.bf16 %v237_v7, %v237_v7  ;;  %v8950_v62 = vld [vmem:[%s11454_s1 + $0x780] sm:$0xff] }
  0xbd   :  { %5574 = vmatpush.bf16.msrb.mxu3 %v8895_v10  ;;  %v8941_v10 = vld [vmem:[%s11454_s1 + $0x738] sm:$0xff] }
  0xbe   :  { %5536 = vmatpush.bf16.msrb.mxu0 %v8870_v12  ;;  %v5330_v40 = vpop.f32.mrf.mxu0  ;;  %v238_v12 = vld.sshfl [vmem:[#allocation1 + $0x8] sm:$0xff pattern:$0x73625140] }
  0xbf   :  { %5549 = vmatpush.bf16.msrb.mxu1 %v8878_v13  ;;  %v5343_v41 = vpop.f32.mrf.mxu1  ;;  %v5331_v42 = vadd.f32 %v5330_v40, %v10007_v3  ;;  %v8927_v3 = vld [vmem:[%s11454_s1 + $0x6c8] sm:$0xff]  ;;  %v8957_v13 = vld [vmem:[%s11454_s1 + $0x7b8] sm:$0xff]  ;;  %v432_v19 = vpack.c.bf16 %v238_v12, %v238_v12 }
  0xc0   :  { %5562 = vmatpush.bf16.msrb.mxu2 %v8886_v14  ;;  %v8926_v14 = vld [vmem:[%s11454_s1 + $0x6c0] sm:$0xff] }
  0xc1   :  { %5575 = vmatpush.bf16.msrb.mxu3 %v8894_v22  ;;  %5537 = vmatmul.bf16.vlgmr.msrb.gmra.mxu0 %v427_v24  ;;  %v5344_v45 = vadd.f32 %v5343_v41, %v5331_v42  ;;  %v8948_v22 = vld [vmem:[%s11454_s1 + $0x770] sm:$0xff]  ;;  %v8961_v42 = vld [vmem:[%s11454_s1 + $0x7d8] sm:$0xff] }
  0xc2   :  { %5581 = vmatpush.bf16.msra.mxu0 %v8909_v17  ;;  %5550 = vmatmul.bf16.vlgmr.msrb.gmra.mxu1 %v428_v27  ;;  %v433_v17 = vpack.c.bf16 %v239_v8, %v239_v8  ;;  %v8964_v24 = vld [vmem:[%s11454_s1 + $0x7f0] sm:$0xff]  ;;  %v8955_v27 = vld [vmem:[%s11454_s1 + $0x7a8] sm:$0xff]  ;;  %v244_v7 = vld.sshfl [vmem:[#allocation1 + $0x38] sm:$0xff pattern:$0x73625140] }
  0xc3   :  { %5594 = vmatpush.bf16.msra.mxu1 %v8917_v18  ;;  %5563 = vmatmul.bf16.vlgmr.msrb.gmra.mxu2 %v429_v25  ;;  %v8965_v18 = vld [vmem:[%s11454_s1 + $0x7f8] sm:$0xff]  ;;  %v8939_v25 = vld [vmem:[%s11454_s1 + $0x728] sm:$0xff]  ;;  %v438_v12 = vpack.c.bf16 %v244_v7, %v244_v7  ;;  %v9020_v7 = vld [vmem:[%s11454_s1 + $0x9b0] sm:$0xff] }
  0xc4   :  { %5607 = vmatpush.bf16.msra.mxu2 %v8925_v21  ;;  %5576 = vmatmul.bf16.vlgmr.msrb.gmra.mxu3 %v430_v28  ;;  %v8940_v21 = vld [vmem:[%s11454_s1 + $0x730] sm:$0xff]  ;;  %v8963_v28 = vld [vmem:[%s11454_s1 + $0x7e8] sm:$0xff] }
  0xc5   :  { %5620 = vmatpush.bf16.msra.mxu3 %v8933_v26  ;;  %v8947_v26 = vld [vmem:[%s11454_s1 + $0x768] sm:$0xff] }
  0xc6   :  { %5582 = vmatpush.bf16.msra.mxu0 %v8908_v29  ;;  %v5356_v48 = vpop.f32.mrf.mxu2  ;;  %v5332_v55 = vpop.f32.mrf.mxu0 }
  0xc7   :  { %5595 = vmatpush.bf16.msra.mxu1 %v8916_v30  ;;  %v5357_v50 = vadd.f32 %v5356_v48, %v5344_v45  ;;  %v5369_v54 = vpop.f32.mrf.mxu3  ;;  %v5345_v57 = vpop.f32.mrf.mxu1  ;;  %v8936_v45 = vld [vmem:[%s11454_s1 + $0x710] sm:$0xff]  ;;  %v8943_v55 = vld [vmem:[%s11454_s1 + $0x748] sm:$0xff] }
  0xc8   :  { %5608 = vmatpush.bf16.msra.mxu2 %v8924_v31  ;;  %v8938_v31 = vld [vmem:[%s11454_s1 + $0x720] sm:$0xff]  ;;  %v8952_v48 = vld [vmem:[%s11454_s1 + $0x790] sm:$0xff] }
  0xc9   :  { %5621 = vmatpush.bf16.msra.mxu3 %v8932_v32  ;;  %v10112_v56 = vadd.f32 %v5369_v54, %v5357_v50  ;;  %v8946_v32 = vld [vmem:[%s11454_s1 + $0x760] sm:$0xff]  ;;  %v8960_v50 = vld [vmem:[%s11454_s1 + $0x7d0] sm:$0xff] }
  0xca   :  { %5583 = vmatpush.bf16.msra.mxu0 %v8907_v33  ;;  %v8954_v33 = vld [vmem:[%s11454_s1 + $0x7a0] sm:$0xff]  ;;  %v68_v54 = vld [vmem:[%s11453_s0 + $0x16c] sm:$0xff] }
  0xcb   :  { %5596 = vmatpush.bf16.msra.mxu1 %v8915_v34  ;;  %247 = vst [vmem:[#allocation1 + $0x2] ss:$4 sm:$0xff] %v68_v54  ;;  %v8974_v54 = vld [vmem:[%s11454_s1 + $0x840] sm:$0xff] }
  0xcc   :  { %5609 = vmatpush.bf16.msra.mxu2 %v8923_v35 }
  0xcd   :  { %5622 = vmatpush.bf16.msra.mxu3 %v8931_v36  ;;  %v8962_v36 = vld [vmem:[%s11454_s1 + $0x7e0] sm:$0xff] }
  0xce   :  { %5584 = vmatpush.bf16.msra.mxu0 %v8906_v37  ;;  %v5358_v1 = vpop.f32.mrf.mxu2  ;;  %v8937_v37 = vld [vmem:[%s11454_s1 + $0x718] sm:$0xff] }
  0xcf   :  { %5597 = vmatpush.bf16.msra.mxu1 %v8914_v38  ;;  %v5371_v9 = vpop.f32.mrf.mxu3  ;;  %v8945_v38 = vld [vmem:[%s11454_s1 + $0x758] sm:$0xff]  ;;  %v243_v1 = vld.sshfl [vmem:[#allocation1 + $0x30] sm:$0xff pattern:$0x73625140] }
  0xd0   :  { %5610 = vmatpush.bf16.msra.mxu2 %v8922_v39  ;;  %v8953_v39 = vld [vmem:[%s11454_s1 + $0x798] sm:$0xff]  ;;  %v437_v9 = vpack.c.bf16 %v243_v1, %v243_v1 }
  0xd1   :  { %5623 = vmatpush.bf16.msra.mxu3 %v8930_v43 }
  0xd2   :  { %5585 = vmatpush.bf16.msra.mxu0 %v8905_v44 }
  0xd3   :  { %5598 = vmatpush.bf16.msra.mxu1 %v8913_v46 }
  0xd4   :  { %5611 = vmatpush.bf16.msra.mxu2 %v8921_v47  ;;  %v8944_v47 = vld [vmem:[%s11454_s1 + $0x750] sm:$0xff] }
  0xd5   :  { %5624 = vmatpush.bf16.msra.mxu3 %v8929_v49 }
  0xd6   :  { %5586 = vmatpush.bf16.msra.mxu0 %v8904_v51  ;;  %v8935_v51 = vld [vmem:[%s11454_s1 + $0x708] sm:$0xff] }
  0xd7   :  { %5599 = vmatpush.bf16.msra.mxu1 %v8912_v52  ;;  %v30_v52 = vld [vmem:[%s11453_s0 + $0x40] sm:$0xff] }
  0xd8   :  { %5612 = vmatpush.bf16.msra.mxu2 %v8920_v53  ;;  %v49_v53 = vld [vmem:[%s11453_s0 + $0xd6] sm:$0xff]  ;;  %245 = vst [vmem:[#allocation1] ss:$4 sm:$0xff] %v30_v52 }
  0xd9   :  { %5625 = vmatpush.bf16.msra.mxu3 %v8928_v58  ;;  %v87_v58 = vld [vmem:[%s11453_s0 + $0x202] sm:$0xff]  ;;  %246 = vst [vmem:[#allocation1 + $0x1] ss:$4 sm:$0xff] %v49_v53 }
  0xda   :  { %5587 = vmatpush.bf16.msra.mxu0 %v8903_v59  ;;  %v8959_v59 = vld [vmem:[%s11454_s1 + $0x7c8] sm:$0xff]  ;;  %248 = vst [vmem:[#allocation1 + $0x3] ss:$4 sm:$0xff] %v87_v58  ;;  %v8966_v53 = vld [vmem:[%s11454_s1 + $0x800] sm:$0xff]  ;;  %v9005_v58 = vld [vmem:[%s11454_s1 + $0x938] sm:$0xff] }
  0xdb   :  { %5600 = vmatpush.bf16.msra.mxu1 %v8911_v63 }
  0xdc   :  { %5613 = vmatpush.bf16.msra.mxu2 %v8919_v0  ;;  %v241_v0 = vld.sshfl [vmem:[#allocation1 + $0x20] sm:$0xff pattern:$0x73625140] }
  0xdd   :  { %5626 = vmatpush.bf16.msra.mxu3 %v8927_v3  ;;  %v8981_v3 = vld [vmem:[%s11454_s1 + $0x878] sm:$0xff]  ;;  %v435_v8 = vpack.c.bf16 %v241_v0, %v241_v0 }
  0xde   :  { %5588 = vmatpush.bf16.msra.mxu0 %v8902_v4  ;;  %v5382_v29 = vpop.f32.mrf.mxu0  ;;  %v242_v4 = vld.sshfl [vmem:[#allocation1 + $0x28] sm:$0xff pattern:$0x73625140] }
  0xdf   :  { %5601 = vmatpush.bf16.msra.mxu1 %v8910_v5  ;;  %v5383_v30 = vadd.f32 %v5382_v29, %v10112_v56  ;;  %v5395_v34 = vpop.f32.mrf.mxu1  ;;  %v8951_v56 = vld [vmem:[%s11454_s1 + $0x788] sm:$0xff]  ;;  %v8989_v5 = vld [vmem:[%s11454_s1 + $0x8b8] sm:$0xff] }
  0xe0   :  { %5614 = vmatpush.bf16.msra.mxu2 %v8918_v6  ;;  %v8958_v6 = vld [vmem:[%s11454_s1 + $0x7c0] sm:$0xff]  ;;  %v8969_v29 = vld [vmem:[%s11454_s1 + $0x818] sm:$0xff] }
  0xe1   :  { %5627 = vmatpush.bf16.msra.mxu3 %v8926_v14  ;;  %5589 = vmatmul.bf16.vlgmr.msra.gmra.mxu0 %v431_v16  ;;  %v5396_v35 = vadd.f32 %v5395_v34, %v5383_v30  ;;  %v8980_v14 = vld [vmem:[%s11454_s1 + $0x870] sm:$0xff]  ;;  %v8977_v30 = vld [vmem:[%s11454_s1 + $0x858] sm:$0xff] }
  0xe2   :  { %5633 = vmatpush.bf16.msrb.mxu0 %v8941_v10  ;;  %5602 = vmatmul.bf16.vlgmr.msra.gmra.mxu1 %v432_v19  ;;  %v8997_v10 = vld [vmem:[%s11454_s1 + $0x8f8] sm:$0xff]  ;;  %v8996_v16 = vld [vmem:[%s11454_s1 + $0x8f0] sm:$0xff]  ;;  %v8987_v19 = vld [vmem:[%s11454_s1 + $0x8a8] sm:$0xff] }
  0xe3   :  { %5646 = vmatpush.bf16.msrb.mxu1 %v8949_v11  ;;  %5615 = vmatmul.bf16.vlgmr.msra.gmra.mxu2 %v433_v17  ;;  %v436_v11 = vpack.c.bf16 %v242_v4, %v242_v4  ;;  %v8971_v17 = vld [vmem:[%s11454_s1 + $0x828] sm:$0xff]  ;;  %v8993_v34 = vld [vmem:[%s11454_s1 + $0x8d8] sm:$0xff] }
  0xe4   :  { %5659 = vmatpush.bf16.msrb.mxu2 %v8957_v13  ;;  %5628 = vmatmul.bf16.vlgmr.msra.gmra.mxu3 %v434_v20  ;;  %v8972_v13 = vld [vmem:[%s11454_s1 + $0x830] sm:$0xff]  ;;  %v8995_v20 = vld [vmem:[%s11454_s1 + $0x8e8] sm:$0xff] }
  0xe5   :  { %5672 = vmatpush.bf16.msrb.mxu3 %v8965_v18  ;;  %v8979_v18 = vld [vmem:[%s11454_s1 + $0x868] sm:$0xff] }
  0xe6   :  { %5634 = vmatpush.bf16.msrb.mxu0 %v8940_v21  ;;  %v5408_v40 = vpop.f32.mrf.mxu2  ;;  %v5384_v43 = vpop.f32.mrf.mxu0 }
  0xe7   :  { %5647 = vmatpush.bf16.msrb.mxu1 %v8948_v22  ;;  %v5409_v41 = vadd.f32 %v5408_v40, %v5396_v35  ;;  %v5421_v44 = vpop.f32.mrf.mxu3  ;;  %v5397_v49 = vpop.f32.mrf.mxu1  ;;  %v8976_v40 = vld [vmem:[%s11454_s1 + $0x850] sm:$0xff]  ;;  %v8967_v43 = vld [vmem:[%s11454_s1 + $0x808] sm:$0xff] }
  0xe8   :  { %5660 = vmatpush.bf16.msrb.mxu2 %v8956_v23  ;;  %v8970_v23 = vld [vmem:[%s11454_s1 + $0x820] sm:$0xff] }
  0xe9   :  { %5673 = vmatpush.bf16.msrb.mxu3 %v8964_v24  ;;  %v10217_v46 = vadd.f32 %v5421_v44, %v5409_v41  ;;  %v8984_v41 = vld [vmem:[%s11454_s1 + $0x890] sm:$0xff]  ;;  %v31_v44 = vld [vmem:[%s11453_s0 + $0x48] sm:$0xff] }
  0xea   :  { %5635 = vmatpush.bf16.msrb.mxu0 %v8939_v25  ;;  %v8978_v25 = vld [vmem:[%s11454_s1 + $0x860] sm:$0xff]  ;;  %249 = vst [vmem:[#allocation1 + $0x20] ss:$4 sm:$0xff] %v31_v44 }
  0xeb   :  { %5648 = vmatpush.bf16.msrb.mxu1 %v8947_v26  ;;  %v8986_v26 = vld [vmem:[%s11454_s1 + $0x8a0] sm:$0xff] }
  0xec   :  { %5661 = vmatpush.bf16.msrb.mxu2 %v8955_v27 }
  0xed   :  { %5674 = vmatpush.bf16.msrb.mxu3 %v8963_v28  ;;  %v8994_v28 = vld [vmem:[%s11454_s1 + $0x8e0] sm:$0xff] }
  0xee   :  { %5636 = vmatpush.bf16.msrb.mxu0 %v8938_v31  ;;  %v5410_v57 = vpop.f32.mrf.mxu2  ;;  %v8985_v31 = vld [vmem:[%s11454_s1 + $0x898] sm:$0xff] }
  0xef   :  { %5649 = vmatpush.bf16.msrb.mxu1 %v8946_v32  ;;  %v5423_v63 = vpop.f32.mrf.mxu3  ;;  %v255_v57 = vld.sshfl [vmem:[#allocation1 + $0x10] sm:$0xff pattern:$0x73625140] }
  0xf0   :  { %5662 = vmatpush.bf16.msrb.mxu2 %v8954_v33  ;;  %v256_v63 = vld.sshfl [vmem:[#allocation1 + $0x18] sm:$0xff pattern:$0x73625140]  ;;  %v441_v1 = vpack.c.bf16 %v255_v57, %v255_v57 }
  0xf1   :  { %5675 = vmatpush.bf16.msrb.mxu3 %v8962_v36  ;;  %v442_v4 = vpack.c.bf16 %v256_v63, %v256_v63  ;;  %v9052_v63 = vld [vmem:[%s11454_s1 + $0xab0] sm:$0xff] }
  0xf2   :  { %5637 = vmatpush.bf16.msrb.mxu0 %v8937_v37  ;;  %v8968_v37 = vld [vmem:[%s11454_s1 + $0x810] sm:$0xff] }
  0xf3   :  { %5650 = vmatpush.bf16.msrb.mxu1 %v8945_v38 }
  0xf4   :  { %5663 = vmatpush.bf16.msrb.mxu2 %v8953_v39 }
  0xf5   :  { %5676 = vmatpush.bf16.msrb.mxu3 %v8961_v42  ;;  %v8992_v42 = vld [vmem:[%s11454_s1 + $0x8d0] sm:$0xff] }
  0xf6   :  { %5638 = vmatpush.bf16.msrb.mxu0 %v8936_v45  ;;  %v50_v45 = vld [vmem:[%s11453_s0 + $0xde] sm:$0xff] }
  0xf7   :  { %5651 = vmatpush.bf16.msrb.mxu1 %v8944_v47  ;;  %v8975_v47 = vld [vmem:[%s11454_s1 + $0x848] sm:$0xff]  ;;  %250 = vst [vmem:[#allocation1 + $0x21] ss:$4 sm:$0xff] %v50_v45  ;;  %v8998_v45 = vld [vmem:[%s11454_s1 + $0x900] sm:$0xff] }
  0xf8   :  { %5664 = vmatpush.bf16.msrb.mxu2 %v8952_v48  ;;  %v8983_v48 = vld [vmem:[%s11454_s1 + $0x888] sm:$0xff] }
  0xf9   :  { %5677 = vmatpush.bf16.msrb.mxu3 %v8960_v50  ;;  %v88_v50 = vld [vmem:[%s11453_s0 + $0x20a] sm:$0xff] }
  0xfa   :  { %5639 = vmatpush.bf16.msrb.mxu0 %v8935_v51  ;;  %v8991_v51 = vld [vmem:[%s11454_s1 + $0x8c8] sm:$0xff]  ;;  %252 = vst [vmem:[#allocation1 + $0x23] ss:$4 sm:$0xff] %v88_v50  ;;  %v9037_v50 = vld [vmem:[%s11454_s1 + $0xa38] sm:$0xff] }
  0xfb   :  { %5652 = vmatpush.bf16.msrb.mxu1 %v8943_v55  ;;  %v8982_v55 = vld [vmem:[%s11454_s1 + $0x880] sm:$0xff] }
  0xfc   :  { %5665 = vmatpush.bf16.msrb.mxu2 %v8951_v56  ;;  %v253_v56 = vld.sshfl [vmem:[#allocation1] sm:$0xff pattern:$0x73625140] }
  0xfd   :  { %5678 = vmatpush.bf16.msrb.mxu3 %v8959_v59  ;;  %v9013_v59 = vld [vmem:[%s11454_s1 + $0x978] sm:$0xff]  ;;  %v439_v0 = vpack.c.bf16 %v253_v56, %v253_v56 }
  0xfe   :  { %5640 = vmatpush.bf16.msrb.mxu0 %v8934_v60  ;;  %v5434_v21 = vpop.f32.mrf.mxu0  ;;  %v254_v60 = vld.sshfl [vmem:[#allocation1 + $0x8] sm:$0xff pattern:$0x73625140] }
  0xff   :  { %5653 = vmatpush.bf16.msrb.mxu1 %v8942_v61  ;;  %v5435_v22 = vadd.f32 %v5434_v21, %v10217_v46  ;;  %v5447_v24 = vpop.f32.mrf.mxu1  ;;  %v69_v46 = vld [vmem:[%s11453_s0 + $0x174] sm:$0xff] }
 0x100   :  { %5666 = vmatpush.bf16.msrb.mxu2 %v8950_v62  ;;  %251 = vst [vmem:[#allocation1 + $0x22] ss:$4 sm:$0xff] %v69_v46  ;;  %v9021_v61 = vld [vmem:[%s11454_s1 + $0x9b8] sm:$0xff]  ;;  %v8990_v62 = vld [vmem:[%s11454_s1 + $0x8c0] sm:$0xff] }
 0x101   :  { %5679 = vmatpush.bf16.msrb.mxu3 %v8958_v6  ;;  %5641 = vmatmul.bf16.vlgmr.msrb.gmra.mxu0 %v435_v8  ;;  %v5448_v27 = vadd.f32 %v5447_v24, %v5435_v22  ;;  %v9012_v6 = vld [vmem:[%s11454_s1 + $0x970] sm:$0xff]  ;;  %v9001_v21 = vld [vmem:[%s11454_s1 + $0x918] sm:$0xff]  ;;  %v9006_v46 = vld [vmem:[%s11454_s1 + $0x940] sm:$0xff] }
 0x102   :  { %5685 = vmatpush.bf16.msra.mxu0 %v8973_v2  ;;  %5654 = vmatmul.bf16.vlgmr.msrb.gmra.mxu1 %v436_v11  ;;  %v9029_v2 = vld [vmem:[%s11454_s1 + $0x9f8] sm:$0xff]  ;;  %v9028_v8 = vld [vmem:[%s11454_s1 + $0x9f0] sm:$0xff]  ;;  %v9019_v11 = vld [vmem:[%s11454_s1 + $0x9a8] sm:$0xff] }
 0x103   :  { %5698 = vmatpush.bf16.msra.mxu1 %v8981_v3  ;;  %5667 = vmatmul.bf16.vlgmr.msrb.gmra.mxu2 %v437_v9  ;;  %v440_v3 = vpack.c.bf16 %v254_v60, %v254_v60  ;;  %v9003_v9 = vld [vmem:[%s11454_s1 + $0x928] sm:$0xff]  ;;  %v9009_v22 = vld [vmem:[%s11454_s1 + $0x958] sm:$0xff] }
 0x104   :  { %5711 = vmatpush.bf16.msra.mxu2 %v8989_v5  ;;  %5680 = vmatmul.bf16.vlgmr.msrb.gmra.mxu3 %v438_v12  ;;  %v9004_v5 = vld [vmem:[%s11454_s1 + $0x930] sm:$0xff]  ;;  %v9027_v12 = vld [vmem:[%s11454_s1 + $0x9e8] sm:$0xff] }
 0x105   :  { %5724 = vmatpush.bf16.msra.mxu3 %v8997_v10  ;;  %v9011_v10 = vld [vmem:[%s11454_s1 + $0x968] sm:$0xff] }
 0x106   :  { %5686 = vmatpush.bf16.msra.mxu0 %v8972_v13  ;;  %v5460_v32 = vpop.f32.mrf.mxu2  ;;  %v5436_v36 = vpop.f32.mrf.mxu0 }
 0x107   :  { %5699 = vmatpush.bf16.msra.mxu1 %v8980_v14  ;;  %v5461_v33 = vadd.f32 %v5460_v32, %v5448_v27  ;;  %v5473_v35 = vpop.f32.mrf.mxu3  ;;  %v5449_v38 = vpop.f32.mrf.mxu1  ;;  %v9008_v32 = vld [vmem:[%s11454_s1 + $0x950] sm:$0xff] }
 0x108   :  { %5712 = vmatpush.bf16.msra.mxu2 %v8988_v15  ;;  %v9002_v15 = vld [vmem:[%s11454_s1 + $0x920] sm:$0xff]  ;;  %v32_v36 = vld [vmem:[%s11453_s0 + $0x50] sm:$0xff] }
 0x109   :  { %5725 = vmatpush.bf16.msra.mxu3 %v8996_v16  ;;  %v10328_v39 = vadd.f32 %v5473_v35, %v5461_v33  ;;  %v9016_v33 = vld [vmem:[%s11454_s1 + $0x990] sm:$0xff]  ;;  %v8999_v35 = vld [vmem:[%s11454_s1 + $0x908] sm:$0xff]  ;;  %v70_v38 = vld [vmem:[%s11453_s0 + $0x17c] sm:$0xff]  ;;  %261 = vst [vmem:[#allocation1] ss:$4 sm:$0xff] %v32_v36 }
 0x10a   :  { %5687 = vmatpush.bf16.msra.mxu0 %v8971_v17  ;;  %v9010_v17 = vld [vmem:[%s11454_s1 + $0x960] sm:$0xff]  ;;  %263 = vst [vmem:[#allocation1 + $0x2] ss:$4 sm:$0xff] %v70_v38 }
 0x10b   :  { %5700 = vmatpush.bf16.msra.mxu1 %v8979_v18  ;;  %v9018_v18 = vld [vmem:[%s11454_s1 + $0x9a0] sm:$0xff] }
 0x10c   :  { %5713 = vmatpush.bf16.msra.mxu2 %v8987_v19  ;;  %v9038_v38 = vld [vmem:[%s11454_s1 + $0xa40] sm:$0xff] }
 0x10d   :  { %5726 = vmatpush.bf16.msra.mxu3 %v8995_v20  ;;  %v9026_v20 = vld [vmem:[%s11454_s1 + $0x9e0] sm:$0xff] }
 0x10e   :  { %5688 = vmatpush.bf16.msra.mxu0 %v8970_v23  ;;  %v5462_v49 = vpop.f32.mrf.mxu2  ;;  %v9017_v23 = vld [vmem:[%s11454_s1 + $0x998] sm:$0xff] }
 0x10f   :  { %5701 = vmatpush.bf16.msra.mxu1 %v8978_v25  ;;  %v5475_v52 = vpop.f32.mrf.mxu3  ;;  %v259_v49 = vld.sshfl [vmem:[#allocation1 + $0x30] sm:$0xff pattern:$0x73625140] }
 0x110   :  { %5714 = vmatpush.bf16.msra.mxu2 %v8986_v26  ;;  %v9025_v26 = vld [vmem:[%s11454_s1 + $0x9d8] sm:$0xff]  ;;  %v258_v52 = vld.sshfl [vmem:[#allocation1 + $0x28] sm:$0xff pattern:$0x73625140]  ;;  %v445_v57 = vpack.c.bf16 %v259_v49, %v259_v49 }
 0x111   :  { %5727 = vmatpush.bf16.msra.mxu3 %v8994_v28 }
 0x112   :  { %5689 = vmatpush.bf16.msra.mxu0 %v8969_v29 }
 0x113   :  { %5702 = vmatpush.bf16.msra.mxu1 %v8977_v30  ;;  %v9000_v30 = vld [vmem:[%s11454_s1 + $0x910] sm:$0xff] }
 0x114   :  { %5715 = vmatpush.bf16.msra.mxu2 %v8985_v31 }
 0x115   :  { %5728 = vmatpush.bf16.msra.mxu3 %v8993_v34  ;;  %v9024_v34 = vld [vmem:[%s11454_s1 + $0x9d0] sm:$0xff] }
 0x116   :  { %5690 = vmatpush.bf16.msra.mxu0 %v8968_v37  ;;  %v51_v37 = vld [vmem:[%s11453_s0 + $0xe6] sm:$0xff] }
 0x117   :  { %5703 = vmatpush.bf16.msra.mxu1 %v8976_v40  ;;  %v9015_v40 = vld [vmem:[%s11454_s1 + $0x988] sm:$0xff]  ;;  %262 = vst [vmem:[#allocation1 + $0x1] ss:$4 sm:$0xff] %v51_v37  ;;  %v9030_v37 = vld [vmem:[%s11454_s1 + $0xa00] sm:$0xff] }
 0x118   :  { %5716 = vmatpush.bf16.msra.mxu2 %v8984_v41 }
 0x119   :  { %5729 = vmatpush.bf16.msra.mxu3 %v8992_v42  ;;  %v89_v42 = vld [vmem:[%s11453_s0 + $0x212] sm:$0xff] }
 0x11a   :  { %5691 = vmatpush.bf16.msra.mxu0 %v8967_v43  ;;  %v9023_v43 = vld [vmem:[%s11454_s1 + $0x9c8] sm:$0xff]  ;;  %264 = vst [vmem:[#allocation1 + $0x3] ss:$4 sm:$0xff] %v89_v42  ;;  %v9069_v42 = vld [vmem:[%s11454_s1 + $0xb38] sm:$0xff] }
 0x11b   :  { %5704 = vmatpush.bf16.msra.mxu1 %v8975_v47  ;;  %v9014_v47 = vld [vmem:[%s11454_s1 + $0x980] sm:$0xff] }
 0x11c   :  { %5717 = vmatpush.bf16.msra.mxu2 %v8983_v48  ;;  %v257_v48 = vld.sshfl [vmem:[#allocation1 + $0x20] sm:$0xff pattern:$0x73625140] }
 0x11d   :  { %5730 = vmatpush.bf16.msra.mxu3 %v8991_v51  ;;  %v9045_v51 = vld [vmem:[%s11454_s1 + $0xa78] sm:$0xff]  ;;  %v443_v56 = vpack.c.bf16 %v257_v48, %v257_v48 }
 0x11e   :  { %5692 = vmatpush.bf16.msra.mxu0 %v8966_v53  ;;  %v5486_v13 = vpop.f32.mrf.mxu0  ;;  %v9053_v53 = vld [vmem:[%s11454_s1 + $0xab8] sm:$0xff] }
 0x11f   :  { %5705 = vmatpush.bf16.msra.mxu1 %v8974_v54  ;;  %v5487_v14 = vadd.f32 %v5486_v13, %v10328_v39  ;;  %v5499_v16 = vpop.f32.mrf.mxu1  ;;  %v9007_v39 = vld [vmem:[%s11454_s1 + $0x948] sm:$0xff]  ;;  %v9022_v54 = vld [vmem:[%s11454_s1 + $0x9c0] sm:$0xff]  ;;  %v9033_v13 = vld [vmem:[%s11454_s1 + $0xa18] sm:$0xff] }
 0x120   :  { %5718 = vmatpush.bf16.msra.mxu2 %v8982_v55  ;;  %v260_v55 = vld.sshfl [vmem:[#allocation1 + $0x38] sm:$0xff pattern:$0x73625140] }
 0x121   :  { %5731 = vmatpush.bf16.msra.mxu3 %v8990_v62  ;;  %5693 = vmatmul.bf16.vlgmr.msra.gmra.mxu0 %v439_v0  ;;  %v5500_v19 = vadd.f32 %v5499_v16, %v5487_v14  ;;  %v446_v60 = vpack.c.bf16 %v260_v55, %v260_v55  ;;  %v9044_v62 = vld [vmem:[%s11454_s1 + $0xa70] sm:$0xff]  ;;  %v9041_v14 = vld [vmem:[%s11454_s1 + $0xa58] sm:$0xff] }
 0x122   :  { %5737 = vmatpush.bf16.msrb.mxu0 %v9005_v58  ;;  %5706 = vmatmul.bf16.vlgmr.msra.gmra.mxu1 %v440_v3  ;;  %v9061_v58 = vld [vmem:[%s11454_s1 + $0xaf8] sm:$0xff]  ;;  %v9060_v0 = vld [vmem:[%s11454_s1 + $0xaf0] sm:$0xff]  ;;  %v9051_v3 = vld [vmem:[%s11454_s1 + $0xaa8] sm:$0xff] }
 0x123   :  { %5750 = vmatpush.bf16.msrb.mxu1 %v9013_v59  ;;  %5719 = vmatmul.bf16.vlgmr.msra.gmra.mxu2 %v441_v1  ;;  %v444_v59 = vpack.c.bf16 %v258_v52, %v258_v52  ;;  %v9035_v1 = vld [vmem:[%s11454_s1 + $0xa28] sm:$0xff]  ;;  %v9084_v55 = vld [vmem:[%s11454_s1 + $0xbb0] sm:$0xff] }
 0x124   :  { %5763 = vmatpush.bf16.msrb.mxu2 %v9021_v61  ;;  %5732 = vmatmul.bf16.vlgmr.msra.gmra.mxu3 %v442_v4  ;;  %v9036_v61 = vld [vmem:[%s11454_s1 + $0xa30] sm:$0xff]  ;;  %v9059_v4 = vld [vmem:[%s11454_s1 + $0xae8] sm:$0xff] }
 0x125   :  { %5776 = vmatpush.bf16.msrb.mxu3 %v9029_v2  ;;  %v9043_v2 = vld [vmem:[%s11454_s1 + $0xa68] sm:$0xff] }
 0x126   :  { %5738 = vmatpush.bf16.msrb.mxu0 %v9004_v5  ;;  %v5512_v24 = vpop.f32.mrf.mxu2  ;;  %v5488_v28 = vpop.f32.mrf.mxu0 }
 0x127   :  { %5751 = vmatpush.bf16.msrb.mxu1 %v9012_v6  ;;  %v5513_v25 = vadd.f32 %v5512_v24, %v5500_v19  ;;  %v5525_v27 = vpop.f32.mrf.mxu3  ;;  %v5501_v31 = vpop.f32.mrf.mxu1  ;;  %v9040_v24 = vld [vmem:[%s11454_s1 + $0xa50] sm:$0xff]  ;;  %v33_v28 = vld [vmem:[%s11453_s0 + $0x58] sm:$0xff] }
 0x128   :  { %5764 = vmatpush.bf16.msrb.mxu2 %v9020_v7  ;;  %v9034_v7 = vld [vmem:[%s11454_s1 + $0xa20] sm:$0xff]  ;;  %v9039_v31 = vld [vmem:[%s11454_s1 + $0xa48] sm:$0xff]  ;;  %265 = vst [vmem:[#allocation1 + $0x20] ss:$4 sm:$0xff] %v33_v28 }
 0x129   :  { %5777 = vmatpush.bf16.msrb.mxu3 %v9028_v8  ;;  %v10436_v29 = vadd.f32 %v5525_v27, %v5513_v25  ;;  %v9048_v25 = vld [vmem:[%s11454_s1 + $0xa90] sm:$0xff]  ;;  %v9031_v27 = vld [vmem:[%s11454_s1 + $0xa08] sm:$0xff] }
 0x12a   :  { %5739 = vmatpush.bf16.msrb.mxu0 %v9003_v9  ;;  %v9042_v9 = vld [vmem:[%s11454_s1 + $0xa60] sm:$0xff] }
 0x12b   :  { %5752 = vmatpush.bf16.msrb.mxu1 %v9011_v10  ;;  %v9050_v10 = vld [vmem:[%s11454_s1 + $0xaa0] sm:$0xff] }
 0x12c   :  { %5765 = vmatpush.bf16.msrb.mxu2 %v9019_v11 }
 0x12d   :  { %5778 = vmatpush.bf16.msrb.mxu3 %v9027_v12  ;;  %v9058_v12 = vld [vmem:[%s11454_s1 + $0xae0] sm:$0xff] }
 0x12e   :  { %5740 = vmatpush.bf16.msrb.mxu0 %v9002_v15  ;;  %v5514_v41 = vpop.f32.mrf.mxu2  ;;  %v9049_v15 = vld [vmem:[%s11454_s1 + $0xa98] sm:$0xff] }
 0x12f   :  { %5753 = vmatpush.bf16.msrb.mxu1 %v9010_v17  ;;  %v5527_v44 = vpop.f32.mrf.mxu3  ;;  %v271_v41 = vld.sshfl [vmem:[#allocation1 + $0x10] sm:$0xff pattern:$0x73625140] }
 0x130   :  { %5766 = vmatpush.bf16.msrb.mxu2 %v9018_v18  ;;  %v9057_v18 = vld [vmem:[%s11454_s1 + $0xad8] sm:$0xff]  ;;  %v270_v44 = vld.sshfl [vmem:[#allocation1 + $0x8] sm:$0xff pattern:$0x73625140]  ;;  %v449_v49 = vpack.c.bf16 %v271_v41, %v271_v41 }
 0x131   :  { %5779 = vmatpush.bf16.msrb.mxu3 %v9026_v20 }
 0x132   :  { %5741 = vmatpush.bf16.msrb.mxu0 %v9001_v21 }
 0x133   :  { %5754 = vmatpush.bf16.msrb.mxu1 %v9009_v22  ;;  %v9032_v22 = vld [vmem:[%s11454_s1 + $0xa10] sm:$0xff] }
 0x134   :  { %5767 = vmatpush.bf16.msrb.mxu2 %v9017_v23 }
 0x135   :  { %5780 = vmatpush.bf16.msrb.mxu3 %v9025_v26  ;;  %v9056_v26 = vld [vmem:[%s11454_s1 + $0xad0] sm:$0xff] }
 0x136   :  { %5742 = vmatpush.bf16.msrb.mxu0 %v9000_v30  ;;  %v71_v30 = vld [vmem:[%s11453_s0 + $0x184] sm:$0xff] }
 0x137   :  { %5755 = vmatpush.bf16.msrb.mxu1 %v9008_v32  ;;  %v9047_v32 = vld [vmem:[%s11454_s1 + $0xa88] sm:$0xff]  ;;  %267 = vst [vmem:[#allocation1 + $0x22] ss:$4 sm:$0xff] %v71_v30  ;;  %v9070_v30 = vld [vmem:[%s11454_s1 + $0xb40] sm:$0xff] }
 0x138   :  { %5768 = vmatpush.bf16.msrb.mxu2 %v9016_v33 }
 0x139   :  { %5781 = vmatpush.bf16.msrb.mxu3 %v9024_v34  ;;  %v90_v34 = vld [vmem:[%s11453_s0 + $0x21a] sm:$0xff] }
 0x13a   :  { %5743 = vmatpush.bf16.msrb.mxu0 %v8999_v35  ;;  %v9055_v35 = vld [vmem:[%s11454_s1 + $0xac8] sm:$0xff]  ;;  %268 = vst [vmem:[#allocation1 + $0x23] ss:$4 sm:$0xff] %v90_v34  ;;  %v9101_v34 = vld [vmem:[%s11454_s1 + $0xc38] sm:$0xff] }
 0x13b   :  { %5756 = vmatpush.bf16.msrb.mxu1 %v9007_v39  ;;  %v9046_v39 = vld [vmem:[%s11454_s1 + $0xa80] sm:$0xff] }
 0x13c   :  { %5769 = vmatpush.bf16.msrb.mxu2 %v9015_v40  ;;  %v269_v40 = vld.sshfl [vmem:[#allocation1] sm:$0xff pattern:$0x73625140] }
 0x13d   :  { %5782 = vmatpush.bf16.msrb.mxu3 %v9023_v43  ;;  %v9077_v43 = vld [vmem:[%s11454_s1 + $0xb78] sm:$0xff]  ;;  %v447_v48 = vpack.c.bf16 %v269_v40, %v269_v40 }
 0x13e   :  { %5744 = vmatpush.bf16.msrb.mxu0 %v8998_v45  ;;  %v5538_v5 = vpop.f32.mrf.mxu0  ;;  %v9085_v45 = vld [vmem:[%s11454_s1 + $0xbb8] sm:$0xff] }
 0x13f   :  { %5757 = vmatpush.bf16.msrb.mxu1 %v9006_v46  ;;  %v5539_v6 = vadd.f32 %v5538_v5, %v10436_v29  ;;  %v5551_v8 = vpop.f32.mrf.mxu1  ;;  %v52_v29 = vld [vmem:[%s11453_s0 + $0xee] sm:$0xff]  ;;  %v9054_v46 = vld [vmem:[%s11454_s1 + $0xac0] sm:$0xff]  ;;  %v9065_v5 = vld [vmem:[%s11454_s1 + $0xb18] sm:$0xff] }
 0x140   :  { %5770 = vmatpush.bf16.msrb.mxu2 %v9014_v47  ;;  %266 = vst [vmem:[#allocation1 + $0x21] ss:$4 sm:$0xff] %v52_v29  ;;  %v272_v47 = vld.sshfl [vmem:[#allocation1 + $0x18] sm:$0xff pattern:$0x73625140]  ;;  %v9062_v29 = vld [vmem:[%s11454_s1 + $0xb00] sm:$0xff] }
 0x141   :  { %5783 = vmatpush.bf16.msrb.mxu3 %v9022_v54  ;;  %5745 = vmatmul.bf16.vlgmr.msrb.gmra.mxu0 %v443_v56  ;;  %v5552_v11 = vadd.f32 %v5551_v8, %v5539_v6  ;;  %v450_v52 = vpack.c.bf16 %v272_v47, %v272_v47  ;;  %v9076_v54 = vld [vmem:[%s11454_s1 + $0xb70] sm:$0xff]  ;;  %v9073_v6 = vld [vmem:[%s11454_s1 + $0xb58] sm:$0xff] }
 0x142   :  { %5789 = vmatpush.bf16.msra.mxu0 %v9037_v50  ;;  %5758 = vmatmul.bf16.vlgmr.msrb.gmra.mxu1 %v444_v59  ;;  %v9093_v50 = vld [vmem:[%s11454_s1 + $0xbf8] sm:$0xff]  ;;  %v9092_v56 = vld [vmem:[%s11454_s1 + $0xbf0] sm:$0xff]  ;;  %v9083_v59 = vld [vmem:[%s11454_s1 + $0xba8] sm:$0xff] }
 0x143   :  { %5802 = vmatpush.bf16.msra.mxu1 %v9045_v51  ;;  %5771 = vmatmul.bf16.vlgmr.msrb.gmra.mxu2 %v445_v57  ;;  %v448_v51 = vpack.c.bf16 %v270_v44, %v270_v44  ;;  %v9067_v57 = vld [vmem:[%s11454_s1 + $0xb28] sm:$0xff]  ;;  %v9116_v47 = vld [vmem:[%s11454_s1 + $0xcb0] sm:$0xff] }
 0x144   :  { %5815 = vmatpush.bf16.msra.mxu2 %v9053_v53  ;;  %5784 = vmatmul.bf16.vlgmr.msrb.gmra.mxu3 %v446_v60  ;;  %v9068_v53 = vld [vmem:[%s11454_s1 + $0xb30] sm:$0xff]  ;;  %v9091_v60 = vld [vmem:[%s11454_s1 + $0xbe8] sm:$0xff] }
 0x145   :  { %5828 = vmatpush.bf16.msra.mxu3 %v9061_v58  ;;  %v9075_v58 = vld [vmem:[%s11454_s1 + $0xb68] sm:$0xff] }
 0x146   :  { %5790 = vmatpush.bf16.msra.mxu0 %v9036_v61  ;;  %v5564_v16 = vpop.f32.mrf.mxu2  ;;  %v5540_v20 = vpop.f32.mrf.mxu0 }
 0x147   :  { %5803 = vmatpush.bf16.msra.mxu1 %v9044_v62  ;;  %v5565_v17 = vadd.f32 %v5564_v16, %v5552_v11  ;;  %v5577_v19 = vpop.f32.mrf.mxu3  ;;  %v5553_v23 = vpop.f32.mrf.mxu1  ;;  %v9072_v16 = vld [vmem:[%s11454_s1 + $0xb50] sm:$0xff]  ;;  %v34_v20 = vld [vmem:[%s11453_s0 + $0x60] sm:$0xff] }
 0x148   :  { %5816 = vmatpush.bf16.msra.mxu2 %v9052_v63  ;;  %v9066_v63 = vld [vmem:[%s11454_s1 + $0xb20] sm:$0xff]  ;;  %v9071_v23 = vld [vmem:[%s11454_s1 + $0xb48] sm:$0xff]  ;;  %277 = vst [vmem:[#allocation1] ss:$4 sm:$0xff] %v34_v20 }
 0x149   :  { %5829 = vmatpush.bf16.msra.mxu3 %v9060_v0  ;;  %v10547_v21 = vadd.f32 %v5577_v19, %v5565_v17  ;;  %v9080_v17 = vld [vmem:[%s11454_s1 + $0xb90] sm:$0xff]  ;;  %v9063_v19 = vld [vmem:[%s11454_s1 + $0xb08] sm:$0xff] }
 0x14a   :  { %5791 = vmatpush.bf16.msra.mxu0 %v9035_v1  ;;  %v9074_v1 = vld [vmem:[%s11454_s1 + $0xb60] sm:$0xff] }
 0x14b   :  { %5804 = vmatpush.bf16.msra.mxu1 %v9043_v2  ;;  %v9082_v2 = vld [vmem:[%s11454_s1 + $0xba0] sm:$0xff] }
 0x14c   :  { %5817 = vmatpush.bf16.msra.mxu2 %v9051_v3 }
 0x14d   :  { %5830 = vmatpush.bf16.msra.mxu3 %v9059_v4  ;;  %v9090_v4 = vld [vmem:[%s11454_s1 + $0xbe0] sm:$0xff] }
 0x14e   :  { %5792 = vmatpush.bf16.msra.mxu0 %v9034_v7  ;;  %v5566_v33 = vpop.f32.mrf.mxu2  ;;  %v9081_v7 = vld [vmem:[%s11454_s1 + $0xb98] sm:$0xff] }
 0x14f   :  { %5805 = vmatpush.bf16.msra.mxu1 %v9042_v9  ;;  %v5579_v36 = vpop.f32.mrf.mxu3  ;;  %v275_v33 = vld.sshfl [vmem:[#allocation1 + $0x30] sm:$0xff pattern:$0x73625140] }
 0x150   :  { %5818 = vmatpush.bf16.msra.mxu2 %v9050_v10  ;;  %v9089_v10 = vld [vmem:[%s11454_s1 + $0xbd8] sm:$0xff]  ;;  %v274_v36 = vld.sshfl [vmem:[#allocation1 + $0x28] sm:$0xff pattern:$0x73625140]  ;;  %v453_v41 = vpack.c.bf16 %v275_v33, %v275_v33 }
 0x151   :  { %5831 = vmatpush.bf16.msra.mxu3 %v9058_v12 }
 0x152   :  { %5793 = vmatpush.bf16.msra.mxu0 %v9033_v13 }
 0x153   :  { %5806 = vmatpush.bf16.msra.mxu1 %v9041_v14  ;;  %v9064_v14 = vld [vmem:[%s11454_s1 + $0xb10] sm:$0xff] }
 0x154   :  { %5819 = vmatpush.bf16.msra.mxu2 %v9049_v15 }
 0x155   :  { %5832 = vmatpush.bf16.msra.mxu3 %v9057_v18  ;;  %v9088_v18 = vld [vmem:[%s11454_s1 + $0xbd0] sm:$0xff] }
 0x156   :  { %5794 = vmatpush.bf16.msra.mxu0 %v9032_v22  ;;  %v72_v22 = vld [vmem:[%s11453_s0 + $0x18c] sm:$0xff] }
 0x157   :  { %5807 = vmatpush.bf16.msra.mxu1 %v9040_v24  ;;  %v9079_v24 = vld [vmem:[%s11454_s1 + $0xb88] sm:$0xff]  ;;  %279 = vst [vmem:[#allocation1 + $0x2] ss:$4 sm:$0xff] %v72_v22  ;;  %v9102_v22 = vld [vmem:[%s11454_s1 + $0xc40] sm:$0xff] }
 0x158   :  { %5820 = vmatpush.bf16.msra.mxu2 %v9048_v25 }
 0x159   :  { %5833 = vmatpush.bf16.msra.mxu3 %v9056_v26  ;;  %v91_v26 = vld [vmem:[%s11453_s0 + $0x222] sm:$0xff] }
 0x15a   :  { %5795 = vmatpush.bf16.msra.mxu0 %v9031_v27  ;;  %v9087_v27 = vld [vmem:[%s11454_s1 + $0xbc8] sm:$0xff]  ;;  %280 = vst [vmem:[#allocation1 + $0x3] ss:$4 sm:$0xff] %v91_v26  ;;  %v9133_v26 = vld [vmem:[%s11454_s1 + $0xd38] sm:$0xff] }
 0x15b   :  { %5808 = vmatpush.bf16.msra.mxu1 %v9039_v31  ;;  %v9078_v31 = vld [vmem:[%s11454_s1 + $0xb80] sm:$0xff] }
 0x15c   :  { %5821 = vmatpush.bf16.msra.mxu2 %v9047_v32  ;;  %v273_v32 = vld.sshfl [vmem:[#allocation1 + $0x20] sm:$0xff pattern:$0x73625140] }
 0x15d   :  { %5834 = vmatpush.bf16.msra.mxu3 %v9055_v35  ;;  %v9109_v35 = vld [vmem:[%s11454_s1 + $0xc78] sm:$0xff]  ;;  %v451_v40 = vpack.c.bf16 %v273_v32, %v273_v32 }
 0x15e   :  { %5796 = vmatpush.bf16.msra.mxu0 %v9030_v37  ;;  %v5590_v61 = vpop.f32.mrf.mxu0  ;;  %v9117_v37 = vld [vmem:[%s11454_s1 + $0xcb8] sm:$0xff] }
 0x15f   :  { %5809 = vmatpush.bf16.msra.mxu1 %v9038_v38  ;;  %v5591_v62 = vadd.f32 %v5590_v61, %v10547_v21  ;;  %v5603_v0 = vpop.f32.mrf.mxu1  ;;  %v53_v21 = vld [vmem:[%s11453_s0 + $0xf6] sm:$0xff]  ;;  %v9086_v38 = vld [vmem:[%s11454_s1 + $0xbc0] sm:$0xff] }
 0x160   :  { %5822 = vmatpush.bf16.msra.mxu2 %v9046_v39  ;;  %278 = vst [vmem:[#allocation1 + $0x1] ss:$4 sm:$0xff] %v53_v21  ;;  %v276_v39 = vld.sshfl [vmem:[#allocation1 + $0x38] sm:$0xff pattern:$0x73625140]  ;;  %v9094_v21 = vld [vmem:[%s11454_s1 + $0xc00] sm:$0xff] }
 0x161   :  { %5835 = vmatpush.bf16.msra.mxu3 %v9054_v46  ;;  %5797 = vmatmul.bf16.vlgmr.msra.gmra.mxu0 %v447_v48  ;;  %v5604_v3 = vadd.f32 %v5603_v0, %v5591_v62  ;;  %v454_v44 = vpack.c.bf16 %v276_v39, %v276_v39  ;;  %v9108_v46 = vld [vmem:[%s11454_s1 + $0xc70] sm:$0xff]  ;;  %v9097_v61 = vld [vmem:[%s11454_s1 + $0xc18] sm:$0xff] }
 0x162   :  { %5841 = vmatpush.bf16.msrb.mxu0 %v9069_v42  ;;  %5810 = vmatmul.bf16.vlgmr.msra.gmra.mxu1 %v448_v51  ;;  %v9125_v42 = vld [vmem:[%s11454_s1 + $0xcf8] sm:$0xff]  ;;  %v9124_v48 = vld [vmem:[%s11454_s1 + $0xcf0] sm:$0xff]  ;;  %v9115_v51 = vld [vmem:[%s11454_s1 + $0xca8] sm:$0xff] }
 0x163   :  { %5854 = vmatpush.bf16.msrb.mxu1 %v9077_v43  ;;  %5823 = vmatmul.bf16.vlgmr.msra.gmra.mxu2 %v449_v49  ;;  %v452_v43 = vpack.c.bf16 %v274_v36, %v274_v36  ;;  %v9099_v49 = vld [vmem:[%s11454_s1 + $0xc28] sm:$0xff]  ;;  %v9105_v62 = vld [vmem:[%s11454_s1 + $0xc58] sm:$0xff]  ;;  %v9148_v39 = vld [vmem:[%s11454_s1 + $0xdb0] sm:$0xff] }
 0x164   :  { %5867 = vmatpush.bf16.msrb.mxu2 %v9085_v45  ;;  %5836 = vmatmul.bf16.vlgmr.msra.gmra.mxu3 %v450_v52  ;;  %v9100_v45 = vld [vmem:[%s11454_s1 + $0xc30] sm:$0xff]  ;;  %v9123_v52 = vld [vmem:[%s11454_s1 + $0xce8] sm:$0xff] }
 0x165   :  { %5880 = vmatpush.bf16.msrb.mxu3 %v9093_v50  ;;  %v9107_v50 = vld [vmem:[%s11454_s1 + $0xc68] sm:$0xff] }
 0x166   :  { %5842 = vmatpush.bf16.msrb.mxu0 %v9068_v53  ;;  %v5616_v8 = vpop.f32.mrf.mxu2  ;;  %v5592_v12 = vpop.f32.mrf.mxu0 }
 0x167   :  { %5855 = vmatpush.bf16.msrb.mxu1 %v9076_v54  ;;  %v5617_v9 = vadd.f32 %v5616_v8, %v5604_v3  ;;  %v5629_v11 = vpop.f32.mrf.mxu3  ;;  %v5605_v15 = vpop.f32.mrf.mxu1  ;;  %v9104_v8 = vld [vmem:[%s11454_s1 + $0xc50] sm:$0xff]  ;;  %v35_v12 = vld [vmem:[%s11453_s0 + $0x68] sm:$0xff] }
 0x168   :  { %5868 = vmatpush.bf16.msrb.mxu2 %v9084_v55  ;;  %v9098_v55 = vld [vmem:[%s11454_s1 + $0xc20] sm:$0xff]  ;;  %v9103_v15 = vld [vmem:[%s11454_s1 + $0xc48] sm:$0xff]  ;;  %281 = vst [vmem:[#allocation1 + $0x20] ss:$4 sm:$0xff] %v35_v12 }
 0x169   :  { %5881 = vmatpush.bf16.msrb.mxu3 %v9092_v56  ;;  %v10658_v13 = vadd.f32 %v5629_v11, %v5617_v9  ;;  %v9112_v9 = vld [vmem:[%s11454_s1 + $0xc90] sm:$0xff]  ;;  %v9095_v11 = vld [vmem:[%s11454_s1 + $0xc08] sm:$0xff] }
 0x16a   :  { %5843 = vmatpush.bf16.msrb.mxu0 %v9067_v57  ;;  %v9106_v57 = vld [vmem:[%s11454_s1 + $0xc60] sm:$0xff] }
 0x16b   :  { %5856 = vmatpush.bf16.msrb.mxu1 %v9075_v58  ;;  %v9114_v58 = vld [vmem:[%s11454_s1 + $0xca0] sm:$0xff] }
 0x16c   :  { %5869 = vmatpush.bf16.msrb.mxu2 %v9083_v59 }
 0x16d   :  { %5882 = vmatpush.bf16.msrb.mxu3 %v9091_v60  ;;  %v9122_v60 = vld [vmem:[%s11454_s1 + $0xce0] sm:$0xff] }
 0x16e   :  { %5844 = vmatpush.bf16.msrb.mxu0 %v9066_v63  ;;  %v5618_v25 = vpop.f32.mrf.mxu2  ;;  %v9113_v63 = vld [vmem:[%s11454_s1 + $0xc98] sm:$0xff] }
 0x16f   :  { %5857 = vmatpush.bf16.msrb.mxu1 %v9074_v1  ;;  %v5631_v28 = vpop.f32.mrf.mxu3  ;;  %v287_v25 = vld.sshfl [vmem:[#allocation1 + $0x10] sm:$0xff pattern:$0x73625140] }
 0x170   :  { %5870 = vmatpush.bf16.msrb.mxu2 %v9082_v2  ;;  %v9121_v2 = vld [vmem:[%s11454_s1 + $0xcd8] sm:$0xff]  ;;  %v286_v28 = vld.sshfl [vmem:[#allocation1 + $0x8] sm:$0xff pattern:$0x73625140]  ;;  %v457_v33 = vpack.c.bf16 %v287_v25, %v287_v25 }
 0x171   :  { %5883 = vmatpush.bf16.msrb.mxu3 %v9090_v4 }
 0x172   :  { %5845 = vmatpush.bf16.msrb.mxu0 %v9065_v5 }
 0x173   :  { %5858 = vmatpush.bf16.msrb.mxu1 %v9073_v6  ;;  %v9096_v6 = vld [vmem:[%s11454_s1 + $0xc10] sm:$0xff] }
 0x174   :  { %5871 = vmatpush.bf16.msrb.mxu2 %v9081_v7 }
 0x175   :  { %5884 = vmatpush.bf16.msrb.mxu3 %v9089_v10  ;;  %v9120_v10 = vld [vmem:[%s11454_s1 + $0xcd0] sm:$0xff] }
 0x176   :  { %5846 = vmatpush.bf16.msrb.mxu0 %v9064_v14  ;;  %v73_v14 = vld [vmem:[%s11453_s0 + $0x194] sm:$0xff] }
 0x177   :  { %5859 = vmatpush.bf16.msrb.mxu1 %v9072_v16  ;;  %v9111_v16 = vld [vmem:[%s11454_s1 + $0xc88] sm:$0xff]  ;;  %283 = vst [vmem:[#allocation1 + $0x22] ss:$4 sm:$0xff] %v73_v14  ;;  %v9134_v14 = vld [vmem:[%s11454_s1 + $0xd40] sm:$0xff] }
 0x178   :  { %5872 = vmatpush.bf16.msrb.mxu2 %v9080_v17 }
 0x179   :  { %5885 = vmatpush.bf16.msrb.mxu3 %v9088_v18  ;;  %v92_v18 = vld [vmem:[%s11453_s0 + $0x22a] sm:$0xff] }
 0x17a   :  { %5847 = vmatpush.bf16.msrb.mxu0 %v9063_v19  ;;  %v9119_v19 = vld [vmem:[%s11454_s1 + $0xcc8] sm:$0xff]  ;;  %284 = vst [vmem:[#allocation1 + $0x23] ss:$4 sm:$0xff] %v92_v18  ;;  %v9165_v18 = vld [vmem:[%s11454_s1 + $0xe38] sm:$0xff] }
 0x17b   :  { %5860 = vmatpush.bf16.msrb.mxu1 %v9071_v23  ;;  %v9110_v23 = vld [vmem:[%s11454_s1 + $0xc80] sm:$0xff] }
 0x17c   :  { %5873 = vmatpush.bf16.msrb.mxu2 %v9079_v24  ;;  %v285_v24 = vld.sshfl [vmem:[#allocation1] sm:$0xff pattern:$0x73625140] }
 0x17d   :  { %5886 = vmatpush.bf16.msrb.mxu3 %v9087_v27  ;;  %v9141_v27 = vld [vmem:[%s11454_s1 + $0xd78] sm:$0xff]  ;;  %v455_v32 = vpack.c.bf16 %v285_v24, %v285_v24 }
 0x17e   :  { %5848 = vmatpush.bf16.msrb.mxu0 %v9062_v29  ;;  %v5642_v53 = vpop.f32.mrf.mxu0  ;;  %v9149_v29 = vld [vmem:[%s11454_s1 + $0xdb8] sm:$0xff] }
 0x17f   :  { %5861 = vmatpush.bf16.msrb.mxu1 %v9070_v30  ;;  %v5643_v54 = vadd.f32 %v5642_v53, %v10658_v13  ;;  %v5655_v56 = vpop.f32.mrf.mxu1  ;;  %v54_v13 = vld [vmem:[%s11453_s0 + $0xfe] sm:$0xff] }
 0x180   :  { %5874 = vmatpush.bf16.msrb.mxu2 %v9078_v31  ;;  %282 = vst [vmem:[#allocation1 + $0x21] ss:$4 sm:$0xff] %v54_v13  ;;  %v9118_v30 = vld [vmem:[%s11454_s1 + $0xcc0] sm:$0xff]  ;;  %v288_v31 = vld.sshfl [vmem:[#allocation1 + $0x18] sm:$0xff pattern:$0x73625140] }
 0x181   :  { %5887 = vmatpush.bf16.msrb.mxu3 %v9086_v38  ;;  %5849 = vmatmul.bf16.vlgmr.msrb.gmra.mxu0 %v451_v40  ;;  %v5656_v59 = vadd.f32 %v5655_v56, %v5643_v54  ;;  %v458_v36 = vpack.c.bf16 %v288_v31, %v288_v31  ;;  %v9140_v38 = vld [vmem:[%s11454_s1 + $0xd70] sm:$0xff]  ;;  %v9129_v53 = vld [vmem:[%s11454_s1 + $0xd18] sm:$0xff]  ;;  %v9126_v13 = vld [vmem:[%s11454_s1 + $0xd00] sm:$0xff] }
 0x182   :  { %5893 = vmatpush.bf16.msra.mxu0 %v9101_v34  ;;  %5862 = vmatmul.bf16.vlgmr.msrb.gmra.mxu1 %v452_v43  ;;  %v9157_v34 = vld [vmem:[%s11454_s1 + $0xdf8] sm:$0xff]  ;;  %v9156_v40 = vld [vmem:[%s11454_s1 + $0xdf0] sm:$0xff]  ;;  %v9147_v43 = vld [vmem:[%s11454_s1 + $0xda8] sm:$0xff] }
 0x183   :  { %5906 = vmatpush.bf16.msra.mxu1 %v9109_v35  ;;  %5875 = vmatmul.bf16.vlgmr.msrb.gmra.mxu2 %v453_v41  ;;  %v456_v35 = vpack.c.bf16 %v286_v28, %v286_v28  ;;  %v9131_v41 = vld [vmem:[%s11454_s1 + $0xd28] sm:$0xff]  ;;  %v9137_v54 = vld [vmem:[%s11454_s1 + $0xd58] sm:$0xff]  ;;  %v9180_v31 = vld [vmem:[%s11454_s1 + $0xeb0] sm:$0xff] }
 0x184   :  { %5919 = vmatpush.bf16.msra.mxu2 %v9117_v37  ;;  %5888 = vmatmul.bf16.vlgmr.msrb.gmra.mxu3 %v454_v44  ;;  %v9132_v37 = vld [vmem:[%s11454_s1 + $0xd30] sm:$0xff]  ;;  %v9155_v44 = vld [vmem:[%s11454_s1 + $0xde8] sm:$0xff] }
 0x185   :  { %5932 = vmatpush.bf16.msra.mxu3 %v9125_v42  ;;  %v9139_v42 = vld [vmem:[%s11454_s1 + $0xd68] sm:$0xff] }
 0x186   :  { %5894 = vmatpush.bf16.msra.mxu0 %v9100_v45  ;;  %v5668_v0 = vpop.f32.mrf.mxu2  ;;  %v5644_v4 = vpop.f32.mrf.mxu0 }
 0x187   :  { %5907 = vmatpush.bf16.msra.mxu1 %v9108_v46  ;;  %v5669_v1 = vadd.f32 %v5668_v0, %v5656_v59  ;;  %v5681_v3 = vpop.f32.mrf.mxu3  ;;  %v5657_v7 = vpop.f32.mrf.mxu1  ;;  %v9136_v0 = vld [vmem:[%s11454_s1 + $0xd50] sm:$0xff] }
 0x188   :  { %5920 = vmatpush.bf16.msra.mxu2 %v9116_v47  ;;  %v9130_v47 = vld [vmem:[%s11454_s1 + $0xd20] sm:$0xff]  ;;  %v36_v4 = vld [vmem:[%s11453_s0 + $0x70] sm:$0xff]  ;;  %v9135_v7 = vld [vmem:[%s11454_s1 + $0xd48] sm:$0xff] }
 0x189   :  { %5933 = vmatpush.bf16.msra.mxu3 %v9124_v48  ;;  %v10769_v5 = vadd.f32 %v5681_v3, %v5669_v1  ;;  %v9144_v1 = vld [vmem:[%s11454_s1 + $0xd90] sm:$0xff]  ;;  %v9127_v3 = vld [vmem:[%s11454_s1 + $0xd08] sm:$0xff]  ;;  %293 = vst [vmem:[#allocation1] ss:$4 sm:$0xff] %v36_v4 }
 0x18a   :  { %5895 = vmatpush.bf16.msra.mxu0 %v9099_v49  ;;  %v9138_v49 = vld [vmem:[%s11454_s1 + $0xd60] sm:$0xff] }
 0x18b   :  { %5908 = vmatpush.bf16.msra.mxu1 %v9107_v50  ;;  %v9146_v50 = vld [vmem:[%s11454_s1 + $0xda0] sm:$0xff] }
 0x18c   :  { %5921 = vmatpush.bf16.msra.mxu2 %v9115_v51 }
 0x18d   :  { %5934 = vmatpush.bf16.msra.mxu3 %v9123_v52  ;;  %v9154_v52 = vld [vmem:[%s11454_s1 + $0xde0] sm:$0xff] }
 0x18e   :  { %5896 = vmatpush.bf16.msra.mxu0 %v9098_v55  ;;  %v5670_v17 = vpop.f32.mrf.mxu2  ;;  %v9145_v55 = vld [vmem:[%s11454_s1 + $0xd98] sm:$0xff] }
 0x18f   :  { %5909 = vmatpush.bf16.msra.mxu1 %v9106_v57  ;;  %v5683_v20 = vpop.f32.mrf.mxu3  ;;  %v291_v17 = vld.sshfl [vmem:[#allocation1 + $0x30] sm:$0xff pattern:$0x73625140] }
 0x190   :  { %5922 = vmatpush.bf16.msra.mxu2 %v9114_v58  ;;  %v9153_v58 = vld [vmem:[%s11454_s1 + $0xdd8] sm:$0xff]  ;;  %v290_v20 = vld.sshfl [vmem:[#allocation1 + $0x28] sm:$0xff pattern:$0x73625140]  ;;  %v461_v25 = vpack.c.bf16 %v291_v17, %v291_v17 }
 0x191   :  { %5935 = vmatpush.bf16.msra.mxu3 %v9122_v60 }
 0x192   :  { %5897 = vmatpush.bf16.msra.mxu0 %v9097_v61 }
 0x193   :  { %5910 = vmatpush.bf16.msra.mxu1 %v9105_v62  ;;  %v9128_v62 = vld [vmem:[%s11454_s1 + $0xd10] sm:$0xff] }
 0x194   :  { %5923 = vmatpush.bf16.msra.mxu2 %v9113_v63 }
 0x195   :  { %5936 = vmatpush.bf16.msra.mxu3 %v9121_v2  ;;  %v9152_v2 = vld [vmem:[%s11454_s1 + $0xdd0] sm:$0xff] }
 0x196   :  { %5898 = vmatpush.bf16.msra.mxu0 %v9096_v6  ;;  %v74_v6 = vld [vmem:[%s11453_s0 + $0x19c] sm:$0xff] }
 0x197   :  { %5911 = vmatpush.bf16.msra.mxu1 %v9104_v8  ;;  %v9143_v8 = vld [vmem:[%s11454_s1 + $0xd88] sm:$0xff]  ;;  %295 = vst [vmem:[#allocation1 + $0x2] ss:$4 sm:$0xff] %v74_v6  ;;  %v9166_v6 = vld [vmem:[%s11454_s1 + $0xe40] sm:$0xff] }
 0x198   :  { %5924 = vmatpush.bf16.msra.mxu2 %v9112_v9 }
 0x199   :  { %5937 = vmatpush.bf16.msra.mxu3 %v9120_v10  ;;  %v93_v10 = vld [vmem:[%s11453_s0 + $0x232] sm:$0xff] }
 0x19a   :  { %5899 = vmatpush.bf16.msra.mxu0 %v9095_v11  ;;  %v9151_v11 = vld [vmem:[%s11454_s1 + $0xdc8] sm:$0xff]  ;;  %296 = vst [vmem:[#allocation1 + $0x3] ss:$4 sm:$0xff] %v93_v10  ;;  %v9197_v10 = vld [vmem:[%s11454_s1 + $0xf38] sm:$0xff] }
 0x19b   :  { %5912 = vmatpush.bf16.msra.mxu1 %v9103_v15  ;;  %v9142_v15 = vld [vmem:[%s11454_s1 + $0xd80] sm:$0xff] }
 0x19c   :  { %5925 = vmatpush.bf16.msra.mxu2 %v9111_v16  ;;  %v289_v16 = vld.sshfl [vmem:[#allocation1 + $0x20] sm:$0xff pattern:$0x73625140] }
 0x19d   :  { %5938 = vmatpush.bf16.msra.mxu3 %v9119_v19  ;;  %v9173_v19 = vld [vmem:[%s11454_s1 + $0xe78] sm:$0xff]  ;;  %v459_v24 = vpack.c.bf16 %v289_v16, %v289_v16 }
 0x19e   :  { %5900 = vmatpush.bf16.msra.mxu0 %v9094_v21  ;;  %v5694_v45 = vpop.f32.mrf.mxu0  ;;  %v9181_v21 = vld [vmem:[%s11454_s1 + $0xeb8] sm:$0xff] }
 0x19f   :  { %5913 = vmatpush.bf16.msra.mxu1 %v9102_v22  ;;  %v5695_v46 = vadd.f32 %v5694_v45, %v10769_v5  ;;  %v5707_v48 = vpop.f32.mrf.mxu1  ;;  %v55_v5 = vld [vmem:[%s11453_s0 + $0x106] sm:$0xff]  ;;  %v9161_v45 = vld [vmem:[%s11454_s1 + $0xe18] sm:$0xff] }
 0x1a0   :  { %5926 = vmatpush.bf16.msra.mxu2 %v9110_v23  ;;  %294 = vst [vmem:[#allocation1 + $0x1] ss:$4 sm:$0xff] %v55_v5  ;;  %v9150_v22 = vld [vmem:[%s11454_s1 + $0xdc0] sm:$0xff]  ;;  %v292_v23 = vld.sshfl [vmem:[#allocation1 + $0x38] sm:$0xff pattern:$0x73625140] }
 0x1a1   :  { %5939 = vmatpush.bf16.msra.mxu3 %v9118_v30  ;;  %5901 = vmatmul.bf16.vlgmr.msra.gmra.mxu0 %v455_v32  ;;  %v5708_v51 = vadd.f32 %v5707_v48, %v5695_v46  ;;  %v462_v28 = vpack.c.bf16 %v292_v23, %v292_v23  ;;  %v9172_v30 = vld [vmem:[%s11454_s1 + $0xe70] sm:$0xff]  ;;  %v9169_v46 = vld [vmem:[%s11454_s1 + $0xe58] sm:$0xff]  ;;  %v9158_v5 = vld [vmem:[%s11454_s1 + $0xe00] sm:$0xff] }
 0x1a2   :  { %5945 = vmatpush.bf16.msrb.mxu0 %v9133_v26  ;;  %5914 = vmatmul.bf16.vlgmr.msra.gmra.mxu1 %v456_v35  ;;  %v9189_v26 = vld [vmem:[%s11454_s1 + $0xef8] sm:$0xff]  ;;  %v9188_v32 = vld [vmem:[%s11454_s1 + $0xef0] sm:$0xff]  ;;  %v9179_v35 = vld [vmem:[%s11454_s1 + $0xea8] sm:$0xff] }
 0x1a3   :  { %5958 = vmatpush.bf16.msrb.mxu1 %v9141_v27  ;;  %5927 = vmatmul.bf16.vlgmr.msra.gmra.mxu2 %v457_v33  ;;  %v460_v27 = vpack.c.bf16 %v290_v20, %v290_v20  ;;  %v9163_v33 = vld [vmem:[%s11454_s1 + $0xe28] sm:$0xff]  ;;  %v9212_v23 = vld [vmem:[%s11454_s1 + $0xfb0] sm:$0xff] }
 0x1a4   :  { %5971 = vmatpush.bf16.msrb.mxu2 %v9149_v29  ;;  %5940 = vmatmul.bf16.vlgmr.msra.gmra.mxu3 %v458_v36  ;;  %v9164_v29 = vld [vmem:[%s11454_s1 + $0xe30] sm:$0xff]  ;;  %v9187_v36 = vld [vmem:[%s11454_s1 + $0xee8] sm:$0xff] }
 0x1a5   :  { %5984 = vmatpush.bf16.msrb.mxu3 %v9157_v34  ;;  %v9171_v34 = vld [vmem:[%s11454_s1 + $0xe68] sm:$0xff] }
 0x1a6   :  { %5946 = vmatpush.bf16.msrb.mxu0 %v9132_v37  ;;  %v5720_v56 = vpop.f32.mrf.mxu2  ;;  %v5696_v60 = vpop.f32.mrf.mxu0 }
 0x1a7   :  { %5959 = vmatpush.bf16.msrb.mxu1 %v9140_v38  ;;  %v5721_v57 = vadd.f32 %v5720_v56, %v5708_v51  ;;  %v5733_v59 = vpop.f32.mrf.mxu3  ;;  %v5709_v63 = vpop.f32.mrf.mxu1  ;;  %v9168_v56 = vld [vmem:[%s11454_s1 + $0xe50] sm:$0xff]  ;;  %v37_v60 = vld [vmem:[%s11453_s0 + $0x78] sm:$0xff] }
 0x1a8   :  { %5972 = vmatpush.bf16.msrb.mxu2 %v9148_v39  ;;  %v9162_v39 = vld [vmem:[%s11454_s1 + $0xe20] sm:$0xff]  ;;  %v9167_v63 = vld [vmem:[%s11454_s1 + $0xe48] sm:$0xff]  ;;  %297 = vst [vmem:[#allocation1 + $0x20] ss:$4 sm:$0xff] %v37_v60 }
 0x1a9   :  { %5985 = vmatpush.bf16.msrb.mxu3 %v9156_v40  ;;  %v10880_v61 = vadd.f32 %v5733_v59, %v5721_v57  ;;  %v9176_v57 = vld [vmem:[%s11454_s1 + $0xe90] sm:$0xff]  ;;  %v9159_v59 = vld [vmem:[%s11454_s1 + $0xe08] sm:$0xff] }
 0x1aa   :  { %5947 = vmatpush.bf16.msrb.mxu0 %v9131_v41  ;;  %v9170_v41 = vld [vmem:[%s11454_s1 + $0xe60] sm:$0xff] }
 0x1ab   :  { %5960 = vmatpush.bf16.msrb.mxu1 %v9139_v42  ;;  %v9178_v42 = vld [vmem:[%s11454_s1 + $0xea0] sm:$0xff] }
 0x1ac   :  { %5973 = vmatpush.bf16.msrb.mxu2 %v9147_v43 }
 0x1ad   :  { %5986 = vmatpush.bf16.msrb.mxu3 %v9155_v44  ;;  %v9186_v44 = vld [vmem:[%s11454_s1 + $0xee0] sm:$0xff] }
 0x1ae   :  { %5948 = vmatpush.bf16.msrb.mxu0 %v9130_v47  ;;  %v5722_v9 = vpop.f32.mrf.mxu2  ;;  %v9177_v47 = vld [vmem:[%s11454_s1 + $0xe98] sm:$0xff] }
 0x1af   :  { %5961 = vmatpush.bf16.msrb.mxu1 %v9138_v49  ;;  %v5735_v12 = vpop.f32.mrf.mxu3  ;;  %v303_v9 = vld.sshfl [vmem:[#allocation1 + $0x10] sm:$0xff pattern:$0x73625140] }
 0x1b0   :  { %5974 = vmatpush.bf16.msrb.mxu2 %v9146_v50  ;;  %v9185_v50 = vld [vmem:[%s11454_s1 + $0xed8] sm:$0xff]  ;;  %v302_v12 = vld.sshfl [vmem:[#allocation1 + $0x8] sm:$0xff pattern:$0x73625140]  ;;  %v465_v17 = vpack.c.bf16 %v303_v9, %v303_v9 }
 0x1b1   :  { %5987 = vmatpush.bf16.msrb.mxu3 %v9154_v52 }
 0x1b2   :  { %5949 = vmatpush.bf16.msrb.mxu0 %v9129_v53 }
 0x1b3   :  { %5962 = vmatpush.bf16.msrb.mxu1 %v9137_v54  ;;  %v9160_v54 = vld [vmem:[%s11454_s1 + $0xe10] sm:$0xff] }
 0x1b4   :  { %5975 = vmatpush.bf16.msrb.mxu2 %v9145_v55 }
 0x1b5   :  { %5988 = vmatpush.bf16.msrb.mxu3 %v9153_v58  ;;  %v9184_v58 = vld [vmem:[%s11454_s1 + $0xed0] sm:$0xff] }
 0x1b6   :  { %5950 = vmatpush.bf16.msrb.mxu0 %v9128_v62  ;;  %v75_v62 = vld [vmem:[%s11453_s0 + $0x1a4] sm:$0xff] }
 0x1b7   :  { %5963 = vmatpush.bf16.msrb.mxu1 %v9136_v0  ;;  %v9175_v0 = vld [vmem:[%s11454_s1 + $0xe88] sm:$0xff]  ;;  %299 = vst [vmem:[#allocation1 + $0x22] ss:$4 sm:$0xff] %v75_v62  ;;  %v9198_v62 = vld [vmem:[%s11454_s1 + $0xf40] sm:$0xff] }
 0x1b8   :  { %5976 = vmatpush.bf16.msrb.mxu2 %v9144_v1 }
 0x1b9   :  { %5989 = vmatpush.bf16.msrb.mxu3 %v9152_v2  ;;  %v94_v2 = vld [vmem:[%s11453_s0 + $0x23a] sm:$0xff] }
 0x1ba   :  { %5951 = vmatpush.bf16.msrb.mxu0 %v9127_v3  ;;  %v9183_v3 = vld [vmem:[%s11454_s1 + $0xec8] sm:$0xff]  ;;  %300 = vst [vmem:[#allocation1 + $0x23] ss:$4 sm:$0xff] %v94_v2  ;;  %v9229_v2 = vld [vmem:[%s11454_s1 + $0x1038] sm:$0xff] }
 0x1bb   :  { %5964 = vmatpush.bf16.msrb.mxu1 %v9135_v7  ;;  %v9174_v7 = vld [vmem:[%s11454_s1 + $0xe80] sm:$0xff] }
 0x1bc   :  { %5977 = vmatpush.bf16.msrb.mxu2 %v9143_v8  ;;  %v301_v8 = vld.sshfl [vmem:[#allocation1] sm:$0xff pattern:$0x73625140] }
 0x1bd   :  { %5990 = vmatpush.bf16.msrb.mxu3 %v9151_v11  ;;  %v9205_v11 = vld [vmem:[%s11454_s1 + $0xf78] sm:$0xff]  ;;  %v463_v16 = vpack.c.bf16 %v301_v8, %v301_v8 }
 0x1be   :  { %5952 = vmatpush.bf16.msrb.mxu0 %v9126_v13  ;;  %v5746_v37 = vpop.f32.mrf.mxu0  ;;  %v9213_v13 = vld [vmem:[%s11454_s1 + $0xfb8] sm:$0xff] }
 0x1bf   :  { %5965 = vmatpush.bf16.msrb.mxu1 %v9134_v14  ;;  %v5747_v38 = vadd.f32 %v5746_v37, %v10880_v61  ;;  %v5759_v40 = vpop.f32.mrf.mxu1  ;;  %v56_v61 = vld [vmem:[%s11453_s0 + $0x10e] sm:$0xff]  ;;  %v9182_v14 = vld [vmem:[%s11454_s1 + $0xec0] sm:$0xff]  ;;  %v9193_v37 = vld [vmem:[%s11454_s1 + $0xf18] sm:$0xff] }
 0x1c0   :  { %5978 = vmatpush.bf16.msrb.mxu2 %v9142_v15  ;;  %298 = vst [vmem:[#allocation1 + $0x21] ss:$4 sm:$0xff] %v56_v61  ;;  %v304_v15 = vld.sshfl [vmem:[#allocation1 + $0x18] sm:$0xff pattern:$0x73625140]  ;;  %v9190_v61 = vld [vmem:[%s11454_s1 + $0xf00] sm:$0xff] }
 0x1c1   :  { %5991 = vmatpush.bf16.msrb.mxu3 %v9150_v22  ;;  %5953 = vmatmul.bf16.vlgmr.msrb.gmra.mxu0 %v459_v24  ;;  %v5760_v43 = vadd.f32 %v5759_v40, %v5747_v38  ;;  %v466_v20 = vpack.c.bf16 %v304_v15, %v304_v15  ;;  %v9204_v22 = vld [vmem:[%s11454_s1 + $0xf70] sm:$0xff]  ;;  %v9201_v38 = vld [vmem:[%s11454_s1 + $0xf58] sm:$0xff] }
 0x1c2   :  { %5997 = vmatpush.bf16.msra.mxu0 %v9165_v18  ;;  %5966 = vmatmul.bf16.vlgmr.msrb.gmra.mxu1 %v460_v27  ;;  %v9221_v18 = vld [vmem:[%s11454_s1 + $0xff8] sm:$0xff]  ;;  %v9220_v24 = vld [vmem:[%s11454_s1 + $0xff0] sm:$0xff]  ;;  %v9211_v27 = vld [vmem:[%s11454_s1 + $0xfa8] sm:$0xff] }
 0x1c3   :  { %6010 = vmatpush.bf16.msra.mxu1 %v9173_v19  ;;  %5979 = vmatmul.bf16.vlgmr.msrb.gmra.mxu2 %v461_v25  ;;  %v464_v19 = vpack.c.bf16 %v302_v12, %v302_v12  ;;  %v9195_v25 = vld [vmem:[%s11454_s1 + $0xf28] sm:$0xff]  ;;  %v9244_v15 = vld [vmem:[%s11454_s1 + $0x10b0] sm:$0xff] }
 0x1c4   :  { %6023 = vmatpush.bf16.msra.mxu2 %v9181_v21  ;;  %5992 = vmatmul.bf16.vlgmr.msrb.gmra.mxu3 %v462_v28  ;;  %v9196_v21 = vld [vmem:[%s11454_s1 + $0xf30] sm:$0xff]  ;;  %v9219_v28 = vld [vmem:[%s11454_s1 + $0xfe8] sm:$0xff] }
 0x1c5   :  { %6036 = vmatpush.bf16.msra.mxu3 %v9189_v26  ;;  %v9203_v26 = vld [vmem:[%s11454_s1 + $0xf68] sm:$0xff] }
 0x1c6   :  { %5998 = vmatpush.bf16.msra.mxu0 %v9164_v29  ;;  %v5772_v48 = vpop.f32.mrf.mxu2  ;;  %v5748_v52 = vpop.f32.mrf.mxu0 }
 0x1c7   :  { %6011 = vmatpush.bf16.msra.mxu1 %v9172_v30  ;;  %v5773_v49 = vadd.f32 %v5772_v48, %v5760_v43  ;;  %v5785_v51 = vpop.f32.mrf.mxu3  ;;  %v5761_v55 = vpop.f32.mrf.mxu1  ;;  %v9200_v48 = vld [vmem:[%s11454_s1 + $0xf50] sm:$0xff]  ;;  %v38_v52 = vld [vmem:[%s11453_s0 + $0x80] sm:$0xff] }
 0x1c8   :  { %6024 = vmatpush.bf16.msra.mxu2 %v9180_v31  ;;  %v9194_v31 = vld [vmem:[%s11454_s1 + $0xf20] sm:$0xff]  ;;  %v9199_v55 = vld [vmem:[%s11454_s1 + $0xf48] sm:$0xff]  ;;  %309 = vst [vmem:[#allocation1] ss:$4 sm:$0xff] %v38_v52 }
 0x1c9   :  { %6037 = vmatpush.bf16.msra.mxu3 %v9188_v32  ;;  %v10991_v53 = vadd.f32 %v5785_v51, %v5773_v49  ;;  %v9208_v49 = vld [vmem:[%s11454_s1 + $0xf90] sm:$0xff]  ;;  %v9191_v51 = vld [vmem:[%s11454_s1 + $0xf08] sm:$0xff] }
 0x1ca   :  { %5999 = vmatpush.bf16.msra.mxu0 %v9163_v33  ;;  %v9202_v33 = vld [vmem:[%s11454_s1 + $0xf60] sm:$0xff] }
 0x1cb   :  { %6012 = vmatpush.bf16.msra.mxu1 %v9171_v34  ;;  %v9210_v34 = vld [vmem:[%s11454_s1 + $0xfa0] sm:$0xff] }
 0x1cc   :  { %6025 = vmatpush.bf16.msra.mxu2 %v9179_v35 }
 0x1cd   :  { %6038 = vmatpush.bf16.msra.mxu3 %v9187_v36  ;;  %v9218_v36 = vld [vmem:[%s11454_s1 + $0xfe0] sm:$0xff] }
 0x1ce   :  { %6000 = vmatpush.bf16.msra.mxu0 %v9162_v39  ;;  %v5774_v1 = vpop.f32.mrf.mxu2  ;;  %v9209_v39 = vld [vmem:[%s11454_s1 + $0xf98] sm:$0xff] }
 0x1cf   :  { %6013 = vmatpush.bf16.msra.mxu1 %v9170_v41  ;;  %v5787_v4 = vpop.f32.mrf.mxu3  ;;  %v307_v1 = vld.sshfl [vmem:[#allocation1 + $0x30] sm:$0xff pattern:$0x73625140] }
 0x1d0   :  { %6026 = vmatpush.bf16.msra.mxu2 %v9178_v42  ;;  %v9217_v42 = vld [vmem:[%s11454_s1 + $0xfd8] sm:$0xff]  ;;  %v306_v4 = vld.sshfl [vmem:[#allocation1 + $0x28] sm:$0xff pattern:$0x73625140]  ;;  %v469_v9 = vpack.c.bf16 %v307_v1, %v307_v1 }
 0x1d1   :  { %6039 = vmatpush.bf16.msra.mxu3 %v9186_v44 }
 0x1d2   :  { %6001 = vmatpush.bf16.msra.mxu0 %v9161_v45 }
 0x1d3   :  { %6014 = vmatpush.bf16.msra.mxu1 %v9169_v46  ;;  %v9192_v46 = vld [vmem:[%s11454_s1 + $0xf10] sm:$0xff] }
 0x1d4   :  { %6027 = vmatpush.bf16.msra.mxu2 %v9177_v47 }
 0x1d5   :  { %6040 = vmatpush.bf16.msra.mxu3 %v9185_v50  ;;  %v9216_v50 = vld [vmem:[%s11454_s1 + $0xfd0] sm:$0xff] }
 0x1d6   :  { %6002 = vmatpush.bf16.msra.mxu0 %v9160_v54  ;;  %v76_v54 = vld [vmem:[%s11453_s0 + $0x1ac] sm:$0xff] }
 0x1d7   :  { %6015 = vmatpush.bf16.msra.mxu1 %v9168_v56  ;;  %v9207_v56 = vld [vmem:[%s11454_s1 + $0xf88] sm:$0xff]  ;;  %311 = vst [vmem:[#allocation1 + $0x2] ss:$4 sm:$0xff] %v76_v54  ;;  %v9230_v54 = vld [vmem:[%s11454_s1 + $0x1040] sm:$0xff] }
 0x1d8   :  { %6028 = vmatpush.bf16.msra.mxu2 %v9176_v57 }
 0x1d9   :  { %6041 = vmatpush.bf16.msra.mxu3 %v9184_v58  ;;  %v95_v58 = vld [vmem:[%s11453_s0 + $0x242] sm:$0xff] }
 0x1da   :  { %6003 = vmatpush.bf16.msra.mxu0 %v9159_v59  ;;  %v9215_v59 = vld [vmem:[%s11454_s1 + $0xfc8] sm:$0xff]  ;;  %312 = vst [vmem:[#allocation1 + $0x3] ss:$4 sm:$0xff] %v95_v58  ;;  %v9261_v58 = vld [vmem:[%s11454_s1 + $0x1138] sm:$0xff] }
 0x1db   :  { %6016 = vmatpush.bf16.msra.mxu1 %v9167_v63  ;;  %v9206_v63 = vld [vmem:[%s11454_s1 + $0xf80] sm:$0xff] }
 0x1dc   :  { %6029 = vmatpush.bf16.msra.mxu2 %v9175_v0  ;;  %v305_v0 = vld.sshfl [vmem:[#allocation1 + $0x20] sm:$0xff pattern:$0x73625140] }
 0x1dd   :  { %6042 = vmatpush.bf16.msra.mxu3 %v9183_v3  ;;  %v9237_v3 = vld [vmem:[%s11454_s1 + $0x1078] sm:$0xff]  ;;  %v467_v8 = vpack.c.bf16 %v305_v0, %v305_v0 }
 0x1de   :  { %6004 = vmatpush.bf16.msra.mxu0 %v9158_v5  ;;  %v5798_v29 = vpop.f32.mrf.mxu0  ;;  %v9245_v5 = vld [vmem:[%s11454_s1 + $0x10b8] sm:$0xff] }
 0x1df   :  { %6017 = vmatpush.bf16.msra.mxu1 %v9166_v6  ;;  %v5799_v30 = vadd.f32 %v5798_v29, %v10991_v53  ;;  %v5811_v32 = vpop.f32.mrf.mxu1  ;;  %v57_v53 = vld [vmem:[%s11453_s0 + $0x116] sm:$0xff]  ;;  %v9214_v6 = vld [vmem:[%s11454_s1 + $0xfc0] sm:$0xff] }
 0x1e0   :  { %6030 = vmatpush.bf16.msra.mxu2 %v9174_v7  ;;  %310 = vst [vmem:[#allocation1 + $0x1] ss:$4 sm:$0xff] %v57_v53  ;;  %v308_v7 = vld.sshfl [vmem:[#allocation1 + $0x38] sm:$0xff pattern:$0x73625140]  ;;  %v9222_v53 = vld [vmem:[%s11454_s1 + $0x1000] sm:$0xff] }
 0x1e1   :  { %6043 = vmatpush.bf16.msra.mxu3 %v9182_v14  ;;  %6005 = vmatmul.bf16.vlgmr.msra.gmra.mxu0 %v463_v16  ;;  %v5812_v35 = vadd.f32 %v5811_v32, %v5799_v30  ;;  %v470_v12 = vpack.c.bf16 %v308_v7, %v308_v7  ;;  %v9236_v14 = vld [vmem:[%s11454_s1 + $0x1070] sm:$0xff]  ;;  %v9225_v29 = vld [vmem:[%s11454_s1 + $0x1018] sm:$0xff] }
 0x1e2   :  { %6049 = vmatpush.bf16.msrb.mxu0 %v9197_v10  ;;  %6018 = vmatmul.bf16.vlgmr.msra.gmra.mxu1 %v464_v19  ;;  %v9253_v10 = vld [vmem:[%s11454_s1 + $0x10f8] sm:$0xff]  ;;  %v9252_v16 = vld [vmem:[%s11454_s1 + $0x10f0] sm:$0xff]  ;;  %v9243_v19 = vld [vmem:[%s11454_s1 + $0x10a8] sm:$0xff] }
 0x1e3   :  { %6062 = vmatpush.bf16.msrb.mxu1 %v9205_v11  ;;  %6031 = vmatmul.bf16.vlgmr.msra.gmra.mxu2 %v465_v17  ;;  %v468_v11 = vpack.c.bf16 %v306_v4, %v306_v4  ;;  %v9227_v17 = vld [vmem:[%s11454_s1 + $0x1028] sm:$0xff]  ;;  %v9233_v30 = vld [vmem:[%s11454_s1 + $0x1058] sm:$0xff]  ;;  %v9276_v7 = vld [vmem:[%s11454_s1 + $0x11b0] sm:$0xff] }
 0x1e4   :  { %6075 = vmatpush.bf16.msrb.mxu2 %v9213_v13  ;;  %6044 = vmatmul.bf16.vlgmr.msra.gmra.mxu3 %v466_v20  ;;  %v9228_v13 = vld [vmem:[%s11454_s1 + $0x1030] sm:$0xff]  ;;  %v9251_v20 = vld [vmem:[%s11454_s1 + $0x10e8] sm:$0xff] }
 0x1e5   :  { %6088 = vmatpush.bf16.msrb.mxu3 %v9221_v18  ;;  %v9235_v18 = vld [vmem:[%s11454_s1 + $0x1068] sm:$0xff] }
 0x1e6   :  { %6050 = vmatpush.bf16.msrb.mxu0 %v9196_v21  ;;  %v5824_v40 = vpop.f32.mrf.mxu2  ;;  %v5800_v44 = vpop.f32.mrf.mxu0 }
 0x1e7   :  { %6063 = vmatpush.bf16.msrb.mxu1 %v9204_v22  ;;  %v5825_v41 = vadd.f32 %v5824_v40, %v5812_v35  ;;  %v5837_v43 = vpop.f32.mrf.mxu3  ;;  %v5813_v47 = vpop.f32.mrf.mxu1  ;;  %v9232_v40 = vld [vmem:[%s11454_s1 + $0x1050] sm:$0xff]  ;;  %v58_v44 = vld [vmem:[%s11453_s0 + $0x11e] sm:$0xff] }
 0x1e8   :  { %6076 = vmatpush.bf16.msrb.mxu2 %v9212_v23  ;;  %v9226_v23 = vld [vmem:[%s11454_s1 + $0x1020] sm:$0xff]  ;;  %v96_v47 = vld [vmem:[%s11453_s0 + $0x24a] sm:$0xff]  ;;  %314 = vst [vmem:[#allocation1 + $0x21] ss:$4 sm:$0xff] %v58_v44 }
 0x1e9   :  { %6089 = vmatpush.bf16.msrb.mxu3 %v9220_v24  ;;  %v11102_v45 = vadd.f32 %v5837_v43, %v5825_v41  ;;  %v9240_v41 = vld [vmem:[%s11454_s1 + $0x1090] sm:$0xff]  ;;  %v39_v43 = vld [vmem:[%s11453_s0 + $0x88] sm:$0xff]  ;;  %316 = vst [vmem:[#allocation1 + $0x23] ss:$4 sm:$0xff] %v96_v47  ;;  %v9254_v44 = vld [vmem:[%s11454_s1 + $0x1100] sm:$0xff] }
 0x1ea   :  { %6051 = vmatpush.bf16.msrb.mxu0 %v9195_v25  ;;  %v9234_v25 = vld [vmem:[%s11454_s1 + $0x1060] sm:$0xff]  ;;  %313 = vst [vmem:[#allocation1 + $0x20] ss:$4 sm:$0xff] %v39_v43  ;;  %v9279_v43 = vld [vmem:[%s11454_s1 + $0x11c8] sm:$0xff] }
 0x1eb   :  { %6064 = vmatpush.bf16.msrb.mxu1 %v9203_v26  ;;  %v9242_v26 = vld [vmem:[%s11454_s1 + $0x10a0] sm:$0xff] }
 0x1ec   :  { %6077 = vmatpush.bf16.msrb.mxu2 %v9211_v27 }
 0x1ed   :  { %6090 = vmatpush.bf16.msrb.mxu3 %v9219_v28  ;;  %v9250_v28 = vld [vmem:[%s11454_s1 + $0x10e0] sm:$0xff] }
 0x1ee   :  { %6052 = vmatpush.bf16.msrb.mxu0 %v9194_v31  ;;  %v5826_v57 = vpop.f32.mrf.mxu2  ;;  %v9241_v31 = vld [vmem:[%s11454_s1 + $0x1098] sm:$0xff] }
 0x1ef   :  { %6065 = vmatpush.bf16.msrb.mxu1 %v9202_v33  ;;  %v5839_v60 = vpop.f32.mrf.mxu3  ;;  %v319_v57 = vld.sshfl [vmem:[#allocation1 + $0x10] sm:$0xff pattern:$0x73625140] }
 0x1f0   :  { %6078 = vmatpush.bf16.msrb.mxu2 %v9210_v34  ;;  %v9249_v34 = vld [vmem:[%s11454_s1 + $0x10d8] sm:$0xff]  ;;  %v318_v60 = vld.sshfl [vmem:[#allocation1 + $0x8] sm:$0xff pattern:$0x73625140]  ;;  %v473_v1 = vpack.c.bf16 %v319_v57, %v319_v57 }
 0x1f1   :  { %6091 = vmatpush.bf16.msrb.mxu3 %v9218_v36 }
 0x1f2   :  { %6053 = vmatpush.bf16.msrb.mxu0 %v9193_v37 }
 0x1f3   :  { %6066 = vmatpush.bf16.msrb.mxu1 %v9201_v38  ;;  %v9224_v38 = vld [vmem:[%s11454_s1 + $0x1010] sm:$0xff] }
 0x1f4   :  { %6079 = vmatpush.bf16.msrb.mxu2 %v9209_v39 }
 0x1f5   :  { %6092 = vmatpush.bf16.msrb.mxu3 %v9217_v42  ;;  %v9248_v42 = vld [vmem:[%s11454_s1 + $0x10d0] sm:$0xff] }
 0x1f6   :  { %6054 = vmatpush.bf16.msrb.mxu0 %v9192_v46  ;;  %v77_v46 = vld [vmem:[%s11453_s0 + $0x1b4] sm:$0xff] }
 0x1f7   :  { %6067 = vmatpush.bf16.msrb.mxu1 %v9200_v48  ;;  %v9231_v48 = vld [vmem:[%s11454_s1 + $0x1048] sm:$0xff]  ;;  %315 = vst [vmem:[#allocation1 + $0x22] ss:$4 sm:$0xff] %v77_v46  ;;  %v9306_v46 = vld [vmem:[%s11454_s1 + $0x12a0] sm:$0x10] }
 0x1f8   :  { %6080 = vmatpush.bf16.msrb.mxu2 %v9208_v49  ;;  %v9239_v49 = vld [vmem:[%s11454_s1 + $0x1088] sm:$0xff] }
 0x1f9   :  { %6093 = vmatpush.bf16.msrb.mxu3 %v9216_v50 }
 0x1fa   :  { %6055 = vmatpush.bf16.msrb.mxu0 %v9191_v51  ;;  %v9247_v51 = vld [vmem:[%s11454_s1 + $0x10c8] sm:$0xff] }
 0x1fb   :  { %6068 = vmatpush.bf16.msrb.mxu1 %v9199_v55  ;;  %v9238_v55 = vld [vmem:[%s11454_s1 + $0x1080] sm:$0xff] }
 0x1fc   :  { %6081 = vmatpush.bf16.msrb.mxu2 %v9207_v56  ;;  %v317_v56 = vld.sshfl [vmem:[#allocation1] sm:$0xff pattern:$0x73625140] }
 0x1fd   :  { %6094 = vmatpush.bf16.msrb.mxu3 %v9215_v59  ;;  %v9269_v59 = vld [vmem:[%s11454_s1 + $0x1178] sm:$0xff]  ;;  %v471_v0 = vpack.c.bf16 %v317_v56, %v317_v56  ;;  %v9278_v56 = vld [vmem:[%s11454_s1 + $0x11c0] sm:$0xff] }
 0x1fe   :  { %6056 = vmatpush.bf16.msrb.mxu0 %v9190_v61  ;;  %v5850_v21 = vpop.f32.mrf.mxu0  ;;  %v9277_v61 = vld [vmem:[%s11454_s1 + $0x11b8] sm:$0xff] }
 0x1ff   :  { %6069 = vmatpush.bf16.msrb.mxu1 %v9198_v62  ;;  %v5851_v22 = vadd.f32 %v5850_v21, %v11102_v45  ;;  %v5863_v24 = vpop.f32.mrf.mxu1  ;;  %v9223_v45 = vld [vmem:[%s11454_s1 + $0x1008] sm:$0xff]  ;;  %v9246_v62 = vld [vmem:[%s11454_s1 + $0x10c0] sm:$0xff] }
 0x200   :  { %6082 = vmatpush.bf16.msrb.mxu2 %v9206_v63  ;;  %v320_v63 = vld.sshfl [vmem:[#allocation1 + $0x18] sm:$0xff pattern:$0x73625140]  ;;  %v59_v21 = vld [vmem:[%s11453_s0 + $0x126] sm:$0x3f] }
 0x201   :  { %6095 = vmatpush.bf16.msrb.mxu3 %v9214_v6  ;;  %6057 = vmatmul.bf16.vlgmr.msrb.gmra.mxu0 %v467_v8  ;;  %v5864_v27 = vadd.f32 %v5863_v24, %v5851_v22  ;;  %v474_v4 = vpack.c.bf16 %v320_v63, %v320_v63  ;;  %v9268_v6 = vld [vmem:[%s11454_s1 + $0x1170] sm:$0xff]  ;;  %v78_v22 = vld [vmem:[%s11453_s0 + $0x1bc] sm:$0x3f]  ;;  %326 = vst [vmem:[#allocation1 + $0x1] ss:$4 sm:$0xff] %v59_v21 }
 0x202   :  { %6101 = vmatpush.bf16.msra.mxu0 %v9229_v2  ;;  %6070 = vmatmul.bf16.vlgmr.msrb.gmra.mxu1 %v468_v11  ;;  %v9285_v2 = vld [vmem:[%s11454_s1 + $0x11f8] sm:$0xff]  ;;  %v9284_v8 = vld [vmem:[%s11454_s1 + $0x11f0] sm:$0xff]  ;;  %v9275_v11 = vld [vmem:[%s11454_s1 + $0x11a8] sm:$0xff]  ;;  %327 = vst [vmem:[#allocation1 + $0x2] ss:$4 sm:$0xff] %v78_v22 }
 0x203   :  { %6114 = vmatpush.bf16.msra.mxu1 %v9237_v3  ;;  %6083 = vmatmul.bf16.vlgmr.msrb.gmra.mxu2 %v469_v9  ;;  %v472_v3 = vpack.c.bf16 %v318_v60, %v318_v60  ;;  %v9259_v9 = vld [vmem:[%s11454_s1 + $0x1128] sm:$0xff]  ;;  %v97_v24 = vld [vmem:[%s11453_s0 + $0x252] sm:$0x3f] }
 0x204   :  { %6127 = vmatpush.bf16.msra.mxu2 %v9245_v5  ;;  %6096 = vmatmul.bf16.vlgmr.msrb.gmra.mxu3 %v470_v12  ;;  %v9260_v5 = vld [vmem:[%s11454_s1 + $0x1130] sm:$0xff]  ;;  %v9283_v12 = vld [vmem:[%s11454_s1 + $0x11e8] sm:$0xff]  ;;  %328 = vst [vmem:[#allocation1 + $0x3] ss:$4 sm:$0xff] %v97_v24 }
 0x205   :  { %6140 = vmatpush.bf16.msra.mxu3 %v9253_v10  ;;  %v9267_v10 = vld [vmem:[%s11454_s1 + $0x1168] sm:$0xff]  ;;  %v9292_v63 = vld [vmem:[%s11454_s1 + $0x1230] sm:$0xff] }
 0x206   :  { %6102 = vmatpush.bf16.msra.mxu0 %v9228_v13  ;;  %v5876_v32 = vpop.f32.mrf.mxu2  ;;  %v5852_v36 = vpop.f32.mrf.mxu0  ;;  %v9288_v21 = vld [vmem:[%s11454_s1 + $0x1210] sm:$0xff] }
 0x207   :  { %6115 = vmatpush.bf16.msra.mxu1 %v9236_v14  ;;  %v5877_v33 = vadd.f32 %v5876_v32, %v5864_v27  ;;  %v5889_v35 = vpop.f32.mrf.mxu3  ;;  %v5865_v39 = vpop.f32.mrf.mxu1  ;;  %v9273_v27 = vld [vmem:[%s11454_s1 + $0x1198] sm:$0xff]  ;;  %v9264_v36 = vld [vmem:[%s11454_s1 + $0x1150] sm:$0xff] }
 0x208   :  { %6128 = vmatpush.bf16.msra.mxu2 %v9244_v15  ;;  %v9258_v15 = vld [vmem:[%s11454_s1 + $0x1120] sm:$0xff]  ;;  %v9255_v39 = vld [vmem:[%s11454_s1 + $0x1108] sm:$0xff] }
 0x209   :  { %6141 = vmatpush.bf16.msra.mxu3 %v9252_v16  ;;  %v11213_v37 = vadd.f32 %v5889_v35, %v5877_v33 }
 0x20a   :  { %6103 = vmatpush.bf16.msra.mxu0 %v9227_v17  ;;  %v9266_v17 = vld [vmem:[%s11454_s1 + $0x1160] sm:$0xff] }
 0x20b   :  { %6116 = vmatpush.bf16.msra.mxu1 %v9235_v18  ;;  %v9274_v18 = vld [vmem:[%s11454_s1 + $0x11a0] sm:$0xff] }
 0x20c   :  { %6129 = vmatpush.bf16.msra.mxu2 %v9243_v19  ;;  %v40_v19 = vld [vmem:[%s11453_s0 + $0x90] sm:$0x3f] }
 0x20d   :  { %6142 = vmatpush.bf16.msra.mxu3 %v9251_v20  ;;  %325 = vst [vmem:[#allocation1] ss:$4 sm:$0xff] %v40_v19 }
 0x20e   :  { %6104 = vmatpush.bf16.msra.mxu0 %v9226_v23  ;;  %v5878_v50 = vpop.f32.mrf.mxu2  ;;  %v9282_v23 = vld [vmem:[%s11454_s1 + $0x11e0] sm:$0xff] }
 0x20f   :  { %6117 = vmatpush.bf16.msra.mxu1 %v9234_v25  ;;  %v5891_v52 = vpop.f32.mrf.mxu3  ;;  %v9257_v25 = vld [vmem:[%s11454_s1 + $0x1118] sm:$0xff]  ;;  %v321_v50 = vld.sshfl [vmem:[#allocation1 + $0x20] sm:$0xff pattern:$0x73625140] }
 0x210   :  { %6130 = vmatpush.bf16.msra.mxu2 %v9242_v26  ;;  %v9265_v26 = vld [vmem:[%s11454_s1 + $0x1158] sm:$0xff]  ;;  %v322_v52 = vld.sshfl [vmem:[#allocation1 + $0x28] sm:$0xff pattern:$0x73625140]  ;;  %v475_v57 = vpack.c.bf16 %v321_v50, %v321_v50 }
 0x211   :  { %6143 = vmatpush.bf16.msra.mxu3 %v9250_v28  ;;  %v476_v60 = vpack.c.bf16 %v322_v52, %v322_v52 }
 0x212   :  { %6105 = vmatpush.bf16.msra.mxu0 %v9225_v29 }
 0x213   :  { %6118 = vmatpush.bf16.msra.mxu1 %v9233_v30  ;;  %v9281_v30 = vld [vmem:[%s11454_s1 + $0x11d8] sm:$0xff] }
 0x214   :  { %6131 = vmatpush.bf16.msra.mxu2 %v9241_v31 }
 0x215   :  { %6144 = vmatpush.bf16.msra.mxu3 %v9249_v34  ;;  %v9256_v34 = vld [vmem:[%s11454_s1 + $0x1110] sm:$0xff] }
 0x216   :  { %6106 = vmatpush.bf16.msra.mxu0 %v9224_v38  ;;  %v9280_v38 = vld [vmem:[%s11454_s1 + $0x11d0] sm:$0xff] }
 0x217   :  { %6119 = vmatpush.bf16.msra.mxu1 %v9232_v40  ;;  %v9263_v40 = vld [vmem:[%s11454_s1 + $0x1148] sm:$0xff] }
 0x218   :  { %6132 = vmatpush.bf16.msra.mxu2 %v9240_v41  ;;  %v9271_v41 = vld [vmem:[%s11454_s1 + $0x1188] sm:$0xff] }
 0x219   :  { %6145 = vmatpush.bf16.msra.mxu3 %v9248_v42 }
 0x21a   :  { %6107 = vmatpush.bf16.msra.mxu0 %v9223_v45  ;;  %v8698_v45 = vld [vmem:[%s11454_s1 + $0x12a0] sm:$0xf] }
 0x21b   :  { %6120 = vmatpush.bf16.msra.mxu1 %v9231_v48  ;;  %v9262_v48 = vld [vmem:[%s11454_s1 + $0x1140] sm:$0xff] }
 0x21c   :  { %6133 = vmatpush.bf16.msra.mxu2 %v9239_v49  ;;  %v9270_v49 = vld [vmem:[%s11454_s1 + $0x1180] sm:$0xff] }
 0x21d   :  { %6146 = vmatpush.bf16.msra.mxu3 %v9247_v51  ;;  %v323_v51 = vld.sshfl [vmem:[#allocation1 + $0x30] sm:$0xff pattern:$0x73625140] }
 0x21e   :  { %6108 = vmatpush.bf16.msra.mxu0 %v9222_v53  ;;  %v5902_v13 = vpop.f32.mrf.mxu0  ;;  %v9293_v53 = vld [vmem:[%s11454_s1 + $0x1238] sm:$0xff] }
 0x21f   :  { %6121 = vmatpush.bf16.msra.mxu1 %v9230_v54  ;;  %v5903_v14 = vadd.f32 %v5902_v13, %v11213_v37  ;;  %v5915_v16 = vpop.f32.mrf.mxu1  ;;  %v9272_v37 = vld [vmem:[%s11454_s1 + $0x1190] sm:$0xff]  ;;  %v9301_v54 = vld [vmem:[%s11454_s1 + $0x1278] sm:$0xff] }
 0x220   :  { %6134 = vmatpush.bf16.msra.mxu2 %v9238_v55  ;;  %v8699_v55 = vor.u32 %v9306_v46, %v8698_v45  ;;  %v9297_v13 = vld [vmem:[%s11454_s1 + $0x1258] sm:$0xff] }
 0x221   :  { %6147 = vmatpush.bf16.msra.mxu3 %v9246_v62  ;;  %6109 = vmatmul.bf16.vlgmr.msra.gmra.mxu0 %v471_v0  ;;  %v5916_v20 = vadd.f32 %v5915_v16, %v5903_v14  ;;  %v9300_v0 = vld [vmem:[%s11454_s1 + $0x1270] sm:$0xff]  ;;  %v9302_v16 = vld [vmem:[%s11454_s1 + $0x1280] sm:$0xff] }
 0x222   :  { %6153 = vmatpush.bf16.msrb.mxu0 %v9261_v58  ;;  %6122 = vmatmul.bf16.vlgmr.msra.gmra.mxu1 %v472_v3  ;;  %v324_v58 = vld.sshfl [vmem:[#allocation1 + $0x38] sm:$0xff pattern:$0x73625140]  ;;  %v9299_v3 = vld [vmem:[%s11454_s1 + $0x1268] sm:$0xff] }
 0x223   :  { %6166 = vmatpush.bf16.msrb.mxu1 %v9269_v59  ;;  %6135 = vmatmul.bf16.vlgmr.msra.gmra.mxu2 %v473_v1  ;;  %v477_v59 = vpack.c.bf16 %v323_v51, %v323_v51  ;;  %v478_v62 = vpack.c.bf16 %v324_v58, %v324_v58  ;;  %v9305_v1 = vld [vmem:[%s11454_s1 + $0x1298] sm:$0xff] }
 0x224   :  { %6179 = vmatpush.bf16.msrb.mxu2 %v9277_v61  ;;  %6148 = vmatmul.bf16.vlgmr.msra.gmra.mxu3 %v474_v4  ;;  %v5267_v61 = vsel %vm5265_vm0, %v8699_v55, 0  ;;  %v9304_v4 = vld [vmem:[%s11454_s1 + $0x1290] sm:$0xff] }
 0x225   :  { %6192 = vmatpush.bf16.msrb.mxu3 %v9285_v2  ;;  %v9291_v2 = vld [vmem:[%s11454_s1 + $0x1228] sm:$0xff] }
 0x226   :  { %6154 = vmatpush.bf16.msrb.mxu0 %v9260_v5  ;;  %v5928_v28 = vpop.f32.mrf.mxu2  ;;  %v5904_v32 = vpop.f32.mrf.mxu0 }
 0x227   :  { %6167 = vmatpush.bf16.msrb.mxu1 %v9268_v6  ;;  %v5929_v29 = vadd.f32 %v5928_v28, %v5916_v20  ;;  %v5941_v31 = vpop.f32.mrf.mxu3  ;;  %v5917_v35 = vpop.f32.mrf.mxu1  ;;  %v330_v32 = vld.sshfl [vmem:[#allocation1 + $0x8] sm:$0xff pattern:$0x73625140] }
 0x228   :  { %6180 = vmatpush.bf16.msrb.mxu2 %v9276_v7  ;;  %v9290_v7 = vld [vmem:[%s11454_s1 + $0x1220] sm:$0xff] }
 0x229   :  { %6193 = vmatpush.bf16.msrb.mxu3 %v9284_v8  ;;  %v11336_v33 = vadd.f32 %v5941_v31, %v5929_v29  ;;  %v9286_v29 = vld [vmem:[%s11454_s1 + $0x1200] sm:$0xff] }
 0x22a   :  { %6155 = vmatpush.bf16.msrb.mxu0 %v9259_v9  ;;  %v9298_v9 = vld [vmem:[%s11454_s1 + $0x1260] sm:$0xff] }
 0x22b   :  { %6168 = vmatpush.bf16.msrb.mxu1 %v9267_v10  ;;  %v9294_v31 = vld [vmem:[%s11454_s1 + $0x1240] sm:$0xff] }
 0x22c   :  { %6181 = vmatpush.bf16.msrb.mxu2 %v9275_v11  ;;  %v9303_v11 = vld [vmem:[%s11454_s1 + $0x1288] sm:$0xff] }
 0x22d   :  { %6194 = vmatpush.bf16.msrb.mxu3 %v9283_v12  ;;  %v9289_v12 = vld [vmem:[%s11454_s1 + $0x1218] sm:$0xff] }
 0x22e   :  { %6156 = vmatpush.bf16.msrb.mxu0 %v9258_v15  ;;  %v5930_v42 = vpop.f32.mrf.mxu2 }
 0x22f   :  { %6169 = vmatpush.bf16.msrb.mxu1 %v9266_v17  ;;  %v5943_v47 = vpop.f32.mrf.mxu3 }
 0x230   :  { %6182 = vmatpush.bf16.msrb.mxu2 %v9274_v18  ;;  %v331_v18 = vld.sshfl [vmem:[#allocation1 + $0x10] sm:$0xff pattern:$0x73625140] }
 0x231   :  { %6195 = vmatpush.bf16.msrb.mxu3 %v9282_v23  ;;  %v9296_v23 = vld [vmem:[%s11454_s1 + $0x1250] sm:$0xff]  ;;  %v481_v24 = vpack.c.bf16 %v331_v18, %v331_v18 }
 0x232   :  { %6157 = vmatpush.bf16.msrb.mxu0 %v9257_v25  ;;  %v9287_v25 = vld [vmem:[%s11454_s1 + $0x1208] sm:$0xff] }
 0x233   :  { %6170 = vmatpush.bf16.msrb.mxu1 %v9265_v26  ;;  %v9295_v26 = vld [vmem:[%s11454_s1 + $0x1248] sm:$0xff] }
 0x234   :  { %6183 = vmatpush.bf16.msrb.mxu2 %v9273_v27 }
 0x235   :  { %6196 = vmatpush.bf16.msrb.mxu3 %v9281_v30  ;;  %v329_v30 = vld.sshfl [vmem:[#allocation1] sm:$0xff pattern:$0x73625140] }
 0x236   :  { %6158 = vmatpush.bf16.msrb.mxu0 %v9256_v34  ;;  %v480_v34 = vpack.c.bf16 %v330_v32, %v330_v32  ;;  %v9313_v32 = vld [vmem:[%s11457_s4] ss:$0 sm:$0xff] }
 0x237   :  { %6171 = vmatpush.bf16.msrb.mxu1 %v9264_v36 }
 0x238   :  { %6184 = vmatpush.bf16.msrb.mxu2 %v9272_v37 }
 0x239   :  { %6197 = vmatpush.bf16.msrb.mxu3 %v9280_v38 }
 0x23a   :  { %6159 = vmatpush.bf16.msrb.mxu0 %v9255_v39 }
 0x23b   :  { %6172 = vmatpush.bf16.msrb.mxu1 %v9263_v40 }
 0x23c   :  { %6185 = vmatpush.bf16.msrb.mxu2 %v9271_v41 }
 0x23d   :  { %6198 = vmatpush.bf16.msrb.mxu3 %v9279_v43 }
 0x23e   :  { %6160 = vmatpush.bf16.msrb.mxu0 %v9254_v44  ;;  %v5954_v5 = vpop.f32.mrf.mxu0 }
 0x23f   :  { %6173 = vmatpush.bf16.msrb.mxu1 %v9262_v48  ;;  %v5955_v6 = vadd.f32 %v5954_v5, %v11336_v33  ;;  %v5967_v8 = vpop.f32.mrf.mxu1  ;;  %v479_v33 = vpack.c.bf16 %v329_v30, %v329_v30 }
 0x240   :  { %6186 = vmatpush.bf16.msrb.mxu2 %v9270_v49 }
 0x241   :  { %6199 = vmatpush.bf16.msrb.mxu3 %v9278_v56  ;;  %6161 = vmatmul.bf16.vlgmr.msrb.gmra.mxu0 %v475_v57  ;;  %v5968_v10 = vadd.f32 %v5967_v8, %v5955_v6  ;;  %v9307_v6 = vld [vmem:[%s11456_s3] sm:$0xff] }
 0x242   :  { %6205 = vmatpush.bf16.msra.mxu0 %v9293_v53  ;;  %6174 = vmatmul.bf16.vlgmr.msrb.gmra.mxu1 %v476_v60 }
 0x243   :  { %6218 = vmatpush.bf16.msra.mxu1 %v9301_v54  ;;  %6187 = vmatmul.bf16.vlgmr.msrb.gmra.mxu2 %v477_v59 }
 0x244   :  { %6234 = vmatpush.bf16.msra.mxu2 %v5267_v61  ;;  %6200 = vmatmul.bf16.vlgmr.msrb.gmra.mxu3 %v478_v62 }
 0x246   :  { %6206 = vmatpush.bf16.msra.mxu0 %v9292_v63  ;;  %v5980_v14 = vpop.f32.mrf.mxu2  ;;  %v5956_v19 = vpop.f32.mrf.mxu0  ;;  %v9308_v63 = vld [vmem:[%s11456_s3 + $0x8] sm:$0xff] }
 0x247   :  { %6219 = vmatpush.bf16.msra.mxu1 %v9300_v0  ;;  %v5981_v15 = vadd.f32 %v5980_v14, %v5968_v10  ;;  %v5993_v17 = vpop.f32.mrf.mxu3  ;;  %v5969_v22 = vpop.f32.mrf.mxu1  ;;  %6276 = vmatpush.bf16.msra.mxu3 %v9308_v63 }
 0x248   :  { %6235 = vmatpush.bf16.msra.mxu2 %v9305_v1 }
 0x249   :  { %v5994_v20 = vadd.f32 %v5993_v17, %v5981_v15 }
 0x24a   :  { %6207 = vmatpush.bf16.msra.mxu0 %v9291_v2 }
 0x24b   :  { %6220 = vmatpush.bf16.msra.mxu1 %v9299_v3  ;;  %6277 = vmatpush.bf16.msra.mxu3 %v9307_v6 }
 0x24c   :  { %6236 = vmatpush.bf16.msra.mxu2 %v9304_v4 }
 0x24e   :  { %6208 = vmatpush.bf16.msra.mxu0 %v9290_v7  ;;  %v5982_v27 = vpop.f32.mrf.mxu2 }
 0x24f   :  { %6221 = vmatpush.bf16.msra.mxu1 %v9298_v9  ;;  %v5995_v28 = vpop.f32.mrf.mxu3 }
 0x250   :  { %6237 = vmatpush.bf16.msra.mxu2 %v9303_v11 }
 0x252   :  { %6209 = vmatpush.bf16.msra.mxu0 %v9289_v12 }
 0x253   :  { %6222 = vmatpush.bf16.msra.mxu1 %v9297_v13 }
 0x254   :  { %6238 = vmatpush.bf16.msra.mxu2 %v9302_v16 }
 0x256   :  { %6210 = vmatpush.bf16.msra.mxu0 %v9288_v21 }
 0x257   :  { %6223 = vmatpush.bf16.msra.mxu1 %v9296_v23  ;;  %8700 = vmatmul.msk.bf16.vlgmr.msra.gmra.mxu2 %vm5261_vm1, %v481_v24 }
 0x25a   :  { %6211 = vmatpush.bf16.msra.mxu0 %v9287_v25 }
 0x25b   :  { %6224 = vmatpush.bf16.msra.mxu1 %v9295_v26 }
 0x25e   :  { %6212 = vmatpush.bf16.msra.mxu0 %v9286_v29  ;;  %v6006_v35 = vpop.f32.mrf.mxu0 }
 0x25f   :  { %6225 = vmatpush.bf16.msra.mxu1 %v9294_v31  ;;  %v6007_v36 = vadd.f32 %v6006_v35, %v5994_v20  ;;  %v6019_v37 = vpop.f32.mrf.mxu1 }
 0x261   :  { %6213 = vmatmul.bf16.vlgmr.msra.gmra.mxu0 %v479_v33  ;;  %v6020_v38 = vadd.f32 %v6019_v37, %v6007_v36 }
 0x262   :  { %6226 = vmatmul.bf16.vlgmr.msra.gmra.mxu1 %v480_v34 }
 0x266   :  { %v6032_v39 = vpop.f32.mrf.mxu2  ;;  %v6008_v42 = vpop.f32.mrf.mxu0 }
 0x267   :  { %v6033_v40 = vadd.f32 %v6032_v39, %v6020_v38  ;;  %v6045_v41 = vpop.f32.mrf.mxu3  ;;  %v6021_v44 = vpop.f32.mrf.mxu1 }
 0x269   :  { %v6046_v43 = vadd.f32 %v6045_v41, %v6033_v40 }
 0x26e   :  { %v6034_v45 = vpop.f32.mrf.mxu2 }
 0x26f   :  { %v6047_v46 = vpop.f32.mrf.mxu3 }
 0x27e   :  { %v6058_v47 = vpop.f32.mrf.mxu0 }
 0x27f   :  { %v6059_v48 = vadd.f32 %v6058_v47, %v6046_v43  ;;  %v6071_v49 = vpop.f32.mrf.mxu1 }
 0x281   :  { %v6072_v50 = vadd.f32 %v6071_v49, %v6059_v48 }
 0x286   :  { %v6084_v51 = vpop.f32.mrf.mxu2  ;;  %v6060_v53 = vpop.f32.mrf.mxu0 }
 0x287   :  { %v6097_v52 = vpop.f32.mrf.mxu3  ;;  %v6073_v54 = vpop.f32.mrf.mxu1  ;;  %v6085_v3 = vadd.f32 %v6084_v51, %v6072_v50 }
 0x289   :  { %v6098_v5 = vadd.f32 %v6097_v52, %v6085_v3 }
 0x28e   :  { %v6086_v55 = vpop.f32.mrf.mxu2 }
 0x28f   :  { %v6099_v56 = vpop.f32.mrf.mxu3 }
 0x29e   :  { %v6110_v57 = vpop.f32.mrf.mxu0 }
 0x29f   :  { %v6123_v58 = vpop.f32.mrf.mxu1  ;;  %v6111_v7 = vadd.f32 %v6110_v57, %v6098_v5 }
 0x2a1   :  { %v6124_v12 = vadd.f32 %v6123_v58, %v6111_v7 }
 0x2a6   :  { %v6136_v59 = vpop.f32.mrf.mxu2  ;;  %v6112_v61 = vpop.f32.mrf.mxu0 }
 0x2a7   :  { %v6149_v60 = vpop.f32.mrf.mxu3  ;;  %v6125_v62 = vpop.f32.mrf.mxu1  ;;  %v6137_v13 = vadd.f32 %v6136_v59, %v6124_v12 }
 0x2a9   :  { %v6150_v15 = vadd.f32 %v6149_v60, %v6137_v13 }
 0x2ae   :  { %v6138_v0 = vpop.f32.mrf.mxu2 }
 0x2af   :  { %v6151_v1 = vpop.f32.mrf.mxu3 }
 0x2be   :  { %v6162_v2 = vpop.f32.mrf.mxu0 }
 0x2bf   :  { %v6175_v4 = vpop.f32.mrf.mxu1  ;;  %v6163_v17 = vadd.f32 %v6162_v2, %v6150_v15 }
 0x2c1   :  { %v6176_v18 = vadd.f32 %v6175_v4, %v6163_v17 }
 0x2c6   :  { %v6188_v8 = vpop.f32.mrf.mxu2  ;;  %v6164_v9 = vpop.f32.mrf.mxu0 }
 0x2c7   :  { %v6201_v10 = vpop.f32.mrf.mxu3  ;;  %v6177_v11 = vpop.f32.mrf.mxu1  ;;  %v6189_v19 = vadd.f32 %v6188_v8, %v6176_v18 }
 0x2c9   :  { %v6202_v21 = vadd.f32 %v6201_v10, %v6189_v19 }
 0x2ce   :  { %v6190_v14 = vpop.f32.mrf.mxu2 }
 0x2cf   :  { %v6203_v16 = vpop.f32.mrf.mxu3 }
 0x2da   :  { %v6240_v20 = vpop.f32.mrf.mxu2 }
 0x2de   :  { %v6214_v22 = vpop.f32.mrf.mxu0 }
 0x2df   :  { %v6215_v23 = vadd.f32 %v6214_v22, %v6202_v21  ;;  %v6227_v24 = vpop.f32.mrf.mxu1 }
 0x2e1   :  { %v6228_v25 = vadd.f32 %v6227_v24, %v6215_v23 }
 0x2e2   :  { %v6242_v27 = vpop.f32.mrf.mxu2 }
 0x2e3   :  { %v6241_v26 = vadd.f32 %v6240_v20, %v6228_v25 }
 0x2e5   :  { %v6244_v28 = vmax.f32 %v6241_v26, 0.0 }
 0x2e6   :  { %v6216_v29 = vpop.f32.mrf.mxu0 }
 0x2e7   :  { %v6245_v30 = vpack.c.bf16 %v6244_v28, %v6244_v28  ;;  %v6229_v31 = vpop.f32.mrf.mxu1 }
 0x2e9   :  { %8709 = vmatmul.msk.bf16.vlgmr.msra.gmra.mxu3 %vm6266_vm2, %v6245_v30 }
 0x36c   :  { %v6279_v33 = vpop.f32.mrf.mxu3 }
 0x36d   :  { %v6280_v34 = vadd.f32 %v9313_v32, %v6279_v33 }
 0x36f   :  { %6283 = vmax.xlane.f32.xlu0 %v6280_v34 }
 0x374   :  { %v6281_v35 = vpop.f32.mrf.mxu3 }
 0x3e2   :  { %v6284_v36 = vpop.xlane.xlu0 %6283 }
 0x3e3   :  { %v6285_v37 = vsub.f32 %v6280_v34, %v6284_v36 }
 0x3e5   :  { %v6286_v38 = vmul.f32 1.442695, %v6285_v37 }
 0x3e7   :  { %9314 = vpow2.f32 %v6286_v38 }
 0x3ed   :  { %v9315_v39 = vpop.eup %9314 }
 0x3ee   :  { %6288 = vadd.xlane.f32.xlu0 %v9315_v39 }
 0x461   :  { %v6289_v40 = vpop.xlane.xlu0 %6288 }
 0x462   :  { %9316 = vlog2.f32 %v6289_v40 }
 0x468   :  { %v9317_v41 = vpop.eup %9316 }
 0x469   :  { %v6291_v42 = vmul.f32 0.6931472, %v9317_v41 }
 0x46b   :  { %v6292_v43 = vsub.f32 %v6285_v37, %v6291_v42 }
 0x46d   :  { %6293 = vst [vmem:[#allocation2] sm:$0xff] %v6292_v43 }
 0x46e   :  { %6297 = vsyncadd [#allocation3], 96  ;;  %s6300_s4 = sshll.u32 %s11458_s5, 4  ;;  %s9344_s9 = smov [#allocation2]   ;;  %s6301_s4 = int_to_ptr.hbm [resolvable:$true] %s6300_s4 }
 0x46f   :  { %s6298_s10 = sshll.u32 %s9344_s9, 4  ;;  %s9345_s11 = smov 32   ;;  %s6299_s10 = int_to_ptr.vmem [resolvable:$true] %s6298_s10 }
 0x470   :  { %s9346_s12 = smov 2  }
 0x471   :  { %6306 = dma.vmem_to_hbm [thread:$0]  %s6299_s10, 32, %s6301_s4, [#allocation3], %s9345_s11, %s9345_s11, %s9346_s12  }
 0x472   :  { %9342 = dma.done.wait [#allocation3], 128  }
 0x473   :  { %9343 = vsyncadd [#allocation3], 4294967168 }
 0x474   :  { %6311 = vsyncpa [#allocation3], 1 }

</bundles_post_ra>
